<compile_context>
chip_gen: v7x
topology: tpu7x:2x2x1
jax: 0.10.0
libtpu: 0.0.40
codegen_flags: <defaults>
</compile_context>

<pallas_src>
import numpy as np
import jax
import jax.numpy as jnp
from jax import lax
from jax.experimental import pallas as pl
from jax.experimental.pallas import tpu as pltpu


# ----------------------------------------------------------------------------
# small static helpers
# ----------------------------------------------------------------------------
def _round_up(x, m):
    return ((x + m - 1) // m) * m


def _pick_sb_tile(T, E, H, sb, budget_bytes=24 << 20):
    """Largest multiple-of-8 SB tile whose per-tile VMEM footprint (double-buffered
    x block + gi/h scratch, f32) fits a v7x-safe budget; capped at 512 rows."""
    per_row = 4 * T * (2 * E + 8 * H) + 64
    cap = max(8, min(512, (budget_bytes // per_row) // 8 * 8))
    return int(min(cap, _round_up(sb, 8)))


def _vmem_limit(nbytes):
    # explicit scoped-VMEM limit: generous margin, clamped to stay v7x-safe
    return int(min(max(3 * nbytes, 16 << 20), 48 << 20))


def _prep_gru(gp):
    """Wrapper-side (tiny) weight prep:
       * fold b_hr / b_hz into the input bias (b_hn must stay inside tanh(r*(...))),
       * build the block-diagonal fused fwd+bwd hidden->hidden weight (2H, 6H)."""
    H = gp["wh_f"].shape[0]

    def fold(bi, bh):
        return bi.at[:, :2 * H].add(bh[:, :2 * H])

    wh2 = jnp.zeros((2 * H, 6 * H), jnp.float32)
    wh2 = wh2.at[:H, :3 * H].set(gp["wh_f"])
    wh2 = wh2.at[H:, 3 * H:].set(gp["wh_b"])
    return {"wi_f": gp["wi_f"], "bi_f": fold(gp["bi_f"], gp["bh_f"]),
            "wi_b": gp["wi_b"], "bi_b": fold(gp["bi_b"], gp["bh_b"]),
            "wh2": wh2,
            "bhn_f": gp["bh_f"][:, 2 * H:], "bhn_b": gp["bh_b"][:, 2 * H:]}


# ----------------------------------------------------------------------------
# In-kernel building blocks
# ----------------------------------------------------------------------------
def _bigru(x, lens, wi_f, bi_f, wi_b, bi_b, wh2, bhn_f, bhn_b,
           gif_ref, gib_ref, h_ref):
    """Length-masked bidirectional GRU (packed-sequence semantics).

    x      : (T, B, E) f32, time-major; B is a multiple of 8 (padded in the wrapper).
    lens   : (B, 1) int32 valid lengths, or None meaning every step is valid.
    wi_*   : (E, 3H) fused input->hidden weights, gate order (r, z, n).
    bi_*   : (1, 3H) input biases with b_hr / b_hz already folded in.
    wh2    : (2H, 6H) block-diagonal fused fwd+bwd hidden->hidden weights.
    bhn_*  : (1, H) hidden bias of the n gate.
    gif/gib: (T*B, 3H) VMEM scratch -- hoisted input projections (fwd / bwd).
    h_ref  : (T, B, 2H) VMEM scratch -- per-step outputs, [..,:H]=fwd, [..,H:]=bwd,
             exactly zero at padded steps (pad_packed_sequence semantics).
    """
    T, B, E = x.shape
    H = wh2.shape[0] // 2

    # Hoisted input projections: one big MXU matmul per direction, off the serial
    # recurrence path.  B % 8 == 0 so the (T,B,E)->(T*B,E) reshape is a free view.
    x2 = x.reshape(T * B, E)
    gif_ref[...] = jnp.dot(x2, wi_f, preferred_element_type=jnp.float32) + bi_f
    gib_ref[...] = jnp.dot(x2, wi_b, preferred_element_type=jnp.float32) + bi_b

    def step(s, h):
        tb = T - 1 - s
        # ONE fused MXU matmul for both directions on the serial chain.
        gh = jnp.dot(h, wh2, preferred_element_type=jnp.float32)        # (B, 6H)
        gi_f = gif_ref[pl.ds(pl.multiple_of(s * B, 8), B), :]           # (B, 3H)
        gi_b = gib_ref[pl.ds(pl.multiple_of(tb * B, 8), B), :]          # (B, 3H)
        h_f = h[:, :H]
        h_b = h[:, H:]

        r_f = jax.nn.sigmoid(gi_f[:, 0:H] + gh[:, 0:H])
        z_f = jax.nn.sigmoid(gi_f[:, H:2 * H] + gh[:, H:2 * H])
        n_f = jnp.tanh(gi_f[:, 2 * H:3 * H] + r_f * (gh[:, 2 * H:3 * H] + bhn_f))
        hf_new = n_f + z_f * (h_f - n_f)          # == (1 - z) * n + z * h

        r_b = jax.nn.sigmoid(gi_b[:, 0:H] + gh[:, 3 * H:4 * H])
        z_b = jax.nn.sigmoid(gi_b[:, H:2 * H] + gh[:, 4 * H:5 * H])
        n_b = jnp.tanh(gi_b[:, 2 * H:3 * H] + r_b * (gh[:, 5 * H:6 * H] + bhn_b))
        hb_new = n_b + z_b * (h_b - n_b)

        if lens is None:
            h_ref[s, :, 0:H] = hf_new
            h_ref[tb, :, H:2 * H] = hb_new
            return jnp.concatenate([hf_new, hb_new], axis=-1)

        m_f = s < lens                                              # (B, 1) bool
        m_b = tb < lens
        h_ref[s, :, 0:H] = jnp.where(m_f, hf_new, 0.0)              # zero padded rows
        h_ref[tb, :, H:2 * H] = jnp.where(m_b, hb_new, 0.0)
        # fwd: freeze hidden past the end; bwd: hidden stays 0 until t == len - 1.
        return jnp.concatenate([jnp.where(m_f, hf_new, h_f),
                                jnp.where(m_b, hb_new, h_b)], axis=-1)

    h0 = jnp.zeros((B, 2 * H), jnp.float32)
    # Fully unrolled short static loop: exposes both dependency chains to the scheduler.
    lax.fori_loop(0, T, step, h0, unroll=True)


def _attention(h_ref, valid, w1, b1, w2):
    """HAN attention over the time axis (axis 0) of the h scratch.
    h_ref: (T, B, D) VMEM ref; valid: (T, B, 1) bool mask over time, or None.
    u = tanh(h @ W1 + b1); alphas = softmax_time(u @ W2); out = sum_t alphas * h."""
    T, B, D = h_ref.shape
    h3 = h_ref[...]
    h2 = h3.reshape(T * B, D)
    u = jnp.tanh(jnp.dot(h2, w1, preferred_element_type=jnp.float32) + b1)
    scores = jnp.dot(u, w2, preferred_element_type=jnp.float32).reshape(T, B, D)
    if valid is not None:
        scores = jnp.where(valid, scores, jnp.float32(-1e30))
    m = jnp.max(scores, axis=0, keepdims=True)
    e = jnp.exp(scores - m)
    alphas = e / jnp.sum(e, axis=0, keepdims=True)       # softmax over time
    return jnp.sum(alphas * h3, axis=0)                  # (B, D)


# ----------------------------------------------------------------------------
# Fused kernels
# ----------------------------------------------------------------------------
def _word_encoder_kernel(x_ref, lens_ref, teff_ref,
                         wif_ref, bif_ref, wib_ref, bib_ref,
                         wh2_ref, bhnf_ref, bhnb_ref,
                         w1_ref, b1_ref, w2_ref,
                         out_ref, gif_ref, gib_ref, h_ref):
    """Word BiGRU + word attention for one SB tile of sentences.
    x: (T, SB_tile, E); lens/teff: (SB_tile, 1) int32; out: (SB_tile, 2H)."""
    T, SB, _ = x_ref.shape
    _bigru(x_ref[...].astype(jnp.float32), lens_ref[...],
           wif_ref[...], bif_ref[...], wib_ref[...], bib_ref[...],
           wh2_ref[...], bhnf_ref[...], bhnb_ref[...],
           gif_ref, gib_ref, h_ref)
    # Softmax only over t < t_eff (per-sentence-index minibatch max length); zero GRU
    # rows inside [len, t_eff) still participate, matching pad_packed_sequence.
    t_idx = lax.broadcasted_iota(jnp.int32, (T, SB, 1), 0)
    valid = t_idx < teff_ref[...].reshape(1, SB, 1)
    out_ref[...] = _attention(h_ref, valid, w1_ref[...], b1_ref[...],
                              w2_ref[...]).astype(out_ref.dtype)


def _sentence_classifier_kernel(x_ref,
                                wif_ref, bif_ref, wib_ref, bib_ref,
                                wh2_ref, bhnf_ref, bhnb_ref,
                                w1_ref, b1_ref, w2_ref, wc_ref, bc_ref,
                                out_ref, gif_ref, gib_ref, h_ref):
    """Sentence BiGRU + sentence attention + Linear + softmax, fused.
    x: (S, Bp, 2*hw); out: (Bp, num_classes)."""
    _bigru(x_ref[...].astype(jnp.float32), None,
           wif_ref[...], bif_ref[...], wib_ref[...], bib_ref[...],
           wh2_ref[...], bhnf_ref[...], bhnb_ref[...],
           gif_ref, gib_ref, h_ref)
    doc = _attention(h_ref, None, w1_ref[...], b1_ref[...], w2_ref[...])   # (Bp, 2*hs)
    # F.dropout(p=0) is the identity; final Linear + softmax(dim=1).
    logits = jnp.dot(doc, wc_ref[...], preferred_element_type=jnp.float32) + bc_ref[...]
    m = jnp.max(logits, axis=1, keepdims=True)
    e = jnp.exp(logits - m)
    out_ref[...] = (e / jnp.sum(e, axis=1, keepdims=True)).astype(out_ref.dtype)


# ----------------------------------------------------------------------------
# pallas_call wrappers
# ----------------------------------------------------------------------------
def word_encoder_call(x, lens, teff, gp, ap, *, sb_tile):
    T, SBp, E = x.shape
    H = gp["wh2"].shape[0] // 2
    D = 2 * H
    grid_n = SBp // sb_tile

    def rep(a):                                   # whole-array block, fixed at (0,..,0)
        zeros = (0,) * a.ndim

        def imap(i):
            return zeros
        return pl.BlockSpec(a.shape, imap)

    weights = (gp["wi_f"], gp["bi_f"], gp["wi_b"], gp["bi_b"], gp["wh2"],
               gp["bhn_f"], gp["bhn_b"], ap["w1"], ap["b1"], ap["w2"])

    in_specs = ([pl.BlockSpec((T, sb_tile, E), lambda i: (0, i, 0)),
                 pl.BlockSpec((sb_tile, 1), lambda i: (i, 0)),
                 pl.BlockSpec((sb_tile, 1), lambda i: (i, 0))]
                + [rep(w) for w in weights])

    flops = int(4 * T * SBp * E * 3 * H            # hoisted input projections (2 dirs)
                + 2 * T * SBp * 2 * H * 6 * H      # fused recurrent matmuls
                + 4 * T * SBp * D * D)             # attention layer1 + layer2
    trans = int(T * SBp * (6 * H + 2 * D))
    weight_bytes = 4 * sum(int(w.size) for w in weights)
    bytes_accessed = int(4 * (x.size + lens.size + teff.size + SBp * D) + weight_bytes)

    # per-tile VMEM footprint (f32): double-buffered x/out blocks + scratch + weights
    tile_bytes = (4 * (2 * T * sb_tile * E + 2 * sb_tile * D + 4 * sb_tile
                       + 2 * T * sb_tile * 3 * H + T * sb_tile * D)
                  + 2 * weight_bytes)

    return pl.pallas_call(
        _word_encoder_kernel,
        out_shape=jax.ShapeDtypeStruct((SBp, D), jnp.float32),
        grid=(grid_n,),
        in_specs=in_specs,
        out_specs=pl.BlockSpec((sb_tile, D), lambda i: (i, 0)),
        scratch_shapes=[pltpu.VMEM((T * sb_tile, 3 * H), jnp.float32),
                        pltpu.VMEM((T * sb_tile, 3 * H), jnp.float32),
                        pltpu.VMEM((T, sb_tile, D), jnp.float32)],
        compiler_params=pltpu.CompilerParams(
            dimension_semantics=("parallel",),
            vmem_limit_bytes=_vmem_limit(tile_bytes)),
        cost_estimate=pl.CostEstimate(flops=flops, transcendentals=trans,
                                      bytes_accessed=bytes_accessed),
    )(x, lens, teff, *weights)


def sentence_classifier_call(sx, gp, ap, cls_w, cls_b):
    S, Bp, D_in = sx.shape
    H = gp["wh2"].shape[0] // 2
    D = 2 * H
    C = cls_w.shape[-1]

    weights = (gp["wi_f"], gp["bi_f"], gp["wi_b"], gp["bi_b"], gp["wh2"],
               gp["bhn_f"], gp["bhn_b"], ap["w1"], ap["b1"], ap["w2"], cls_w, cls_b)

    flops = int(4 * S * Bp * D_in * 3 * H + 2 * S * Bp * 2 * H * 6 * H
                + 4 * S * Bp * D * D + 2 * Bp * D * C)
    trans = int(S * Bp * (6 * H + 2 * D) + Bp * C)
    weight_bytes = 4 * sum(int(w.size) for w in weights)
    bytes_accessed = int(4 * (sx.size + Bp * C) + weight_bytes)
    total_bytes = (4 * (int(sx.size) + Bp * C
                        + 2 * S * Bp * 3 * H + S * Bp * D)
                   + 2 * weight_bytes)

    vspec = pl.BlockSpec(memory_space=pltpu.MemorySpace.VMEM)
    return pl.pallas_call(
        _sentence_classifier_kernel,
        out_shape=jax.ShapeDtypeStruct((Bp, C), jnp.float32),
        in_specs=[vspec] * (1 + len(weights)),
        out_specs=vspec,
        scratch_shapes=[pltpu.VMEM((S * Bp, 3 * H), jnp.float32),
                        pltpu.VMEM((S * Bp, 3 * H), jnp.float32),
                        pltpu.VMEM((S, Bp, D), jnp.float32)],
        compiler_params=pltpu.CompilerParams(vmem_limit_bytes=_vmem_limit(total_bytes)),
        cost_estimate=pl.CostEstimate(flops=flops, transcendentals=trans,
                                      bytes_accessed=bytes_accessed),
    )(sx, *weights)


# ----------------------------------------------------------------------------
# Parameter init (deterministic, synthetic) — gate-fused layouts (r, z, n)
# ----------------------------------------------------------------------------
def init_han_params(key, vocab_size, embedding_size, hw, hs, num_classes):
    keys = iter(jax.random.split(key, 32))

    def nrm(shape, scale=0.1):
        return (scale * jax.random.normal(next(keys), shape)).astype(jnp.float32)

    def gru_params(in_dim, h):
        return {"wi_f": nrm((in_dim, 3 * h)), "bi_f": nrm((1, 3 * h)),
                "wh_f": nrm((h, 3 * h)),      "bh_f": nrm((1, 3 * h)),
                "wi_b": nrm((in_dim, 3 * h)), "bi_b": nrm((1, 3 * h)),
                "wh_b": nrm((h, 3 * h)),      "bh_b": nrm((1, 3 * h))}

    def attn_params(d):
        return {"w1": nrm((d, d)), "b1": nrm((1, d)), "w2": nrm((d, d))}

    return {
        "embedding": nrm((vocab_size, embedding_size), 0.5),
        "word_gru": gru_params(embedding_size, hw),
        "word_attn": attn_params(2 * hw),
        "sent_gru": gru_params(2 * hw, hs),
        "sent_attn": attn_params(2 * hs),
        "cls_w": nrm((2 * hs, num_classes)),
        "cls_b": nrm((1, num_classes)),
    }


# ----------------------------------------------------------------------------
# HAN forward (Pallas path)
# ----------------------------------------------------------------------------
def han_forward(params, seqs, seq_lens):
    """
    seqs:     int32 (S, B, T)  sentence i of every document, padded to T words
    seq_lens: int32 (S, B)     valid word count per (sentence, doc)
    returns:  float32 (B, num_classes) class probabilities
    """
    S, B, T = seqs.shape
    assert S >= 2, "the reference module only defines out_sent when len(seqs) >= 2"
    SB = S * B

    # Embedding lookup + time-major layout (plain-JAX glue).
    # TODO(synk): the embedding gather stays in XLA; a Pallas gather adds nothing here.
    emb = params["embedding"][seqs]                                 # (S, B, T, E)
    E = emb.shape[-1]
    x = jnp.transpose(emb.reshape(SB, T, E), (1, 0, 2))             # (T, SB, E)

    seq_lens = jnp.asarray(seq_lens, jnp.int32)
    lens = seq_lens.reshape(SB, 1)                                  # per-sentence length
    teff = jnp.repeat(jnp.max(seq_lens, axis=1), B).reshape(SB, 1)  # per-index max len

    hw = params["word_gru"]["wh_f"].shape[0]

    # --- word-level path: one SB-tiled pallas_call over all S*B sentences ----------
    sb_tile = _pick_sb_tile(T, E, hw, SB)
    SBp = _round_up(SB, sb_tile)
    if SBp != SB:
        pad = SBp - SB
        x = jnp.pad(x, ((0, 0), (0, pad), (0, 0)))
        lens = jnp.pad(lens, ((0, pad), (0, 0)))                    # padded rows: len=0
        teff = jnp.pad(teff, ((0, pad), (0, 0)), constant_values=T)
    sents = word_encoder_call(x, lens, teff, _prep_gru(params["word_gru"]),
                              params["word_attn"], sb_tile=sb_tile)
    sents = sents[:SB].reshape(S, B, 2 * hw)                        # (S, B, 2*hw)

    # --- sentence-level path: sentence BiGRU + attention + classifier --------------
    Bp = _round_up(B, 8)
    if Bp != B:
        sents = jnp.pad(sents, ((0, 0), (0, Bp - B), (0, 0)))
    probs = sentence_classifier_call(sents, _prep_gru(params["sent_gru"]),
                                     params["sent_attn"],
                                     params["cls_w"], params["cls_b"])
    return probs[:B]


# ----------------------------------------------------------------------------
# Pure-JAX reference (same packed-sequence / attention semantics) for self-check
# ----------------------------------------------------------------------------
def _mm(a, b):
    return jnp.matmul(a, b, precision=lax.Precision.HIGHEST)


def _bigru_ref(x, lens, gp):
    T, B, E = x.shape
    H = gp["wh_f"].shape[0]

    def run(wi, bi, wh, bh, order):
        h = jnp.zeros((B, H), jnp.float32)
        outs = [None] * T
        for t in order:
            gi = _mm(x[t], wi) + bi
            gh = _mm(h, wh) + bh
            r = jax.nn.sigmoid(gi[:, :H] + gh[:, :H])
            z = jax.nn.sigmoid(gi[:, H:2 * H] + gh[:, H:2 * H])
            n = jnp.tanh(gi[:, 2 * H:] + r * gh[:, 2 * H:])
            h_new = (1.0 - z) * n + z * h
            if lens is None:
                outs[t] = h_new
                h = h_new
            else:
                m = (t < lens).astype(jnp.float32)
                outs[t] = m * h_new
                h = m * h_new + (1.0 - m) * h
        return jnp.stack(outs, axis=0)

    h_f = run(gp["wi_f"], gp["bi_f"], gp["wh_f"], gp["bh_f"], range(T))
    h_b = run(gp["wi_b"], gp["bi_b"], gp["wh_b"], gp["bh_b"], range(T - 1, -1, -1))
    return jnp.concatenate([h_f, h_b], axis=-1)


def _attn_ref(h, teff, ap):
    T, B, D = h.shape
    u = jnp.tanh(_mm(h, ap["w1"]) + ap["b1"])
    s = _mm(u, ap["w2"])
    if teff is not None:
        t_idx = jnp.arange(T).reshape(T, 1, 1)
        s = jnp.where(t_idx < teff.reshape(1, B, 1), s, -1e30)
    a = jax.nn.softmax(s, axis=0)
    return jnp.sum(a * h, axis=0)


def han_forward_ref(params, seqs, seq_lens):
    S, B, T = seqs.shape
    seq_lens = jnp.asarray(seq_lens, jnp.int32)
    emb = params["embedding"][seqs]
    sent_vecs = []
    for s in range(S):
        x = jnp.transpose(emb[s], (1, 0, 2))                        # (T, B, E)
        lens = seq_lens[s].reshape(B, 1)
        teff = jnp.broadcast_to(jnp.max(seq_lens[s]), (B, 1))
        h = _bigru_ref(x, lens, params["word_gru"])
        sent_vecs.append(_attn_ref(h, teff, params["word_attn"]))
    sx = jnp.stack(sent_vecs, axis=0)                               # (S, B, 2*hw)
    hsent = _bigru_ref(sx, None, params["sent_gru"])
    doc = _attn_ref(hsent, None, params["sent_attn"])
    logits = _mm(doc, params["cls_w"]) + params["cls_b"]
    return jax.nn.softmax(logits, axis=1)


# ----------------------------------------------------------------------------
if __name__ == "__main__":
    vocab_size = 50
    embedding_size = 16
    hidden_size_words = 16
    hidden_size_sent = 16
    batch_size = 2        # B documents
    num_classes = 4
    S, T = 3, 8           # sentences per doc, max words per sentence

    key = jax.random.PRNGKey(0)
    pkey, dkey = jax.random.split(key)
    params = init_han_params(pkey, vocab_size, embedding_size,
                             hidden_size_words, hidden_size_sent, num_classes)

    seqs = jax.random.randint(dkey, (S, batch_size, T), 0, vocab_size, dtype=jnp.int32)
    seq_lens = jnp.array([[8, 5],
                          [6, 4],
                          [7, 8]], dtype=jnp.int32)                 # (S, B)

    han = jax.jit(han_forward)
    probs = jax.block_until_ready(han(params, seqs, seq_lens))

    assert probs.shape == (batch_size, num_classes)
    assert np.allclose(np.asarray(jnp.sum(probs, axis=1)), 1.0, atol=1e-5)

    # self-check against a pure-JAX reference with the same semantics
    ref = np.asarray(han_forward_ref(params, seqs, seq_lens))
    np.testing.assert_allclose(np.asarray(probs), ref, rtol=2e-3, atol=2e-3)

    print("KERNEL_OK")
</pallas_src>

<mosaic_0001>
module attributes {stable_mosaic.version = 11 : i64} {
  func.func @_word_encoder_kernel(%arg0: i32, %arg1: memref<8x8x16xf32, #tpu.memory_space<vmem>>, %arg2: memref<8x1xi32, #tpu.memory_space<vmem>>, %arg3: memref<8x1xi32, #tpu.memory_space<vmem>>, %arg4: memref<16x48xf32, #tpu.memory_space<vmem>>, %arg5: memref<1x48xf32, #tpu.memory_space<vmem>>, %arg6: memref<16x48xf32, #tpu.memory_space<vmem>>, %arg7: memref<1x48xf32, #tpu.memory_space<vmem>>, %arg8: memref<32x96xf32, #tpu.memory_space<vmem>>, %arg9: memref<1x16xf32, #tpu.memory_space<vmem>>, %arg10: memref<1x16xf32, #tpu.memory_space<vmem>>, %arg11: memref<32x32xf32, #tpu.memory_space<vmem>>, %arg12: memref<1x32xf32, #tpu.memory_space<vmem>>, %arg13: memref<32x32xf32, #tpu.memory_space<vmem>>, %arg14: memref<8x32xf32, #tpu.memory_space<vmem>>, %arg15: memref<64x48xf32, #tpu.memory_space<vmem>>, %arg16: memref<64x48xf32, #tpu.memory_space<vmem>>, %arg17: memref<8x8x32xf32, #tpu.memory_space<vmem>>) attributes {dimension_semantics = [#tpu.dimension_semantics<parallel>], iteration_bounds = array<i64: 1>, scalar_prefetch = 0 : i64, scratch_operands = 3 : i64, tpu.core_type = #tpu.core_type<tc>, window_params = [{transform_indices = @transform_0, window_bounds = array<i64: 8, 8, 16>}, {transform_indices = @transform_1, window_bounds = array<i64: 8, 1>}, {transform_indices = @transform_2, window_bounds = array<i64: 8, 1>}, {pipeline_mode = #tpu.pipeline_mode<synchronous>, transform_indices = @transform_3, window_bounds = array<i64: 16, 48>}, {pipeline_mode = #tpu.pipeline_mode<synchronous>, transform_indices = @transform_4, window_bounds = array<i64: 1, 48>}, {pipeline_mode = #tpu.pipeline_mode<synchronous>, transform_indices = @transform_5, window_bounds = array<i64: 16, 48>}, {pipeline_mode = #tpu.pipeline_mode<synchronous>, transform_indices = @transform_6, window_bounds = array<i64: 1, 48>}, {pipeline_mode = #tpu.pipeline_mode<synchronous>, transform_indices = @transform_7, window_bounds = array<i64: 32, 96>}, {pipeline_mode = #tpu.pipeline_mode<synchronous>, transform_indices = @transform_8, window_bounds = array<i64: 1, 16>}, {pipeline_mode = #tpu.pipeline_mode<synchronous>, transform_indices = @transform_9, window_bounds = array<i64: 1, 16>}, {pipeline_mode = #tpu.pipeline_mode<synchronous>, transform_indices = @transform_10, window_bounds = array<i64: 32, 32>}, {pipeline_mode = #tpu.pipeline_mode<synchronous>, transform_indices = @transform_11, window_bounds = array<i64: 1, 32>}, {pipeline_mode = #tpu.pipeline_mode<synchronous>, transform_indices = @transform_12, window_bounds = array<i64: 32, 32>}, {transform_indices = @transform_13, window_bounds = array<i64: 8, 32>}]} {
    %c0 = arith.constant 0 : index
    %c0_0 = arith.constant 0 : index
    %c0_1 = arith.constant 0 : index
    %0 = vector.load %arg1[%c0, %c0_0, %c0_1] : memref<8x8x16xf32, #tpu.memory_space<vmem>>, vector<8x8x16xf32>
    %c0_2 = arith.constant 0 : index
    %c0_3 = arith.constant 0 : index
    %1 = vector.load %arg2[%c0_2, %c0_3] : memref<8x1xi32, #tpu.memory_space<vmem>>, vector<8x1xi32>
    %c0_4 = arith.constant 0 : index
    %c0_5 = arith.constant 0 : index
    %2 = vector.load %arg4[%c0_4, %c0_5] : memref<16x48xf32, #tpu.memory_space<vmem>>, vector<16x48xf32>
    %c0_6 = arith.constant 0 : index
    %c0_7 = arith.constant 0 : index
    %3 = vector.load %arg5[%c0_6, %c0_7] : memref<1x48xf32, #tpu.memory_space<vmem>>, vector<1x48xf32>
    %c0_8 = arith.constant 0 : index
    %c0_9 = arith.constant 0 : index
    %4 = vector.load %arg6[%c0_8, %c0_9] : memref<16x48xf32, #tpu.memory_space<vmem>>, vector<16x48xf32>
    %c0_10 = arith.constant 0 : index
    %c0_11 = arith.constant 0 : index
    %5 = vector.load %arg7[%c0_10, %c0_11] : memref<1x48xf32, #tpu.memory_space<vmem>>, vector<1x48xf32>
    %c0_12 = arith.constant 0 : index
    %c0_13 = arith.constant 0 : index
    %6 = vector.load %arg8[%c0_12, %c0_13] : memref<32x96xf32, #tpu.memory_space<vmem>>, vector<32x96xf32>
    %c0_14 = arith.constant 0 : index
    %c0_15 = arith.constant 0 : index
    %7 = vector.load %arg9[%c0_14, %c0_15] : memref<1x16xf32, #tpu.memory_space<vmem>>, vector<1x16xf32>
    %c0_16 = arith.constant 0 : index
    %c0_17 = arith.constant 0 : index
    %8 = vector.load %arg10[%c0_16, %c0_17] : memref<1x16xf32, #tpu.memory_space<vmem>>, vector<1x16xf32>
    %9 = vector.shape_cast %0 : vector<8x8x16xf32> to vector<64x16xf32>
    %cst = arith.constant dense<0.000000e+00> : vector<64x48xf32>
    %10 = tpu.matmul %9, %2, %cst {dimension_numbers = #tpu.dot_dimension_numbers<[1], [0], [0], [1], [0, 0, 1, 1], [], []>} : vector<64x16xf32>, vector<16x48xf32>, vector<64x48xf32> -> vector<64x48xf32>
    %11 = vector.broadcast %3 : vector<1x48xf32> to vector<64x48xf32>
    %12 = arith.addf %10, %11 : vector<64x48xf32>
    %c0_18 = arith.constant 0 : index
    %c0_19 = arith.constant 0 : index
    %13 = vector.load %arg15[%c0_18, %c0_19] : memref<64x48xf32, #tpu.memory_space<vmem>>, vector<64x48xf32>
    tpu.vector_store %arg15[%c0_18, %c0_19], %12 {strides = array<i32>} : memref<64x48xf32, #tpu.memory_space<vmem>>, vector<64x48xf32>,
    %cst_20 = arith.constant dense<0.000000e+00> : vector<64x48xf32>
    %14 = tpu.matmul %9, %4, %cst_20 {dimension_numbers = #tpu.dot_dimension_numbers<[1], [0], [0], [1], [0, 0, 1, 1], [], []>} : vector<64x16xf32>, vector<16x48xf32>, vector<64x48xf32> -> vector<64x48xf32>
    %15 = vector.broadcast %5 : vector<1x48xf32> to vector<64x48xf32>
    %16 = arith.addf %14, %15 : vector<64x48xf32>
    %c0_21 = arith.constant 0 : index
    %c0_22 = arith.constant 0 : index
    %17 = vector.load %arg16[%c0_21, %c0_22] : memref<64x48xf32, #tpu.memory_space<vmem>>, vector<64x48xf32>
    tpu.vector_store %arg16[%c0_21, %c0_22], %16 {strides = array<i32>} : memref<64x48xf32, #tpu.memory_space<vmem>>, vector<64x48xf32>,
    %cst_23 = arith.constant 0.000000e+00 : f32
    %18 = vector.broadcast %cst_23 : f32 to vector<8x32xf32>
    %c0_i32 = arith.constant 0 : i32
    %c7_i32 = arith.constant 7 : i32
    %19 = arith.subi %c7_i32, %c0_i32 : i32
    %cst_24 = arith.constant dense<0.000000e+00> : vector<8x96xf32>
    %20 = tpu.matmul %18, %6, %cst_24 {dimension_numbers = #tpu.dot_dimension_numbers<[1], [0], [0], [1], [0, 0, 1, 1], [], []>} : vector<8x32xf32>, vector<32x96xf32>, vector<8x96xf32> -> vector<8x96xf32>
    %c8_i32 = arith.constant 8 : i32
    %21 = arith.muli %c0_i32, %c8_i32 : i32
    %22 = tpu.assume_multiple %21, 8 : i32
    %23 = arith.index_cast %22 : i32 to index
    %c0_25 = arith.constant 0 : index
    %24 = vector.load %arg15[%23, %c0_25] : memref<64x48xf32, #tpu.memory_space<vmem>>, vector<8x48xf32>
    %c8_i32_26 = arith.constant 8 : i32
    %25 = arith.muli %19, %c8_i32_26 : i32
    %26 = tpu.assume_multiple %25, 8 : i32
    %27 = arith.index_cast %26 : i32 to index
    %c0_27 = arith.constant 0 : index
    %28 = vector.load %arg16[%27, %c0_27] : memref<64x48xf32, #tpu.memory_space<vmem>>, vector<8x48xf32>
    %29 = vector.extract_strided_slice %18 {offsets = [0, 0], sizes = [8, 16], strides = [1, 1]} : vector<8x32xf32> to vector<8x16xf32>
    %30 = vector.extract_strided_slice %18 {offsets = [0, 16], sizes = [8, 16], strides = [1, 1]} : vector<8x32xf32> to vector<8x16xf32>
    %31 = vector.extract_strided_slice %24 {offsets = [0, 0], sizes = [8, 16], strides = [1, 1]} : vector<8x48xf32> to vector<8x16xf32>
    %32 = vector.extract_strided_slice %20 {offsets = [0, 0], sizes = [8, 16], strides = [1, 1]} : vector<8x96xf32> to vector<8x16xf32>
    %33 = arith.addf %31, %32 : vector<8x16xf32>
    %34 = arith.negf %33 : vector<8x16xf32>
    %35 = math.exp %34 : vector<8x16xf32>
    %cst_28 = arith.constant 1.000000e+00 : f32
    %36 = vector.broadcast %cst_28 : f32 to vector<8x16xf32>
    %37 = arith.addf %36, %35 : vector<8x16xf32>
    %38 = arith.divf %36, %37 : vector<8x16xf32>
    %39 = vector.extract_strided_slice %24 {offsets = [0, 16], sizes = [8, 16], strides = [1, 1]} : vector<8x48xf32> to vector<8x16xf32>
    %40 = vector.extract_strided_slice %20 {offsets = [0, 16], sizes = [8, 16], strides = [1, 1]} : vector<8x96xf32> to vector<8x16xf32>
    %41 = arith.addf %39, %40 : vector<8x16xf32>
    %42 = arith.negf %41 : vector<8x16xf32>
    %43 = math.exp %42 : vector<8x16xf32>
    %cst_29 = arith.constant 1.000000e+00 : f32
    %44 = vector.broadcast %cst_29 : f32 to vector<8x16xf32>
    %45 = arith.addf %44, %43 : vector<8x16xf32>
    %46 = arith.divf %44, %45 : vector<8x16xf32>
    %47 = vector.extract_strided_slice %24 {offsets = [0, 32], sizes = [8, 16], strides = [1, 1]} : vector<8x48xf32> to vector<8x16xf32>
    %48 = vector.extract_strided_slice %20 {offsets = [0, 32], sizes = [8, 16], strides = [1, 1]} : vector<8x96xf32> to vector<8x16xf32>
    %49 = vector.broadcast %7 : vector<1x16xf32> to vector<8x16xf32>
    %50 = arith.addf %48, %49 : vector<8x16xf32>
    %51 = arith.mulf %38, %50 : vector<8x16xf32>
    %52 = arith.addf %47, %51 : vector<8x16xf32>
    %53 = math.tanh %52 : vector<8x16xf32>
    %54 = arith.subf %29, %53 : vector<8x16xf32>
    %55 = arith.mulf %46, %54 : vector<8x16xf32>
    %56 = arith.addf %53, %55 : vector<8x16xf32>
    %57 = vector.extract_strided_slice %28 {offsets = [0, 0], sizes = [8, 16], strides = [1, 1]} : vector<8x48xf32> to vector<8x16xf32>
    %58 = vector.extract_strided_slice %20 {offsets = [0, 48], sizes = [8, 16], strides = [1, 1]} : vector<8x96xf32> to vector<8x16xf32>
    %59 = arith.addf %57, %58 : vector<8x16xf32>
    %60 = arith.negf %59 : vector<8x16xf32>
    %61 = math.exp %60 : vector<8x16xf32>
    %cst_30 = arith.constant 1.000000e+00 : f32
    %62 = vector.broadcast %cst_30 : f32 to vector<8x16xf32>
    %63 = arith.addf %62, %61 : vector<8x16xf32>
    %64 = arith.divf %62, %63 : vector<8x16xf32>
    %65 = vector.extract_strided_slice %28 {offsets = [0, 16], sizes = [8, 16], strides = [1, 1]} : vector<8x48xf32> to vector<8x16xf32>
    %66 = vector.extract_strided_slice %20 {offsets = [0, 64], sizes = [8, 16], strides = [1, 1]} : vector<8x96xf32> to vector<8x16xf32>
    %67 = arith.addf %65, %66 : vector<8x16xf32>
    %68 = arith.negf %67 : vector<8x16xf32>
    %69 = math.exp %68 : vector<8x16xf32>
    %cst_31 = arith.constant 1.000000e+00 : f32
    %70 = vector.broadcast %cst_31 : f32 to vector<8x16xf32>
    %71 = arith.addf %70, %69 : vector<8x16xf32>
    %72 = arith.divf %70, %71 : vector<8x16xf32>
    %73 = vector.extract_strided_slice %28 {offsets = [0, 32], sizes = [8, 16], strides = [1, 1]} : vector<8x48xf32> to vector<8x16xf32>
    %74 = vector.extract_strided_slice %20 {offsets = [0, 80], sizes = [8, 16], strides = [1, 1]} : vector<8x96xf32> to vector<8x16xf32>
    %75 = vector.broadcast %8 : vector<1x16xf32> to vector<8x16xf32>
    %76 = arith.addf %74, %75 : vector<8x16xf32>
    %77 = arith.mulf %64, %76 : vector<8x16xf32>
    %78 = arith.addf %73, %77 : vector<8x16xf32>
    %79 = math.tanh %78 : vector<8x16xf32>
    %80 = arith.subf %30, %79 : vector<8x16xf32>
    %81 = arith.mulf %72, %80 : vector<8x16xf32>
    %82 = arith.addf %79, %81 : vector<8x16xf32>
    %83 = vector.broadcast %c0_i32 : i32 to vector<8x1xi32>
    %84 = arith.cmpi slt, %83, %1 : vector<8x1xi32>
    %85 = vector.broadcast %19 : i32 to vector<8x1xi32>
    %86 = arith.cmpi slt, %85, %1 : vector<8x1xi32>
    %cst_32 = arith.constant 0.000000e+00 : f32
    %87 = vector.shape_cast %84 : vector<8x1xi1> to vector<8x1xi1>
    %88 = vector.broadcast %87 : vector<8x1xi1> to vector<8x16xi1>
    %89 = vector.broadcast %cst_32 : f32 to vector<8x16xf32>
    %90 = arith.select %88, %56, %89 : vector<8x16xi1>, vector<8x16xf32>
    %91 = arith.index_cast %c0_i32 : i32 to index
    %c0_33 = arith.constant 0 : index
    %c0_34 = arith.constant 0 : index
    %92 = vector.load %arg17[%91, %c0_33, %c0_34] : memref<8x8x32xf32, #tpu.memory_space<vmem>>, vector<1x8x16xf32>
    %93 = vector.shape_cast %92 : vector<1x8x16xf32> to vector<8x16xf32>
    %94 = vector.shape_cast %90 : vector<8x16xf32> to vector<1x8x16xf32>
    tpu.vector_store %arg17[%91, %c0_33, %c0_34], %94 {strides = array<i32>} : memref<8x8x32xf32, #tpu.memory_space<vmem>>, vector<1x8x16xf32>,
    %cst_35 = arith.constant 0.000000e+00 : f32
    %95 = vector.shape_cast %86 : vector<8x1xi1> to vector<8x1xi1>
    %96 = vector.broadcast %95 : vector<8x1xi1> to vector<8x16xi1>
    %97 = vector.broadcast %cst_35 : f32 to vector<8x16xf32>
    %98 = arith.select %96, %82, %97 : vector<8x16xi1>, vector<8x16xf32>
    %99 = arith.index_cast %19 : i32 to index
    %c0_36 = arith.constant 0 : index
    %c16 = arith.constant 16 : index
    %100 = vector.load %arg17[%99, %c0_36, %c16] : memref<8x8x32xf32, #tpu.memory_space<vmem>>, vector<1x8x16xf32>
    %101 = vector.shape_cast %100 : vector<1x8x16xf32> to vector<8x16xf32>
    %102 = vector.shape_cast %98 : vector<8x16xf32> to vector<1x8x16xf32>
    tpu.vector_store %arg17[%99, %c0_36, %c16], %102 {strides = array<i32>} : memref<8x8x32xf32, #tpu.memory_space<vmem>>, vector<1x8x16xf32>,
    %103 = vector.shape_cast %84 : vector<8x1xi1> to vector<8x1xi1>
    %104 = vector.broadcast %103 : vector<8x1xi1> to vector<8x16xi1>
    %105 = arith.select %104, %56, %29 : vector<8x16xi1>, vector<8x16xf32>
    %106 = vector.shape_cast %86 : vector<8x1xi1> to vector<8x1xi1>
    %107 = vector.broadcast %106 : vector<8x1xi1> to vector<8x16xi1>
    %108 = arith.select %107, %82, %30 : vector<8x16xi1>, vector<8x16xf32>
    %109 = tpu.concatenate %105, %108 in 1 : vector<8x16xf32>, vector<8x16xf32> -> vector<8x32xf32>
    %c1_i32 = arith.constant 1 : i32
    %c7_i32_37 = arith.constant 7 : i32
    %110 = arith.subi %c7_i32_37, %c1_i32 : i32
    %cst_38 = arith.constant dense<0.000000e+00> : vector<8x96xf32>
    %111 = tpu.matmul %109, %6, %cst_38 {dimension_numbers = #tpu.dot_dimension_numbers<[1], [0], [0], [1], [0, 0, 1, 1], [], []>} : vector<8x32xf32>, vector<32x96xf32>, vector<8x96xf32> -> vector<8x96xf32>
    %c8_i32_39 = arith.constant 8 : i32
    %112 = arith.muli %c1_i32, %c8_i32_39 : i32
    %113 = tpu.assume_multiple %112, 8 : i32
    %114 = arith.index_cast %113 : i32 to index
    %c0_40 = arith.constant 0 : index
    %115 = vector.load %arg15[%114, %c0_40] : memref<64x48xf32, #tpu.memory_space<vmem>>, vector<8x48xf32>
    %c8_i32_41 = arith.constant 8 : i32
    %116 = arith.muli %110, %c8_i32_41 : i32
    %117 = tpu.assume_multiple %116, 8 : i32
    %118 = arith.index_cast %117 : i32 to index
    %c0_42 = arith.constant 0 : index
    %119 = vector.load %arg16[%118, %c0_42] : memref<64x48xf32, #tpu.memory_space<vmem>>, vector<8x48xf32>
    %120 = vector.extract_strided_slice %109 {offsets = [0, 0], sizes = [8, 16], strides = [1, 1]} : vector<8x32xf32> to vector<8x16xf32>
    %121 = vector.extract_strided_slice %109 {offsets = [0, 16], sizes = [8, 16], strides = [1, 1]} : vector<8x32xf32> to vector<8x16xf32>
    %122 = vector.extract_strided_slice %115 {offsets = [0, 0], sizes = [8, 16], strides = [1, 1]} : vector<8x48xf32> to vector<8x16xf32>
    %123 = vector.extract_strided_slice %111 {offsets = [0, 0], sizes = [8, 16], strides = [1, 1]} : vector<8x96xf32> to vector<8x16xf32>
    %124 = arith.addf %122, %123 : vector<8x16xf32>
    %125 = arith.negf %124 : vector<8x16xf32>
    %126 = math.exp %125 : vector<8x16xf32>
    %cst_43 = arith.constant 1.000000e+00 : f32
    %127 = vector.broadcast %cst_43 : f32 to vector<8x16xf32>
    %128 = arith.addf %127, %126 : vector<8x16xf32>
    %129 = arith.divf %127, %128 : vector<8x16xf32>
    %130 = vector.extract_strided_slice %115 {offsets = [0, 16], sizes = [8, 16], strides = [1, 1]} : vector<8x48xf32> to vector<8x16xf32>
    %131 = vector.extract_strided_slice %111 {offsets = [0, 16], sizes = [8, 16], strides = [1, 1]} : vector<8x96xf32> to vector<8x16xf32>
    %132 = arith.addf %130, %131 : vector<8x16xf32>
    %133 = arith.negf %132 : vector<8x16xf32>
    %134 = math.exp %133 : vector<8x16xf32>
    %cst_44 = arith.constant 1.000000e+00 : f32
    %135 = vector.broadcast %cst_44 : f32 to vector<8x16xf32>
    %136 = arith.addf %135, %134 : vector<8x16xf32>
    %137 = arith.divf %135, %136 : vector<8x16xf32>
    %138 = vector.extract_strided_slice %115 {offsets = [0, 32], sizes = [8, 16], strides = [1, 1]} : vector<8x48xf32> to vector<8x16xf32>
    %139 = vector.extract_strided_slice %111 {offsets = [0, 32], sizes = [8, 16], strides = [1, 1]} : vector<8x96xf32> to vector<8x16xf32>
    %140 = vector.broadcast %7 : vector<1x16xf32> to vector<8x16xf32>
    %141 = arith.addf %139, %140 : vector<8x16xf32>
    %142 = arith.mulf %129, %141 : vector<8x16xf32>
    %143 = arith.addf %138, %142 : vector<8x16xf32>
    %144 = math.tanh %143 : vector<8x16xf32>
    %145 = arith.subf %120, %144 : vector<8x16xf32>
    %146 = arith.mulf %137, %145 : vector<8x16xf32>
    %147 = arith.addf %144, %146 : vector<8x16xf32>
    %148 = vector.extract_strided_slice %119 {offsets = [0, 0], sizes = [8, 16], strides = [1, 1]} : vector<8x48xf32> to vector<8x16xf32>
    %149 = vector.extract_strided_slice %111 {offsets = [0, 48], sizes = [8, 16], strides = [1, 1]} : vector<8x96xf32> to vector<8x16xf32>
    %150 = arith.addf %148, %149 : vector<8x16xf32>
    %151 = arith.negf %150 : vector<8x16xf32>
    %152 = math.exp %151 : vector<8x16xf32>
    %cst_45 = arith.constant 1.000000e+00 : f32
    %153 = vector.broadcast %cst_45 : f32 to vector<8x16xf32>
    %154 = arith.addf %153, %152 : vector<8x16xf32>
    %155 = arith.divf %153, %154 : vector<8x16xf32>
    %156 = vector.extract_strided_slice %119 {offsets = [0, 16], sizes = [8, 16], strides = [1, 1]} : vector<8x48xf32> to vector<8x16xf32>
    %157 = vector.extract_strided_slice %111 {offsets = [0, 64], sizes = [8, 16], strides = [1, 1]} : vector<8x96xf32> to vector<8x16xf32>
    %158 = arith.addf %156, %157 : vector<8x16xf32>
    %159 = arith.negf %158 : vector<8x16xf32>
    %160 = math.exp %159 : vector<8x16xf32>
    %cst_46 = arith.constant 1.000000e+00 : f32
    %161 = vector.broadcast %cst_46 : f32 to vector<8x16xf32>
    %162 = arith.addf %161, %160 : vector<8x16xf32>
    %163 = arith.divf %161, %162 : vector<8x16xf32>
    %164 = vector.extract_strided_slice %119 {offsets = [0, 32], sizes = [8, 16], strides = [1, 1]} : vector<8x48xf32> to vector<8x16xf32>
    %165 = vector.extract_strided_slice %111 {offsets = [0, 80], sizes = [8, 16], strides = [1, 1]} : vector<8x96xf32> to vector<8x16xf32>
    %166 = vector.broadcast %8 : vector<1x16xf32> to vector<8x16xf32>
    %167 = arith.addf %165, %166 : vector<8x16xf32>
    %168 = arith.mulf %155, %167 : vector<8x16xf32>
    %169 = arith.addf %164, %168 : vector<8x16xf32>
    %170 = math.tanh %169 : vector<8x16xf32>
    %171 = arith.subf %121, %170 : vector<8x16xf32>
    %172 = arith.mulf %163, %171 : vector<8x16xf32>
    %173 = arith.addf %170, %172 : vector<8x16xf32>
    %174 = vector.broadcast %c1_i32 : i32 to vector<8x1xi32>
    %175 = arith.cmpi slt, %174, %1 : vector<8x1xi32>
    %176 = vector.broadcast %110 : i32 to vector<8x1xi32>
    %177 = arith.cmpi slt, %176, %1 : vector<8x1xi32>
    %cst_47 = arith.constant 0.000000e+00 : f32
    %178 = vector.shape_cast %175 : vector<8x1xi1> to vector<8x1xi1>
    %179 = vector.broadcast %178 : vector<8x1xi1> to vector<8x16xi1>
    %180 = vector.broadcast %cst_47 : f32 to vector<8x16xf32>
    %181 = arith.select %179, %147, %180 : vector<8x16xi1>, vector<8x16xf32>
    %182 = arith.index_cast %c1_i32 : i32 to index
    %c0_48 = arith.constant 0 : index
    %c0_49 = arith.constant 0 : index
    %183 = vector.load %arg17[%182, %c0_48, %c0_49] : memref<8x8x32xf32, #tpu.memory_space<vmem>>, vector<1x8x16xf32>
    %184 = vector.shape_cast %183 : vector<1x8x16xf32> to vector<8x16xf32>
    %185 = vector.shape_cast %181 : vector<8x16xf32> to vector<1x8x16xf32>
    tpu.vector_store %arg17[%182, %c0_48, %c0_49], %185 {strides = array<i32>} : memref<8x8x32xf32, #tpu.memory_space<vmem>>, vector<1x8x16xf32>,
    %cst_50 = arith.constant 0.000000e+00 : f32
    %186 = vector.shape_cast %177 : vector<8x1xi1> to vector<8x1xi1>
    %187 = vector.broadcast %186 : vector<8x1xi1> to vector<8x16xi1>
    %188 = vector.broadcast %cst_50 : f32 to vector<8x16xf32>
    %189 = arith.select %187, %173, %188 : vector<8x16xi1>, vector<8x16xf32>
    %190 = arith.index_cast %110 : i32 to index
    %c0_51 = arith.constant 0 : index
    %c16_52 = arith.constant 16 : index
    %191 = vector.load %arg17[%190, %c0_51, %c16_52] : memref<8x8x32xf32, #tpu.memory_space<vmem>>, vector<1x8x16xf32>
    %192 = vector.shape_cast %191 : vector<1x8x16xf32> to vector<8x16xf32>
    %193 = vector.shape_cast %189 : vector<8x16xf32> to vector<1x8x16xf32>
    tpu.vector_store %arg17[%190, %c0_51, %c16_52], %193 {strides = array<i32>} : memref<8x8x32xf32, #tpu.memory_space<vmem>>, vector<1x8x16xf32>,
    %194 = vector.shape_cast %175 : vector<8x1xi1> to vector<8x1xi1>
    %195 = vector.broadcast %194 : vector<8x1xi1> to vector<8x16xi1>
    %196 = arith.select %195, %147, %120 : vector<8x16xi1>, vector<8x16xf32>
    %197 = vector.shape_cast %177 : vector<8x1xi1> to vector<8x1xi1>
    %198 = vector.broadcast %197 : vector<8x1xi1> to vector<8x16xi1>
    %199 = arith.select %198, %173, %121 : vector<8x16xi1>, vector<8x16xf32>
    %200 = tpu.concatenate %196, %199 in 1 : vector<8x16xf32>, vector<8x16xf32> -> vector<8x32xf32>
    %c2_i32 = arith.constant 2 : i32
    %c7_i32_53 = arith.constant 7 : i32
    %201 = arith.subi %c7_i32_53, %c2_i32 : i32
    %cst_54 = arith.constant dense<0.000000e+00> : vector<8x96xf32>
    %202 = tpu.matmul %200, %6, %cst_54 {dimension_numbers = #tpu.dot_dimension_numbers<[1], [0], [0], [1], [0, 0, 1, 1], [], []>} : vector<8x32xf32>, vector<32x96xf32>, vector<8x96xf32> -> vector<8x96xf32>
    %c8_i32_55 = arith.constant 8 : i32
    %203 = arith.muli %c2_i32, %c8_i32_55 : i32
    %204 = tpu.assume_multiple %203, 8 : i32
    %205 = arith.index_cast %204 : i32 to index
    %c0_56 = arith.constant 0 : index
    %206 = vector.load %arg15[%205, %c0_56] : memref<64x48xf32, #tpu.memory_space<vmem>>, vector<8x48xf32>
    %c8_i32_57 = arith.constant 8 : i32
    %207 = arith.muli %201, %c8_i32_57 : i32
    %208 = tpu.assume_multiple %207, 8 : i32
    %209 = arith.index_cast %208 : i32 to index
    %c0_58 = arith.constant 0 : index
    %210 = vector.load %arg16[%209, %c0_58] : memref<64x48xf32, #tpu.memory_space<vmem>>, vector<8x48xf32>
    %211 = vector.extract_strided_slice %200 {offsets = [0, 0], sizes = [8, 16], strides = [1, 1]} : vector<8x32xf32> to vector<8x16xf32>
    %212 = vector.extract_strided_slice %200 {offsets = [0, 16], sizes = [8, 16], strides = [1, 1]} : vector<8x32xf32> to vector<8x16xf32>
    %213 = vector.extract_strided_slice %206 {offsets = [0, 0], sizes = [8, 16], strides = [1, 1]} : vector<8x48xf32> to vector<8x16xf32>
    %214 = vector.extract_strided_slice %202 {offsets = [0, 0], sizes = [8, 16], strides = [1, 1]} : vector<8x96xf32> to vector<8x16xf32>
    %215 = arith.addf %213, %214 : vector<8x16xf32>
    %216 = arith.negf %215 : vector<8x16xf32>
    %217 = math.exp %216 : vector<8x16xf32>
    %cst_59 = arith.constant 1.000000e+00 : f32
    %218 = vector.broadcast %cst_59 : f32 to vector<8x16xf32>
    %219 = arith.addf %218, %217 : vector<8x16xf32>
    %220 = arith.divf %218, %219 : vector<8x16xf32>
    %221 = vector.extract_strided_slice %206 {offsets = [0, 16], sizes = [8, 16], strides = [1, 1]} : vector<8x48xf32> to vector<8x16xf32>
    %222 = vector.extract_strided_slice %202 {offsets = [0, 16], sizes = [8, 16], strides = [1, 1]} : vector<8x96xf32> to vector<8x16xf32>
    %223 = arith.addf %221, %222 : vector<8x16xf32>
    %224 = arith.negf %223 : vector<8x16xf32>
    %225 = math.exp %224 : vector<8x16xf32>
    %cst_60 = arith.constant 1.000000e+00 : f32
    %226 = vector.broadcast %cst_60 : f32 to vector<8x16xf32>
    %227 = arith.addf %226, %225 : vector<8x16xf32>
    %228 = arith.divf %226, %227 : vector<8x16xf32>
    %229 = vector.extract_strided_slice %206 {offsets = [0, 32], sizes = [8, 16], strides = [1, 1]} : vector<8x48xf32> to vector<8x16xf32>
    %230 = vector.extract_strided_slice %202 {offsets = [0, 32], sizes = [8, 16], strides = [1, 1]} : vector<8x96xf32> to vector<8x16xf32>
    %231 = vector.broadcast %7 : vector<1x16xf32> to vector<8x16xf32>
    %232 = arith.addf %230, %231 : vector<8x16xf32>
    %233 = arith.mulf %220, %232 : vector<8x16xf32>
    %234 = arith.addf %229, %233 : vector<8x16xf32>
    %235 = math.tanh %234 : vector<8x16xf32>
    %236 = arith.subf %211, %235 : vector<8x16xf32>
    %237 = arith.mulf %228, %236 : vector<8x16xf32>
    %238 = arith.addf %235, %237 : vector<8x16xf32>
    %239 = vector.extract_strided_slice %210 {offsets = [0, 0], sizes = [8, 16], strides = [1, 1]} : vector<8x48xf32> to vector<8x16xf32>
    %240 = vector.extract_strided_slice %202 {offsets = [0, 48], sizes = [8, 16], strides = [1, 1]} : vector<8x96xf32> to vector<8x16xf32>
    %241 = arith.addf %239, %240 : vector<8x16xf32>
    %242 = arith.negf %241 : vector<8x16xf32>
    %243 = math.exp %242 : vector<8x16xf32>
    %cst_61 = arith.constant 1.000000e+00 : f32
    %244 = vector.broadcast %cst_61 : f32 to vector<8x16xf32>
    %245 = arith.addf %244, %243 : vector<8x16xf32>
    %246 = arith.divf %244, %245 : vector<8x16xf32>
    %247 = vector.extract_strided_slice %210 {offsets = [0, 16], sizes = [8, 16], strides = [1, 1]} : vector<8x48xf32> to vector<8x16xf32>
    %248 = vector.extract_strided_slice %202 {offsets = [0, 64], sizes = [8, 16], strides = [1, 1]} : vector<8x96xf32> to vector<8x16xf32>
    %249 = arith.addf %247, %248 : vector<8x16xf32>
    %250 = arith.negf %249 : vector<8x16xf32>
    %251 = math.exp %250 : vector<8x16xf32>
    %cst_62 = arith.constant 1.000000e+00 : f32
    %252 = vector.broadcast %cst_62 : f32 to vector<8x16xf32>
    %253 = arith.addf %252, %251 : vector<8x16xf32>
    %254 = arith.divf %252, %253 : vector<8x16xf32>
    %255 = vector.extract_strided_slice %210 {offsets = [0, 32], sizes = [8, 16], strides = [1, 1]} : vector<8x48xf32> to vector<8x16xf32>
    %256 = vector.extract_strided_slice %202 {offsets = [0, 80], sizes = [8, 16], strides = [1, 1]} : vector<8x96xf32> to vector<8x16xf32>
    %257 = vector.broadcast %8 : vector<1x16xf32> to vector<8x16xf32>
    %258 = arith.addf %256, %257 : vector<8x16xf32>
    %259 = arith.mulf %246, %258 : vector<8x16xf32>
    %260 = arith.addf %255, %259 : vector<8x16xf32>
    %261 = math.tanh %260 : vector<8x16xf32>
    %262 = arith.subf %212, %261 : vector<8x16xf32>
    %263 = arith.mulf %254, %262 : vector<8x16xf32>
    %264 = arith.addf %261, %263 : vector<8x16xf32>
    %265 = vector.broadcast %c2_i32 : i32 to vector<8x1xi32>
    %266 = arith.cmpi slt, %265, %1 : vector<8x1xi32>
    %267 = vector.broadcast %201 : i32 to vector<8x1xi32>
    %268 = arith.cmpi slt, %267, %1 : vector<8x1xi32>
    %cst_63 = arith.constant 0.000000e+00 : f32
    %269 = vector.shape_cast %266 : vector<8x1xi1> to vector<8x1xi1>
    %270 = vector.broadcast %269 : vector<8x1xi1> to vector<8x16xi1>
    %271 = vector.broadcast %cst_63 : f32 to vector<8x16xf32>
    %272 = arith.select %270, %238, %271 : vector<8x16xi1>, vector<8x16xf32>
    %273 = arith.index_cast %c2_i32 : i32 to index
    %c0_64 = arith.constant 0 : index
    %c0_65 = arith.constant 0 : index
    %274 = vector.load %arg17[%273, %c0_64, %c0_65] : memref<8x8x32xf32, #tpu.memory_space<vmem>>, vector<1x8x16xf32>
    %275 = vector.shape_cast %274 : vector<1x8x16xf32> to vector<8x16xf32>
    %276 = vector.shape_cast %272 : vector<8x16xf32> to vector<1x8x16xf32>
    tpu.vector_store %arg17[%273, %c0_64, %c0_65], %276 {strides = array<i32>} : memref<8x8x32xf32, #tpu.memory_space<vmem>>, vector<1x8x16xf32>,
    %cst_66 = arith.constant 0.000000e+00 : f32
    %277 = vector.shape_cast %268 : vector<8x1xi1> to vector<8x1xi1>
    %278 = vector.broadcast %277 : vector<8x1xi1> to vector<8x16xi1>
    %279 = vector.broadcast %cst_66 : f32 to vector<8x16xf32>
    %280 = arith.select %278, %264, %279 : vector<8x16xi1>, vector<8x16xf32>
    %281 = arith.index_cast %201 : i32 to index
    %c0_67 = arith.constant 0 : index
    %c16_68 = arith.constant 16 : index
    %282 = vector.load %arg17[%281, %c0_67, %c16_68] : memref<8x8x32xf32, #tpu.memory_space<vmem>>, vector<1x8x16xf32>
    %283 = vector.shape_cast %282 : vector<1x8x16xf32> to vector<8x16xf32>
    %284 = vector.shape_cast %280 : vector<8x16xf32> to vector<1x8x16xf32>
    tpu.vector_store %arg17[%281, %c0_67, %c16_68], %284 {strides = array<i32>} : memref<8x8x32xf32, #tpu.memory_space<vmem>>, vector<1x8x16xf32>,
    %285 = vector.shape_cast %266 : vector<8x1xi1> to vector<8x1xi1>
    %286 = vector.broadcast %285 : vector<8x1xi1> to vector<8x16xi1>
    %287 = arith.select %286, %238, %211 : vector<8x16xi1>, vector<8x16xf32>
    %288 = vector.shape_cast %268 : vector<8x1xi1> to vector<8x1xi1>
    %289 = vector.broadcast %288 : vector<8x1xi1> to vector<8x16xi1>
    %290 = arith.select %289, %264, %212 : vector<8x16xi1>, vector<8x16xf32>
    %291 = tpu.concatenate %287, %290 in 1 : vector<8x16xf32>, vector<8x16xf32> -> vector<8x32xf32>
    %c3_i32 = arith.constant 3 : i32
    %c7_i32_69 = arith.constant 7 : i32
    %292 = arith.subi %c7_i32_69, %c3_i32 : i32
    %cst_70 = arith.constant dense<0.000000e+00> : vector<8x96xf32>
    %293 = tpu.matmul %291, %6, %cst_70 {dimension_numbers = #tpu.dot_dimension_numbers<[1], [0], [0], [1], [0, 0, 1, 1], [], []>} : vector<8x32xf32>, vector<32x96xf32>, vector<8x96xf32> -> vector<8x96xf32>
    %c8_i32_71 = arith.constant 8 : i32
    %294 = arith.muli %c3_i32, %c8_i32_71 : i32
    %295 = tpu.assume_multiple %294, 8 : i32
    %296 = arith.index_cast %295 : i32 to index
    %c0_72 = arith.constant 0 : index
    %297 = vector.load %arg15[%296, %c0_72] : memref<64x48xf32, #tpu.memory_space<vmem>>, vector<8x48xf32>
    %c8_i32_73 = arith.constant 8 : i32
    %298 = arith.muli %292, %c8_i32_73 : i32
    %299 = tpu.assume_multiple %298, 8 : i32
    %300 = arith.index_cast %299 : i32 to index
    %c0_74 = arith.constant 0 : index
    %301 = vector.load %arg16[%300, %c0_74] : memref<64x48xf32, #tpu.memory_space<vmem>>, vector<8x48xf32>
    %302 = vector.extract_strided_slice %291 {offsets = [0, 0], sizes = [8, 16], strides = [1, 1]} : vector<8x32xf32> to vector<8x16xf32>
    %303 = vector.extract_strided_slice %291 {offsets = [0, 16], sizes = [8, 16], strides = [1, 1]} : vector<8x32xf32> to vector<8x16xf32>
    %304 = vector.extract_strided_slice %297 {offsets = [0, 0], sizes = [8, 16], strides = [1, 1]} : vector<8x48xf32> to vector<8x16xf32>
    %305 = vector.extract_strided_slice %293 {offsets = [0, 0], sizes = [8, 16], strides = [1, 1]} : vector<8x96xf32> to vector<8x16xf32>
    %306 = arith.addf %304, %305 : vector<8x16xf32>
    %307 = arith.negf %306 : vector<8x16xf32>
    %308 = math.exp %307 : vector<8x16xf32>
    %cst_75 = arith.constant 1.000000e+00 : f32
    %309 = vector.broadcast %cst_75 : f32 to vector<8x16xf32>
    %310 = arith.addf %309, %308 : vector<8x16xf32>
    %311 = arith.divf %309, %310 : vector<8x16xf32>
    %312 = vector.extract_strided_slice %297 {offsets = [0, 16], sizes = [8, 16], strides = [1, 1]} : vector<8x48xf32> to vector<8x16xf32>
    %313 = vector.extract_strided_slice %293 {offsets = [0, 16], sizes = [8, 16], strides = [1, 1]} : vector<8x96xf32> to vector<8x16xf32>
    %314 = arith.addf %312, %313 : vector<8x16xf32>
    %315 = arith.negf %314 : vector<8x16xf32>
    %316 = math.exp %315 : vector<8x16xf32>
    %cst_76 = arith.constant 1.000000e+00 : f32
    %317 = vector.broadcast %cst_76 : f32 to vector<8x16xf32>
    %318 = arith.addf %317, %316 : vector<8x16xf32>
    %319 = arith.divf %317, %318 : vector<8x16xf32>
    %320 = vector.extract_strided_slice %297 {offsets = [0, 32], sizes = [8, 16], strides = [1, 1]} : vector<8x48xf32> to vector<8x16xf32>
    %321 = vector.extract_strided_slice %293 {offsets = [0, 32], sizes = [8, 16], strides = [1, 1]} : vector<8x96xf32> to vector<8x16xf32>
    %322 = vector.broadcast %7 : vector<1x16xf32> to vector<8x16xf32>
    %323 = arith.addf %321, %322 : vector<8x16xf32>
    %324 = arith.mulf %311, %323 : vector<8x16xf32>
    %325 = arith.addf %320, %324 : vector<8x16xf32>
    %326 = math.tanh %325 : vector<8x16xf32>
    %327 = arith.subf %302, %326 : vector<8x16xf32>
    %328 = arith.mulf %319, %327 : vector<8x16xf32>
    %329 = arith.addf %326, %328 : vector<8x16xf32>
    %330 = vector.extract_strided_slice %301 {offsets = [0, 0], sizes = [8, 16], strides = [1, 1]} : vector<8x48xf32> to vector<8x16xf32>
    %331 = vector.extract_strided_slice %293 {offsets = [0, 48], sizes = [8, 16], strides = [1, 1]} : vector<8x96xf32> to vector<8x16xf32>
    %332 = arith.addf %330, %331 : vector<8x16xf32>
    %333 = arith.negf %332 : vector<8x16xf32>
    %334 = math.exp %333 : vector<8x16xf32>
    %cst_77 = arith.constant 1.000000e+00 : f32
    %335 = vector.broadcast %cst_77 : f32 to vector<8x16xf32>
    %336 = arith.addf %335, %334 : vector<8x16xf32>
    %337 = arith.divf %335, %336 : vector<8x16xf32>
    %338 = vector.extract_strided_slice %301 {offsets = [0, 16], sizes = [8, 16], strides = [1, 1]} : vector<8x48xf32> to vector<8x16xf32>
    %339 = vector.extract_strided_slice %293 {offsets = [0, 64], sizes = [8, 16], strides = [1, 1]} : vector<8x96xf32> to vector<8x16xf32>
    %340 = arith.addf %338, %339 : vector<8x16xf32>
    %341 = arith.negf %340 : vector<8x16xf32>
    %342 = math.exp %341 : vector<8x16xf32>
    %cst_78 = arith.constant 1.000000e+00 : f32
    %343 = vector.broadcast %cst_78 : f32 to vector<8x16xf32>
    %344 = arith.addf %343, %342 : vector<8x16xf32>
    %345 = arith.divf %343, %344 : vector<8x16xf32>
    %346 = vector.extract_strided_slice %301 {offsets = [0, 32], sizes = [8, 16], strides = [1, 1]} : vector<8x48xf32> to vector<8x16xf32>
    %347 = vector.extract_strided_slice %293 {offsets = [0, 80], sizes = [8, 16], strides = [1, 1]} : vector<8x96xf32> to vector<8x16xf32>
    %348 = vector.broadcast %8 : vector<1x16xf32> to vector<8x16xf32>
    %349 = arith.addf %347, %348 : vector<8x16xf32>
    %350 = arith.mulf %337, %349 : vector<8x16xf32>
    %351 = arith.addf %346, %350 : vector<8x16xf32>
    %352 = math.tanh %351 : vector<8x16xf32>
    %353 = arith.subf %303, %352 : vector<8x16xf32>
    %354 = arith.mulf %345, %353 : vector<8x16xf32>
    %355 = arith.addf %352, %354 : vector<8x16xf32>
    %356 = vector.broadcast %c3_i32 : i32 to vector<8x1xi32>
    %357 = arith.cmpi slt, %356, %1 : vector<8x1xi32>
    %358 = vector.broadcast %292 : i32 to vector<8x1xi32>
    %359 = arith.cmpi slt, %358, %1 : vector<8x1xi32>
    %cst_79 = arith.constant 0.000000e+00 : f32
    %360 = vector.shape_cast %357 : vector<8x1xi1> to vector<8x1xi1>
    %361 = vector.broadcast %360 : vector<8x1xi1> to vector<8x16xi1>
    %362 = vector.broadcast %cst_79 : f32 to vector<8x16xf32>
    %363 = arith.select %361, %329, %362 : vector<8x16xi1>, vector<8x16xf32>
    %364 = arith.index_cast %c3_i32 : i32 to index
    %c0_80 = arith.constant 0 : index
    %c0_81 = arith.constant 0 : index
    %365 = vector.load %arg17[%364, %c0_80, %c0_81] : memref<8x8x32xf32, #tpu.memory_space<vmem>>, vector<1x8x16xf32>
    %366 = vector.shape_cast %365 : vector<1x8x16xf32> to vector<8x16xf32>
    %367 = vector.shape_cast %363 : vector<8x16xf32> to vector<1x8x16xf32>
    tpu.vector_store %arg17[%364, %c0_80, %c0_81], %367 {strides = array<i32>} : memref<8x8x32xf32, #tpu.memory_space<vmem>>, vector<1x8x16xf32>,
    %cst_82 = arith.constant 0.000000e+00 : f32
    %368 = vector.shape_cast %359 : vector<8x1xi1> to vector<8x1xi1>
    %369 = vector.broadcast %368 : vector<8x1xi1> to vector<8x16xi1>
    %370 = vector.broadcast %cst_82 : f32 to vector<8x16xf32>
    %371 = arith.select %369, %355, %370 : vector<8x16xi1>, vector<8x16xf32>
    %372 = arith.index_cast %292 : i32 to index
    %c0_83 = arith.constant 0 : index
    %c16_84 = arith.constant 16 : index
    %373 = vector.load %arg17[%372, %c0_83, %c16_84] : memref<8x8x32xf32, #tpu.memory_space<vmem>>, vector<1x8x16xf32>
    %374 = vector.shape_cast %373 : vector<1x8x16xf32> to vector<8x16xf32>
    %375 = vector.shape_cast %371 : vector<8x16xf32> to vector<1x8x16xf32>
    tpu.vector_store %arg17[%372, %c0_83, %c16_84], %375 {strides = array<i32>} : memref<8x8x32xf32, #tpu.memory_space<vmem>>, vector<1x8x16xf32>,
    %376 = vector.shape_cast %357 : vector<8x1xi1> to vector<8x1xi1>
    %377 = vector.broadcast %376 : vector<8x1xi1> to vector<8x16xi1>
    %378 = arith.select %377, %329, %302 : vector<8x16xi1>, vector<8x16xf32>
    %379 = vector.shape_cast %359 : vector<8x1xi1> to vector<8x1xi1>
    %380 = vector.broadcast %379 : vector<8x1xi1> to vector<8x16xi1>
    %381 = arith.select %380, %355, %303 : vector<8x16xi1>, vector<8x16xf32>
    %382 = tpu.concatenate %378, %381 in 1 : vector<8x16xf32>, vector<8x16xf32> -> vector<8x32xf32>
    %c4_i32 = arith.constant 4 : i32
    %c7_i32_85 = arith.constant 7 : i32
    %383 = arith.subi %c7_i32_85, %c4_i32 : i32
    %cst_86 = arith.constant dense<0.000000e+00> : vector<8x96xf32>
    %384 = tpu.matmul %382, %6, %cst_86 {dimension_numbers = #tpu.dot_dimension_numbers<[1], [0], [0], [1], [0, 0, 1, 1], [], []>} : vector<8x32xf32>, vector<32x96xf32>, vector<8x96xf32> -> vector<8x96xf32>
    %c8_i32_87 = arith.constant 8 : i32
    %385 = arith.muli %c4_i32, %c8_i32_87 : i32
    %386 = tpu.assume_multiple %385, 8 : i32
    %387 = arith.index_cast %386 : i32 to index
    %c0_88 = arith.constant 0 : index
    %388 = vector.load %arg15[%387, %c0_88] : memref<64x48xf32, #tpu.memory_space<vmem>>, vector<8x48xf32>
    %c8_i32_89 = arith.constant 8 : i32
    %389 = arith.muli %383, %c8_i32_89 : i32
    %390 = tpu.assume_multiple %389, 8 : i32
    %391 = arith.index_cast %390 : i32 to index
    %c0_90 = arith.constant 0 : index
    %392 = vector.load %arg16[%391, %c0_90] : memref<64x48xf32, #tpu.memory_space<vmem>>, vector<8x48xf32>
    %393 = vector.extract_strided_slice %382 {offsets = [0, 0], sizes = [8, 16], strides = [1, 1]} : vector<8x32xf32> to vector<8x16xf32>
    %394 = vector.extract_strided_slice %382 {offsets = [0, 16], sizes = [8, 16], strides = [1, 1]} : vector<8x32xf32> to vector<8x16xf32>
    %395 = vector.extract_strided_slice %388 {offsets = [0, 0], sizes = [8, 16], strides = [1, 1]} : vector<8x48xf32> to vector<8x16xf32>
    %396 = vector.extract_strided_slice %384 {offsets = [0, 0], sizes = [8, 16], strides = [1, 1]} : vector<8x96xf32> to vector<8x16xf32>
    %397 = arith.addf %395, %396 : vector<8x16xf32>
    %398 = arith.negf %397 : vector<8x16xf32>
    %399 = math.exp %398 : vector<8x16xf32>
    %cst_91 = arith.constant 1.000000e+00 : f32
    %400 = vector.broadcast %cst_91 : f32 to vector<8x16xf32>
    %401 = arith.addf %400, %399 : vector<8x16xf32>
    %402 = arith.divf %400, %401 : vector<8x16xf32>
    %403 = vector.extract_strided_slice %388 {offsets = [0, 16], sizes = [8, 16], strides = [1, 1]} : vector<8x48xf32> to vector<8x16xf32>
    %404 = vector.extract_strided_slice %384 {offsets = [0, 16], sizes = [8, 16], strides = [1, 1]} : vector<8x96xf32> to vector<8x16xf32>
    %405 = arith.addf %403, %404 : vector<8x16xf32>
    %406 = arith.negf %405 : vector<8x16xf32>
    %407 = math.exp %406 : vector<8x16xf32>
    %cst_92 = arith.constant 1.000000e+00 : f32
    %408 = vector.broadcast %cst_92 : f32 to vector<8x16xf32>
    %409 = arith.addf %408, %407 : vector<8x16xf32>
    %410 = arith.divf %408, %409 : vector<8x16xf32>
    %411 = vector.extract_strided_slice %388 {offsets = [0, 32], sizes = [8, 16], strides = [1, 1]} : vector<8x48xf32> to vector<8x16xf32>
    %412 = vector.extract_strided_slice %384 {offsets = [0, 32], sizes = [8, 16], strides = [1, 1]} : vector<8x96xf32> to vector<8x16xf32>
    %413 = vector.broadcast %7 : vector<1x16xf32> to vector<8x16xf32>
    %414 = arith.addf %412, %413 : vector<8x16xf32>
    %415 = arith.mulf %402, %414 : vector<8x16xf32>
    %416 = arith.addf %411, %415 : vector<8x16xf32>
    %417 = math.tanh %416 : vector<8x16xf32>
    %418 = arith.subf %393, %417 : vector<8x16xf32>
    %419 = arith.mulf %410, %418 : vector<8x16xf32>
    %420 = arith.addf %417, %419 : vector<8x16xf32>
    %421 = vector.extract_strided_slice %392 {offsets = [0, 0], sizes = [8, 16], strides = [1, 1]} : vector<8x48xf32> to vector<8x16xf32>
    %422 = vector.extract_strided_slice %384 {offsets = [0, 48], sizes = [8, 16], strides = [1, 1]} : vector<8x96xf32> to vector<8x16xf32>
    %423 = arith.addf %421, %422 : vector<8x16xf32>
    %424 = arith.negf %423 : vector<8x16xf32>
    %425 = math.exp %424 : vector<8x16xf32>
    %cst_93 = arith.constant 1.000000e+00 : f32
    %426 = vector.broadcast %cst_93 : f32 to vector<8x16xf32>
    %427 = arith.addf %426, %425 : vector<8x16xf32>
    %428 = arith.divf %426, %427 : vector<8x16xf32>
    %429 = vector.extract_strided_slice %392 {offsets = [0, 16], sizes = [8, 16], strides = [1, 1]} : vector<8x48xf32> to vector<8x16xf32>
    %430 = vector.extract_strided_slice %384 {offsets = [0, 64], sizes = [8, 16], strides = [1, 1]} : vector<8x96xf32> to vector<8x16xf32>
    %431 = arith.addf %429, %430 : vector<8x16xf32>
    %432 = arith.negf %431 : vector<8x16xf32>
    %433 = math.exp %432 : vector<8x16xf32>
    %cst_94 = arith.constant 1.000000e+00 : f32
    %434 = vector.broadcast %cst_94 : f32 to vector<8x16xf32>
    %435 = arith.addf %434, %433 : vector<8x16xf32>
    %436 = arith.divf %434, %435 : vector<8x16xf32>
    %437 = vector.extract_strided_slice %392 {offsets = [0, 32], sizes = [8, 16], strides = [1, 1]} : vector<8x48xf32> to vector<8x16xf32>
    %438 = vector.extract_strided_slice %384 {offsets = [0, 80], sizes = [8, 16], strides = [1, 1]} : vector<8x96xf32> to vector<8x16xf32>
    %439 = vector.broadcast %8 : vector<1x16xf32> to vector<8x16xf32>
    %440 = arith.addf %438, %439 : vector<8x16xf32>
    %441 = arith.mulf %428, %440 : vector<8x16xf32>
    %442 = arith.addf %437, %441 : vector<8x16xf32>
    %443 = math.tanh %442 : vector<8x16xf32>
    %444 = arith.subf %394, %443 : vector<8x16xf32>
    %445 = arith.mulf %436, %444 : vector<8x16xf32>
    %446 = arith.addf %443, %445 : vector<8x16xf32>
    %447 = vector.broadcast %c4_i32 : i32 to vector<8x1xi32>
    %448 = arith.cmpi slt, %447, %1 : vector<8x1xi32>
    %449 = vector.broadcast %383 : i32 to vector<8x1xi32>
    %450 = arith.cmpi slt, %449, %1 : vector<8x1xi32>
    %cst_95 = arith.constant 0.000000e+00 : f32
    %451 = vector.shape_cast %448 : vector<8x1xi1> to vector<8x1xi1>
    %452 = vector.broadcast %451 : vector<8x1xi1> to vector<8x16xi1>
    %453 = vector.broadcast %cst_95 : f32 to vector<8x16xf32>
    %454 = arith.select %452, %420, %453 : vector<8x16xi1>, vector<8x16xf32>
    %455 = arith.index_cast %c4_i32 : i32 to index
    %c0_96 = arith.constant 0 : index
    %c0_97 = arith.constant 0 : index
    %456 = vector.load %arg17[%455, %c0_96, %c0_97] : memref<8x8x32xf32, #tpu.memory_space<vmem>>, vector<1x8x16xf32>
    %457 = vector.shape_cast %456 : vector<1x8x16xf32> to vector<8x16xf32>
    %458 = vector.shape_cast %454 : vector<8x16xf32> to vector<1x8x16xf32>
    tpu.vector_store %arg17[%455, %c0_96, %c0_97], %458 {strides = array<i32>} : memref<8x8x32xf32, #tpu.memory_space<vmem>>, vector<1x8x16xf32>,
    %cst_98 = arith.constant 0.000000e+00 : f32
    %459 = vector.shape_cast %450 : vector<8x1xi1> to vector<8x1xi1>
    %460 = vector.broadcast %459 : vector<8x1xi1> to vector<8x16xi1>
    %461 = vector.broadcast %cst_98 : f32 to vector<8x16xf32>
    %462 = arith.select %460, %446, %461 : vector<8x16xi1>, vector<8x16xf32>
    %463 = arith.index_cast %383 : i32 to index
    %c0_99 = arith.constant 0 : index
    %c16_100 = arith.constant 16 : index
    %464 = vector.load %arg17[%463, %c0_99, %c16_100] : memref<8x8x32xf32, #tpu.memory_space<vmem>>, vector<1x8x16xf32>
    %465 = vector.shape_cast %464 : vector<1x8x16xf32> to vector<8x16xf32>
    %466 = vector.shape_cast %462 : vector<8x16xf32> to vector<1x8x16xf32>
    tpu.vector_store %arg17[%463, %c0_99, %c16_100], %466 {strides = array<i32>} : memref<8x8x32xf32, #tpu.memory_space<vmem>>, vector<1x8x16xf32>,
    %467 = vector.shape_cast %448 : vector<8x1xi1> to vector<8x1xi1>
    %468 = vector.broadcast %467 : vector<8x1xi1> to vector<8x16xi1>
    %469 = arith.select %468, %420, %393 : vector<8x16xi1>, vector<8x16xf32>
    %470 = vector.shape_cast %450 : vector<8x1xi1> to vector<8x1xi1>
    %471 = vector.broadcast %470 : vector<8x1xi1> to vector<8x16xi1>
    %472 = arith.select %471, %446, %394 : vector<8x16xi1>, vector<8x16xf32>
    %473 = tpu.concatenate %469, %472 in 1 : vector<8x16xf32>, vector<8x16xf32> -> vector<8x32xf32>
    %c5_i32 = arith.constant 5 : i32
    %c7_i32_101 = arith.constant 7 : i32
    %474 = arith.subi %c7_i32_101, %c5_i32 : i32
    %cst_102 = arith.constant dense<0.000000e+00> : vector<8x96xf32>
    %475 = tpu.matmul %473, %6, %cst_102 {dimension_numbers = #tpu.dot_dimension_numbers<[1], [0], [0], [1], [0, 0, 1, 1], [], []>} : vector<8x32xf32>, vector<32x96xf32>, vector<8x96xf32> -> vector<8x96xf32>
    %c8_i32_103 = arith.constant 8 : i32
    %476 = arith.muli %c5_i32, %c8_i32_103 : i32
    %477 = tpu.assume_multiple %476, 8 : i32
    %478 = arith.index_cast %477 : i32 to index
    %c0_104 = arith.constant 0 : index
    %479 = vector.load %arg15[%478, %c0_104] : memref<64x48xf32, #tpu.memory_space<vmem>>, vector<8x48xf32>
    %c8_i32_105 = arith.constant 8 : i32
    %480 = arith.muli %474, %c8_i32_105 : i32
    %481 = tpu.assume_multiple %480, 8 : i32
    %482 = arith.index_cast %481 : i32 to index
    %c0_106 = arith.constant 0 : index
    %483 = vector.load %arg16[%482, %c0_106] : memref<64x48xf32, #tpu.memory_space<vmem>>, vector<8x48xf32>
    %484 = vector.extract_strided_slice %473 {offsets = [0, 0], sizes = [8, 16], strides = [1, 1]} : vector<8x32xf32> to vector<8x16xf32>
    %485 = vector.extract_strided_slice %473 {offsets = [0, 16], sizes = [8, 16], strides = [1, 1]} : vector<8x32xf32> to vector<8x16xf32>
    %486 = vector.extract_strided_slice %479 {offsets = [0, 0], sizes = [8, 16], strides = [1, 1]} : vector<8x48xf32> to vector<8x16xf32>
    %487 = vector.extract_strided_slice %475 {offsets = [0, 0], sizes = [8, 16], strides = [1, 1]} : vector<8x96xf32> to vector<8x16xf32>
    %488 = arith.addf %486, %487 : vector<8x16xf32>
    %489 = arith.negf %488 : vector<8x16xf32>
    %490 = math.exp %489 : vector<8x16xf32>
    %cst_107 = arith.constant 1.000000e+00 : f32
    %491 = vector.broadcast %cst_107 : f32 to vector<8x16xf32>
    %492 = arith.addf %491, %490 : vector<8x16xf32>
    %493 = arith.divf %491, %492 : vector<8x16xf32>
    %494 = vector.extract_strided_slice %479 {offsets = [0, 16], sizes = [8, 16], strides = [1, 1]} : vector<8x48xf32> to vector<8x16xf32>
    %495 = vector.extract_strided_slice %475 {offsets = [0, 16], sizes = [8, 16], strides = [1, 1]} : vector<8x96xf32> to vector<8x16xf32>
    %496 = arith.addf %494, %495 : vector<8x16xf32>
    %497 = arith.negf %496 : vector<8x16xf32>
    %498 = math.exp %497 : vector<8x16xf32>
    %cst_108 = arith.constant 1.000000e+00 : f32
    %499 = vector.broadcast %cst_108 : f32 to vector<8x16xf32>
    %500 = arith.addf %499, %498 : vector<8x16xf32>
    %501 = arith.divf %499, %500 : vector<8x16xf32>
    %502 = vector.extract_strided_slice %479 {offsets = [0, 32], sizes = [8, 16], strides = [1, 1]} : vector<8x48xf32> to vector<8x16xf32>
    %503 = vector.extract_strided_slice %475 {offsets = [0, 32], sizes = [8, 16], strides = [1, 1]} : vector<8x96xf32> to vector<8x16xf32>
    %504 = vector.broadcast %7 : vector<1x16xf32> to vector<8x16xf32>
    %505 = arith.addf %503, %504 : vector<8x16xf32>
    %506 = arith.mulf %493, %505 : vector<8x16xf32>
    %507 = arith.addf %502, %506 : vector<8x16xf32>
    %508 = math.tanh %507 : vector<8x16xf32>
    %509 = arith.subf %484, %508 : vector<8x16xf32>
    %510 = arith.mulf %501, %509 : vector<8x16xf32>
    %511 = arith.addf %508, %510 : vector<8x16xf32>
    %512 = vector.extract_strided_slice %483 {offsets = [0, 0], sizes = [8, 16], strides = [1, 1]} : vector<8x48xf32> to vector<8x16xf32>
    %513 = vector.extract_strided_slice %475 {offsets = [0, 48], sizes = [8, 16], strides = [1, 1]} : vector<8x96xf32> to vector<8x16xf32>
    %514 = arith.addf %512, %513 : vector<8x16xf32>
    %515 = arith.negf %514 : vector<8x16xf32>
    %516 = math.exp %515 : vector<8x16xf32>
    %cst_109 = arith.constant 1.000000e+00 : f32
    %517 = vector.broadcast %cst_109 : f32 to vector<8x16xf32>
    %518 = arith.addf %517, %516 : vector<8x16xf32>
    %519 = arith.divf %517, %518 : vector<8x16xf32>
    %520 = vector.extract_strided_slice %483 {offsets = [0, 16], sizes = [8, 16], strides = [1, 1]} : vector<8x48xf32> to vector<8x16xf32>
    %521 = vector.extract_strided_slice %475 {offsets = [0, 64], sizes = [8, 16], strides = [1, 1]} : vector<8x96xf32> to vector<8x16xf32>
    %522 = arith.addf %520, %521 : vector<8x16xf32>
    %523 = arith.negf %522 : vector<8x16xf32>
    %524 = math.exp %523 : vector<8x16xf32>
    %cst_110 = arith.constant 1.000000e+00 : f32
    %525 = vector.broadcast %cst_110 : f32 to vector<8x16xf32>
    %526 = arith.addf %525, %524 : vector<8x16xf32>
    %527 = arith.divf %525, %526 : vector<8x16xf32>
    %528 = vector.extract_strided_slice %483 {offsets = [0, 32], sizes = [8, 16], strides = [1, 1]} : vector<8x48xf32> to vector<8x16xf32>
    %529 = vector.extract_strided_slice %475 {offsets = [0, 80], sizes = [8, 16], strides = [1, 1]} : vector<8x96xf32> to vector<8x16xf32>
    %530 = vector.broadcast %8 : vector<1x16xf32> to vector<8x16xf32>
    %531 = arith.addf %529, %530 : vector<8x16xf32>
    %532 = arith.mulf %519, %531 : vector<8x16xf32>
    %533 = arith.addf %528, %532 : vector<8x16xf32>
    %534 = math.tanh %533 : vector<8x16xf32>
    %535 = arith.subf %485, %534 : vector<8x16xf32>
    %536 = arith.mulf %527, %535 : vector<8x16xf32>
    %537 = arith.addf %534, %536 : vector<8x16xf32>
    %538 = vector.broadcast %c5_i32 : i32 to vector<8x1xi32>
    %539 = arith.cmpi slt, %538, %1 : vector<8x1xi32>
    %540 = vector.broadcast %474 : i32 to vector<8x1xi32>
    %541 = arith.cmpi slt, %540, %1 : vector<8x1xi32>
    %cst_111 = arith.constant 0.000000e+00 : f32
    %542 = vector.shape_cast %539 : vector<8x1xi1> to vector<8x1xi1>
    %543 = vector.broadcast %542 : vector<8x1xi1> to vector<8x16xi1>
    %544 = vector.broadcast %cst_111 : f32 to vector<8x16xf32>
    %545 = arith.select %543, %511, %544 : vector<8x16xi1>, vector<8x16xf32>
    %546 = arith.index_cast %c5_i32 : i32 to index
    %c0_112 = arith.constant 0 : index
    %c0_113 = arith.constant 0 : index
    %547 = vector.load %arg17[%546, %c0_112, %c0_113] : memref<8x8x32xf32, #tpu.memory_space<vmem>>, vector<1x8x16xf32>
    %548 = vector.shape_cast %547 : vector<1x8x16xf32> to vector<8x16xf32>
    %549 = vector.shape_cast %545 : vector<8x16xf32> to vector<1x8x16xf32>
    tpu.vector_store %arg17[%546, %c0_112, %c0_113], %549 {strides = array<i32>} : memref<8x8x32xf32, #tpu.memory_space<vmem>>, vector<1x8x16xf32>,
    %cst_114 = arith.constant 0.000000e+00 : f32
    %550 = vector.shape_cast %541 : vector<8x1xi1> to vector<8x1xi1>
    %551 = vector.broadcast %550 : vector<8x1xi1> to vector<8x16xi1>
    %552 = vector.broadcast %cst_114 : f32 to vector<8x16xf32>
    %553 = arith.select %551, %537, %552 : vector<8x16xi1>, vector<8x16xf32>
    %554 = arith.index_cast %474 : i32 to index
    %c0_115 = arith.constant 0 : index
    %c16_116 = arith.constant 16 : index
    %555 = vector.load %arg17[%554, %c0_115, %c16_116] : memref<8x8x32xf32, #tpu.memory_space<vmem>>, vector<1x8x16xf32>
    %556 = vector.shape_cast %555 : vector<1x8x16xf32> to vector<8x16xf32>
    %557 = vector.shape_cast %553 : vector<8x16xf32> to vector<1x8x16xf32>
    tpu.vector_store %arg17[%554, %c0_115, %c16_116], %557 {strides = array<i32>} : memref<8x8x32xf32, #tpu.memory_space<vmem>>, vector<1x8x16xf32>,
    %558 = vector.shape_cast %539 : vector<8x1xi1> to vector<8x1xi1>
    %559 = vector.broadcast %558 : vector<8x1xi1> to vector<8x16xi1>
    %560 = arith.select %559, %511, %484 : vector<8x16xi1>, vector<8x16xf32>
    %561 = vector.shape_cast %541 : vector<8x1xi1> to vector<8x1xi1>
    %562 = vector.broadcast %561 : vector<8x1xi1> to vector<8x16xi1>
    %563 = arith.select %562, %537, %485 : vector<8x16xi1>, vector<8x16xf32>
    %564 = tpu.concatenate %560, %563 in 1 : vector<8x16xf32>, vector<8x16xf32> -> vector<8x32xf32>
    %c6_i32 = arith.constant 6 : i32
    %c7_i32_117 = arith.constant 7 : i32
    %565 = arith.subi %c7_i32_117, %c6_i32 : i32
    %cst_118 = arith.constant dense<0.000000e+00> : vector<8x96xf32>
    %566 = tpu.matmul %564, %6, %cst_118 {dimension_numbers = #tpu.dot_dimension_numbers<[1], [0], [0], [1], [0, 0, 1, 1], [], []>} : vector<8x32xf32>, vector<32x96xf32>, vector<8x96xf32> -> vector<8x96xf32>
    %c8_i32_119 = arith.constant 8 : i32
    %567 = arith.muli %c6_i32, %c8_i32_119 : i32
    %568 = tpu.assume_multiple %567, 8 : i32
    %569 = arith.index_cast %568 : i32 to index
    %c0_120 = arith.constant 0 : index
    %570 = vector.load %arg15[%569, %c0_120] : memref<64x48xf32, #tpu.memory_space<vmem>>, vector<8x48xf32>
    %c8_i32_121 = arith.constant 8 : i32
    %571 = arith.muli %565, %c8_i32_121 : i32
    %572 = tpu.assume_multiple %571, 8 : i32
    %573 = arith.index_cast %572 : i32 to index
    %c0_122 = arith.constant 0 : index
    %574 = vector.load %arg16[%573, %c0_122] : memref<64x48xf32, #tpu.memory_space<vmem>>, vector<8x48xf32>
    %575 = vector.extract_strided_slice %564 {offsets = [0, 0], sizes = [8, 16], strides = [1, 1]} : vector<8x32xf32> to vector<8x16xf32>
    %576 = vector.extract_strided_slice %564 {offsets = [0, 16], sizes = [8, 16], strides = [1, 1]} : vector<8x32xf32> to vector<8x16xf32>
    %577 = vector.extract_strided_slice %570 {offsets = [0, 0], sizes = [8, 16], strides = [1, 1]} : vector<8x48xf32> to vector<8x16xf32>
    %578 = vector.extract_strided_slice %566 {offsets = [0, 0], sizes = [8, 16], strides = [1, 1]} : vector<8x96xf32> to vector<8x16xf32>
    %579 = arith.addf %577, %578 : vector<8x16xf32>
    %580 = arith.negf %579 : vector<8x16xf32>
    %581 = math.exp %580 : vector<8x16xf32>
    %cst_123 = arith.constant 1.000000e+00 : f32
    %582 = vector.broadcast %cst_123 : f32 to vector<8x16xf32>
    %583 = arith.addf %582, %581 : vector<8x16xf32>
    %584 = arith.divf %582, %583 : vector<8x16xf32>
    %585 = vector.extract_strided_slice %570 {offsets = [0, 16], sizes = [8, 16], strides = [1, 1]} : vector<8x48xf32> to vector<8x16xf32>
    %586 = vector.extract_strided_slice %566 {offsets = [0, 16], sizes = [8, 16], strides = [1, 1]} : vector<8x96xf32> to vector<8x16xf32>
    %587 = arith.addf %585, %586 : vector<8x16xf32>
    %588 = arith.negf %587 : vector<8x16xf32>
    %589 = math.exp %588 : vector<8x16xf32>
    %cst_124 = arith.constant 1.000000e+00 : f32
    %590 = vector.broadcast %cst_124 : f32 to vector<8x16xf32>
    %591 = arith.addf %590, %589 : vector<8x16xf32>
    %592 = arith.divf %590, %591 : vector<8x16xf32>
    %593 = vector.extract_strided_slice %570 {offsets = [0, 32], sizes = [8, 16], strides = [1, 1]} : vector<8x48xf32> to vector<8x16xf32>
    %594 = vector.extract_strided_slice %566 {offsets = [0, 32], sizes = [8, 16], strides = [1, 1]} : vector<8x96xf32> to vector<8x16xf32>
    %595 = vector.broadcast %7 : vector<1x16xf32> to vector<8x16xf32>
    %596 = arith.addf %594, %595 : vector<8x16xf32>
    %597 = arith.mulf %584, %596 : vector<8x16xf32>
    %598 = arith.addf %593, %597 : vector<8x16xf32>
    %599 = math.tanh %598 : vector<8x16xf32>
    %600 = arith.subf %575, %599 : vector<8x16xf32>
    %601 = arith.mulf %592, %600 : vector<8x16xf32>
    %602 = arith.addf %599, %601 : vector<8x16xf32>
    %603 = vector.extract_strided_slice %574 {offsets = [0, 0], sizes = [8, 16], strides = [1, 1]} : vector<8x48xf32> to vector<8x16xf32>
    %604 = vector.extract_strided_slice %566 {offsets = [0, 48], sizes = [8, 16], strides = [1, 1]} : vector<8x96xf32> to vector<8x16xf32>
    %605 = arith.addf %603, %604 : vector<8x16xf32>
    %606 = arith.negf %605 : vector<8x16xf32>
    %607 = math.exp %606 : vector<8x16xf32>
    %cst_125 = arith.constant 1.000000e+00 : f32
    %608 = vector.broadcast %cst_125 : f32 to vector<8x16xf32>
    %609 = arith.addf %608, %607 : vector<8x16xf32>
    %610 = arith.divf %608, %609 : vector<8x16xf32>
    %611 = vector.extract_strided_slice %574 {offsets = [0, 16], sizes = [8, 16], strides = [1, 1]} : vector<8x48xf32> to vector<8x16xf32>
    %612 = vector.extract_strided_slice %566 {offsets = [0, 64], sizes = [8, 16], strides = [1, 1]} : vector<8x96xf32> to vector<8x16xf32>
    %613 = arith.addf %611, %612 : vector<8x16xf32>
    %614 = arith.negf %613 : vector<8x16xf32>
    %615 = math.exp %614 : vector<8x16xf32>
    %cst_126 = arith.constant 1.000000e+00 : f32
    %616 = vector.broadcast %cst_126 : f32 to vector<8x16xf32>
    %617 = arith.addf %616, %615 : vector<8x16xf32>
    %618 = arith.divf %616, %617 : vector<8x16xf32>
    %619 = vector.extract_strided_slice %574 {offsets = [0, 32], sizes = [8, 16], strides = [1, 1]} : vector<8x48xf32> to vector<8x16xf32>
    %620 = vector.extract_strided_slice %566 {offsets = [0, 80], sizes = [8, 16], strides = [1, 1]} : vector<8x96xf32> to vector<8x16xf32>
    %621 = vector.broadcast %8 : vector<1x16xf32> to vector<8x16xf32>
    %622 = arith.addf %620, %621 : vector<8x16xf32>
    %623 = arith.mulf %610, %622 : vector<8x16xf32>
    %624 = arith.addf %619, %623 : vector<8x16xf32>
    %625 = math.tanh %624 : vector<8x16xf32>
    %626 = arith.subf %576, %625 : vector<8x16xf32>
    %627 = arith.mulf %618, %626 : vector<8x16xf32>
    %628 = arith.addf %625, %627 : vector<8x16xf32>
    %629 = vector.broadcast %c6_i32 : i32 to vector<8x1xi32>
    %630 = arith.cmpi slt, %629, %1 : vector<8x1xi32>
    %631 = vector.broadcast %565 : i32 to vector<8x1xi32>
    %632 = arith.cmpi slt, %631, %1 : vector<8x1xi32>
    %cst_127 = arith.constant 0.000000e+00 : f32
    %633 = vector.shape_cast %630 : vector<8x1xi1> to vector<8x1xi1>
    %634 = vector.broadcast %633 : vector<8x1xi1> to vector<8x16xi1>
    %635 = vector.broadcast %cst_127 : f32 to vector<8x16xf32>
    %636 = arith.select %634, %602, %635 : vector<8x16xi1>, vector<8x16xf32>
    %637 = arith.index_cast %c6_i32 : i32 to index
    %c0_128 = arith.constant 0 : index
    %c0_129 = arith.constant 0 : index
    %638 = vector.load %arg17[%637, %c0_128, %c0_129] : memref<8x8x32xf32, #tpu.memory_space<vmem>>, vector<1x8x16xf32>
    %639 = vector.shape_cast %638 : vector<1x8x16xf32> to vector<8x16xf32>
    %640 = vector.shape_cast %636 : vector<8x16xf32> to vector<1x8x16xf32>
    tpu.vector_store %arg17[%637, %c0_128, %c0_129], %640 {strides = array<i32>} : memref<8x8x32xf32, #tpu.memory_space<vmem>>, vector<1x8x16xf32>,
    %cst_130 = arith.constant 0.000000e+00 : f32
    %641 = vector.shape_cast %632 : vector<8x1xi1> to vector<8x1xi1>
    %642 = vector.broadcast %641 : vector<8x1xi1> to vector<8x16xi1>
    %643 = vector.broadcast %cst_130 : f32 to vector<8x16xf32>
    %644 = arith.select %642, %628, %643 : vector<8x16xi1>, vector<8x16xf32>
    %645 = arith.index_cast %565 : i32 to index
    %c0_131 = arith.constant 0 : index
    %c16_132 = arith.constant 16 : index
    %646 = vector.load %arg17[%645, %c0_131, %c16_132] : memref<8x8x32xf32, #tpu.memory_space<vmem>>, vector<1x8x16xf32>
    %647 = vector.shape_cast %646 : vector<1x8x16xf32> to vector<8x16xf32>
    %648 = vector.shape_cast %644 : vector<8x16xf32> to vector<1x8x16xf32>
    tpu.vector_store %arg17[%645, %c0_131, %c16_132], %648 {strides = array<i32>} : memref<8x8x32xf32, #tpu.memory_space<vmem>>, vector<1x8x16xf32>,
    %649 = vector.shape_cast %630 : vector<8x1xi1> to vector<8x1xi1>
    %650 = vector.broadcast %649 : vector<8x1xi1> to vector<8x16xi1>
    %651 = arith.select %650, %602, %575 : vector<8x16xi1>, vector<8x16xf32>
    %652 = vector.shape_cast %632 : vector<8x1xi1> to vector<8x1xi1>
    %653 = vector.broadcast %652 : vector<8x1xi1> to vector<8x16xi1>
    %654 = arith.select %653, %628, %576 : vector<8x16xi1>, vector<8x16xf32>
    %655 = tpu.concatenate %651, %654 in 1 : vector<8x16xf32>, vector<8x16xf32> -> vector<8x32xf32>
    %c7_i32_133 = arith.constant 7 : i32
    %c7_i32_134 = arith.constant 7 : i32
    %656 = arith.subi %c7_i32_134, %c7_i32_133 : i32
    %cst_135 = arith.constant dense<0.000000e+00> : vector<8x96xf32>
    %657 = tpu.matmul %655, %6, %cst_135 {dimension_numbers = #tpu.dot_dimension_numbers<[1], [0], [0], [1], [0, 0, 1, 1], [], []>} : vector<8x32xf32>, vector<32x96xf32>, vector<8x96xf32> -> vector<8x96xf32>
    %c8_i32_136 = arith.constant 8 : i32
    %658 = arith.muli %c7_i32_133, %c8_i32_136 : i32
    %659 = tpu.assume_multiple %658, 8 : i32
    %660 = arith.index_cast %659 : i32 to index
    %c0_137 = arith.constant 0 : index
    %661 = vector.load %arg15[%660, %c0_137] : memref<64x48xf32, #tpu.memory_space<vmem>>, vector<8x48xf32>
    %c8_i32_138 = arith.constant 8 : i32
    %662 = arith.muli %656, %c8_i32_138 : i32
    %663 = tpu.assume_multiple %662, 8 : i32
    %664 = arith.index_cast %663 : i32 to index
    %c0_139 = arith.constant 0 : index
    %665 = vector.load %arg16[%664, %c0_139] : memref<64x48xf32, #tpu.memory_space<vmem>>, vector<8x48xf32>
    %666 = vector.extract_strided_slice %655 {offsets = [0, 0], sizes = [8, 16], strides = [1, 1]} : vector<8x32xf32> to vector<8x16xf32>
    %667 = vector.extract_strided_slice %655 {offsets = [0, 16], sizes = [8, 16], strides = [1, 1]} : vector<8x32xf32> to vector<8x16xf32>
    %668 = vector.extract_strided_slice %661 {offsets = [0, 0], sizes = [8, 16], strides = [1, 1]} : vector<8x48xf32> to vector<8x16xf32>
    %669 = vector.extract_strided_slice %657 {offsets = [0, 0], sizes = [8, 16], strides = [1, 1]} : vector<8x96xf32> to vector<8x16xf32>
    %670 = arith.addf %668, %669 : vector<8x16xf32>
    %671 = arith.negf %670 : vector<8x16xf32>
    %672 = math.exp %671 : vector<8x16xf32>
    %cst_140 = arith.constant 1.000000e+00 : f32
    %673 = vector.broadcast %cst_140 : f32 to vector<8x16xf32>
    %674 = arith.addf %673, %672 : vector<8x16xf32>
    %675 = arith.divf %673, %674 : vector<8x16xf32>
    %676 = vector.extract_strided_slice %661 {offsets = [0, 16], sizes = [8, 16], strides = [1, 1]} : vector<8x48xf32> to vector<8x16xf32>
    %677 = vector.extract_strided_slice %657 {offsets = [0, 16], sizes = [8, 16], strides = [1, 1]} : vector<8x96xf32> to vector<8x16xf32>
    %678 = arith.addf %676, %677 : vector<8x16xf32>
    %679 = arith.negf %678 : vector<8x16xf32>
    %680 = math.exp %679 : vector<8x16xf32>
    %cst_141 = arith.constant 1.000000e+00 : f32
    %681 = vector.broadcast %cst_141 : f32 to vector<8x16xf32>
    %682 = arith.addf %681, %680 : vector<8x16xf32>
    %683 = arith.divf %681, %682 : vector<8x16xf32>
    %684 = vector.extract_strided_slice %661 {offsets = [0, 32], sizes = [8, 16], strides = [1, 1]} : vector<8x48xf32> to vector<8x16xf32>
    %685 = vector.extract_strided_slice %657 {offsets = [0, 32], sizes = [8, 16], strides = [1, 1]} : vector<8x96xf32> to vector<8x16xf32>
    %686 = vector.broadcast %7 : vector<1x16xf32> to vector<8x16xf32>
    %687 = arith.addf %685, %686 : vector<8x16xf32>
    %688 = arith.mulf %675, %687 : vector<8x16xf32>
    %689 = arith.addf %684, %688 : vector<8x16xf32>
    %690 = math.tanh %689 : vector<8x16xf32>
    %691 = arith.subf %666, %690 : vector<8x16xf32>
    %692 = arith.mulf %683, %691 : vector<8x16xf32>
    %693 = arith.addf %690, %692 : vector<8x16xf32>
    %694 = vector.extract_strided_slice %665 {offsets = [0, 0], sizes = [8, 16], strides = [1, 1]} : vector<8x48xf32> to vector<8x16xf32>
    %695 = vector.extract_strided_slice %657 {offsets = [0, 48], sizes = [8, 16], strides = [1, 1]} : vector<8x96xf32> to vector<8x16xf32>
    %696 = arith.addf %694, %695 : vector<8x16xf32>
    %697 = arith.negf %696 : vector<8x16xf32>
    %698 = math.exp %697 : vector<8x16xf32>
    %cst_142 = arith.constant 1.000000e+00 : f32
    %699 = vector.broadcast %cst_142 : f32 to vector<8x16xf32>
    %700 = arith.addf %699, %698 : vector<8x16xf32>
    %701 = arith.divf %699, %700 : vector<8x16xf32>
    %702 = vector.extract_strided_slice %665 {offsets = [0, 16], sizes = [8, 16], strides = [1, 1]} : vector<8x48xf32> to vector<8x16xf32>
    %703 = vector.extract_strided_slice %657 {offsets = [0, 64], sizes = [8, 16], strides = [1, 1]} : vector<8x96xf32> to vector<8x16xf32>
    %704 = arith.addf %702, %703 : vector<8x16xf32>
    %705 = arith.negf %704 : vector<8x16xf32>
    %706 = math.exp %705 : vector<8x16xf32>
    %cst_143 = arith.constant 1.000000e+00 : f32
    %707 = vector.broadcast %cst_143 : f32 to vector<8x16xf32>
    %708 = arith.addf %707, %706 : vector<8x16xf32>
    %709 = arith.divf %707, %708 : vector<8x16xf32>
    %710 = vector.extract_strided_slice %665 {offsets = [0, 32], sizes = [8, 16], strides = [1, 1]} : vector<8x48xf32> to vector<8x16xf32>
    %711 = vector.extract_strided_slice %657 {offsets = [0, 80], sizes = [8, 16], strides = [1, 1]} : vector<8x96xf32> to vector<8x16xf32>
    %712 = vector.broadcast %8 : vector<1x16xf32> to vector<8x16xf32>
    %713 = arith.addf %711, %712 : vector<8x16xf32>
    %714 = arith.mulf %701, %713 : vector<8x16xf32>
    %715 = arith.addf %710, %714 : vector<8x16xf32>
    %716 = math.tanh %715 : vector<8x16xf32>
    %717 = arith.subf %667, %716 : vector<8x16xf32>
    %718 = arith.mulf %709, %717 : vector<8x16xf32>
    %719 = arith.addf %716, %718 : vector<8x16xf32>
    %720 = vector.broadcast %c7_i32_133 : i32 to vector<8x1xi32>
    %721 = arith.cmpi slt, %720, %1 : vector<8x1xi32>
    %722 = vector.broadcast %656 : i32 to vector<8x1xi32>
    %723 = arith.cmpi slt, %722, %1 : vector<8x1xi32>
    %cst_144 = arith.constant 0.000000e+00 : f32
    %724 = vector.shape_cast %721 : vector<8x1xi1> to vector<8x1xi1>
    %725 = vector.broadcast %724 : vector<8x1xi1> to vector<8x16xi1>
    %726 = vector.broadcast %cst_144 : f32 to vector<8x16xf32>
    %727 = arith.select %725, %693, %726 : vector<8x16xi1>, vector<8x16xf32>
    %728 = arith.index_cast %c7_i32_133 : i32 to index
    %c0_145 = arith.constant 0 : index
    %c0_146 = arith.constant 0 : index
    %729 = vector.load %arg17[%728, %c0_145, %c0_146] : memref<8x8x32xf32, #tpu.memory_space<vmem>>, vector<1x8x16xf32>
    %730 = vector.shape_cast %729 : vector<1x8x16xf32> to vector<8x16xf32>
    %731 = vector.shape_cast %727 : vector<8x16xf32> to vector<1x8x16xf32>
    tpu.vector_store %arg17[%728, %c0_145, %c0_146], %731 {strides = array<i32>} : memref<8x8x32xf32, #tpu.memory_space<vmem>>, vector<1x8x16xf32>,
    %cst_147 = arith.constant 0.000000e+00 : f32
    %732 = vector.shape_cast %723 : vector<8x1xi1> to vector<8x1xi1>
    %733 = vector.broadcast %732 : vector<8x1xi1> to vector<8x16xi1>
    %734 = vector.broadcast %cst_147 : f32 to vector<8x16xf32>
    %735 = arith.select %733, %719, %734 : vector<8x16xi1>, vector<8x16xf32>
    %736 = arith.index_cast %656 : i32 to index
    %c0_148 = arith.constant 0 : index
    %c16_149 = arith.constant 16 : index
    %737 = vector.load %arg17[%736, %c0_148, %c16_149] : memref<8x8x32xf32, #tpu.memory_space<vmem>>, vector<1x8x16xf32>
    %738 = vector.shape_cast %737 : vector<1x8x16xf32> to vector<8x16xf32>
    %739 = vector.shape_cast %735 : vector<8x16xf32> to vector<1x8x16xf32>
    tpu.vector_store %arg17[%736, %c0_148, %c16_149], %739 {strides = array<i32>} : memref<8x8x32xf32, #tpu.memory_space<vmem>>, vector<1x8x16xf32>,
    %740 = vector.shape_cast %721 : vector<8x1xi1> to vector<8x1xi1>
    %741 = vector.broadcast %740 : vector<8x1xi1> to vector<8x16xi1>
    %742 = arith.select %741, %693, %666 : vector<8x16xi1>, vector<8x16xf32>
    %743 = vector.shape_cast %723 : vector<8x1xi1> to vector<8x1xi1>
    %744 = vector.broadcast %743 : vector<8x1xi1> to vector<8x16xi1>
    %745 = arith.select %744, %719, %667 : vector<8x16xi1>, vector<8x16xf32>
    %746 = tpu.concatenate %742, %745 in 1 : vector<8x16xf32>, vector<8x16xf32> -> vector<8x32xf32>
    %c8_i32_150 = arith.constant 8 : i32
    %747 = tpu.iota {dimensions = array<i32: 0>} : vector<8x8x1xi32>
    %c0_151 = arith.constant 0 : index
    %c0_152 = arith.constant 0 : index
    %748 = vector.load %arg3[%c0_151, %c0_152] : memref<8x1xi32, #tpu.memory_space<vmem>>, vector<8x1xi32>
    %749 = vector.shape_cast %748 : vector<8x1xi32> to vector<1x8x1xi32>
    %750 = vector.broadcast %749 : vector<1x8x1xi32> to vector<8x8x1xi32>
    %751 = arith.cmpi slt, %747, %750 : vector<8x8x1xi32>
    %c0_153 = arith.constant 0 : index
    %c0_154 = arith.constant 0 : index
    %752 = vector.load %arg11[%c0_153, %c0_154] : memref<32x32xf32, #tpu.memory_space<vmem>>, vector<32x32xf32>
    %c0_155 = arith.constant 0 : index
    %c0_156 = arith.constant 0 : index
    %753 = vector.load %arg12[%c0_155, %c0_156] : memref<1x32xf32, #tpu.memory_space<vmem>>, vector<1x32xf32>
    %c0_157 = arith.constant 0 : index
    %c0_158 = arith.constant 0 : index
    %754 = vector.load %arg13[%c0_157, %c0_158] : memref<32x32xf32, #tpu.memory_space<vmem>>, vector<32x32xf32>
    %c0_159 = arith.constant 0 : index
    %c0_160 = arith.constant 0 : index
    %c0_161 = arith.constant 0 : index
    %755 = vector.load %arg17[%c0_159, %c0_160, %c0_161] : memref<8x8x32xf32, #tpu.memory_space<vmem>>, vector<8x8x32xf32>
    %756 = vector.shape_cast %755 : vector<8x8x32xf32> to vector<64x32xf32>
    %cst_162 = arith.constant dense<0.000000e+00> : vector<64x32xf32>
    %757 = tpu.matmul %756, %752, %cst_162 {dimension_numbers = #tpu.dot_dimension_numbers<[1], [0], [0], [1], [0, 0, 1, 1], [], []>} : vector<64x32xf32>, vector<32x32xf32>, vector<64x32xf32> -> vector<64x32xf32>
    %758 = vector.broadcast %753 : vector<1x32xf32> to vector<64x32xf32>
    %759 = arith.addf %757, %758 : vector<64x32xf32>
    %760 = math.tanh %759 : vector<64x32xf32>
    %cst_163 = arith.constant dense<0.000000e+00> : vector<64x32xf32>
    %761 = tpu.matmul %760, %754, %cst_163 {dimension_numbers = #tpu.dot_dimension_numbers<[1], [0], [0], [1], [0, 0, 1, 1], [], []>} : vector<64x32xf32>, vector<32x32xf32>, vector<64x32xf32> -> vector<64x32xf32>
    %762 = vector.shape_cast %761 : vector<64x32xf32> to vector<8x8x32xf32>
    %cst_164 = arith.constant -1.000000e+30 : f32
    %763 = vector.shape_cast %751 : vector<8x8x1xi1> to vector<8x8x1xi1>
    %764 = vector.broadcast %763 : vector<8x8x1xi1> to vector<8x8x32xi1>
    %765 = vector.broadcast %cst_164 : f32 to vector<8x8x32xf32>
    %766 = arith.select %764, %762, %765 : vector<8x8x32xi1>, vector<8x8x32xf32>
    %cst_165 = arith.constant dense<0xFF800000> : vector<8x32xf32>
    %767 = vector.multi_reduction <maximumf>, %766, %cst_165 [0] : vector<8x8x32xf32> to vector<8x32xf32>
    %768 = vector.shape_cast %767 : vector<8x32xf32> to vector<1x8x32xf32>
    %769 = vector.broadcast %768 : vector<1x8x32xf32> to vector<8x8x32xf32>
    %770 = arith.subf %766, %769 : vector<8x8x32xf32>
    %771 = math.exp %770 : vector<8x8x32xf32>
    %cst_166 = arith.constant dense<0.000000e+00> : vector<8x32xf32>
    %772 = vector.multi_reduction <add>, %771, %cst_166 [0] : vector<8x8x32xf32> to vector<8x32xf32>
    %773 = vector.shape_cast %772 : vector<8x32xf32> to vector<1x8x32xf32>
    %774 = vector.broadcast %773 : vector<1x8x32xf32> to vector<8x8x32xf32>
    %775 = arith.divf %771, %774 : vector<8x8x32xf32>
    %776 = arith.mulf %775, %755 : vector<8x8x32xf32>
    %cst_167 = arith.constant dense<0.000000e+00> : vector<8x32xf32>
    %777 = vector.multi_reduction <add>, %776, %cst_167 [0] : vector<8x8x32xf32> to vector<8x32xf32>
    %c0_168 = arith.constant 0 : index
    %c0_169 = arith.constant 0 : index
    %778 = vector.load %arg14[%c0_168, %c0_169] : memref<8x32xf32, #tpu.memory_space<vmem>>, vector<8x32xf32>
    tpu.vector_store %arg14[%c0_168, %c0_169], %777 {strides = array<i32>} : memref<8x32xf32, #tpu.memory_space<vmem>>, vector<8x32xf32>,
    return
  }
  func.func @transform_0(%arg0: i32) -> (i32, i32, i32) {
    %c0_i32 = arith.constant 0 : i32
    %c0_i32_0 = arith.constant 0 : i32
    %c0_i32_1 = arith.constant 0 : i32
    return %c0_i32, %arg0, %c0_i32_0 : i32, i32, i32
  }
  func.func @transform_1(%arg0: i32) -> (i32, i32) {
    %c0_i32 = arith.constant 0 : i32
    %c0_i32_0 = arith.constant 0 : i32
    return %arg0, %c0_i32 : i32, i32
  }
  func.func @transform_2(%arg0: i32) -> (i32, i32) {
    %c0_i32 = arith.constant 0 : i32
    %c0_i32_0 = arith.constant 0 : i32
    return %arg0, %c0_i32 : i32, i32
  }
  func.func @transform_3(%arg0: i32) -> (i32, i32) {
    %c0_i32 = arith.constant 0 : i32
    %c0_i32_0 = arith.constant 0 : i32
    %c0_i32_1 = arith.constant 0 : i32
    return %c0_i32, %c0_i32_0 : i32, i32
  }
  func.func @transform_4(%arg0: i32) -> (i32, i32) {
    %c0_i32 = arith.constant 0 : i32
    %c0_i32_0 = arith.constant 0 : i32
    %c0_i32_1 = arith.constant 0 : i32
    return %c0_i32, %c0_i32_0 : i32, i32
  }
  func.func @transform_5(%arg0: i32) -> (i32, i32) {
    %c0_i32 = arith.constant 0 : i32
    %c0_i32_0 = arith.constant 0 : i32
    %c0_i32_1 = arith.constant 0 : i32
    return %c0_i32, %c0_i32_0 : i32, i32
  }
  func.func @transform_6(%arg0: i32) -> (i32, i32) {
    %c0_i32 = arith.constant 0 : i32
    %c0_i32_0 = arith.constant 0 : i32
    %c0_i32_1 = arith.constant 0 : i32
    return %c0_i32, %c0_i32_0 : i32, i32
  }
  func.func @transform_7(%arg0: i32) -> (i32, i32) {
    %c0_i32 = arith.constant 0 : i32
    %c0_i32_0 = arith.constant 0 : i32
    %c0_i32_1 = arith.constant 0 : i32
    return %c0_i32, %c0_i32_0 : i32, i32
  }
  func.func @transform_8(%arg0: i32) -> (i32, i32) {
    %c0_i32 = arith.constant 0 : i32
    %c0_i32_0 = arith.constant 0 : i32
    %c0_i32_1 = arith.constant 0 : i32
    return %c0_i32, %c0_i32_0 : i32, i32
  }
  func.func @transform_9(%arg0: i32) -> (i32, i32) {
    %c0_i32 = arith.constant 0 : i32
    %c0_i32_0 = arith.constant 0 : i32
    %c0_i32_1 = arith.constant 0 : i32
    return %c0_i32, %c0_i32_0 : i32, i32
  }
  func.func @transform_10(%arg0: i32) -> (i32, i32) {
    %c0_i32 = arith.constant 0 : i32
    %c0_i32_0 = arith.constant 0 : i32
    %c0_i32_1 = arith.constant 0 : i32
    return %c0_i32, %c0_i32_0 : i32, i32
  }
  func.func @transform_11(%arg0: i32) -> (i32, i32) {
    %c0_i32 = arith.constant 0 : i32
    %c0_i32_0 = arith.constant 0 : i32
    %c0_i32_1 = arith.constant 0 : i32
    return %c0_i32, %c0_i32_0 : i32, i32
  }
  func.func @transform_12(%arg0: i32) -> (i32, i32) {
    %c0_i32 = arith.constant 0 : i32
    %c0_i32_0 = arith.constant 0 : i32
    %c0_i32_1 = arith.constant 0 : i32
    return %c0_i32, %c0_i32_0 : i32, i32
  }
  func.func @transform_13(%arg0: i32) -> (i32, i32) {
    %c0_i32 = arith.constant 0 : i32
    %c0_i32_0 = arith.constant 0 : i32
    return %arg0, %c0_i32 : i32, i32
  }
}

module attributes {stable_mosaic.version = 11 : i64} {
  func.func @_sentence_classifier_kernel(%arg0: memref<3x8x32xf32, #tpu.memory_space<vmem>>, %arg1: memref<32x48xf32, #tpu.memory_space<vmem>>, %arg2: memref<1x48xf32, #tpu.memory_space<vmem>>, %arg3: memref<32x48xf32, #tpu.memory_space<vmem>>, %arg4: memref<1x48xf32, #tpu.memory_space<vmem>>, %arg5: memref<32x96xf32, #tpu.memory_space<vmem>>, %arg6: memref<1x16xf32, #tpu.memory_space<vmem>>, %arg7: memref<1x16xf32, #tpu.memory_space<vmem>>, %arg8: memref<32x32xf32, #tpu.memory_space<vmem>>, %arg9: memref<1x32xf32, #tpu.memory_space<vmem>>, %arg10: memref<32x32xf32, #tpu.memory_space<vmem>>, %arg11: memref<32x4xf32, #tpu.memory_space<vmem>>, %arg12: memref<1x4xf32, #tpu.memory_space<vmem>>, %arg13: memref<8x4xf32, #tpu.memory_space<vmem>>, %arg14: memref<24x48xf32, #tpu.memory_space<vmem>>, %arg15: memref<24x48xf32, #tpu.memory_space<vmem>>, %arg16: memref<3x8x32xf32, #tpu.memory_space<vmem>>) attributes {dimension_semantics = [], scalar_prefetch = 0 : i64, scratch_operands = 3 : i64, tpu.core_type = #tpu.core_type<tc>} {
    %c0 = arith.constant 0 : index
    %c0_0 = arith.constant 0 : index
    %c0_1 = arith.constant 0 : index
    %0 = vector.load %arg0[%c0, %c0_0, %c0_1] : memref<3x8x32xf32, #tpu.memory_space<vmem>>, vector<3x8x32xf32>
    %c0_2 = arith.constant 0 : index
    %c0_3 = arith.constant 0 : index
    %1 = vector.load %arg1[%c0_2, %c0_3] : memref<32x48xf32, #tpu.memory_space<vmem>>, vector<32x48xf32>
    %c0_4 = arith.constant 0 : index
    %c0_5 = arith.constant 0 : index
    %2 = vector.load %arg2[%c0_4, %c0_5] : memref<1x48xf32, #tpu.memory_space<vmem>>, vector<1x48xf32>
    %c0_6 = arith.constant 0 : index
    %c0_7 = arith.constant 0 : index
    %3 = vector.load %arg3[%c0_6, %c0_7] : memref<32x48xf32, #tpu.memory_space<vmem>>, vector<32x48xf32>
    %c0_8 = arith.constant 0 : index
    %c0_9 = arith.constant 0 : index
    %4 = vector.load %arg4[%c0_8, %c0_9] : memref<1x48xf32, #tpu.memory_space<vmem>>, vector<1x48xf32>
    %c0_10 = arith.constant 0 : index
    %c0_11 = arith.constant 0 : index
    %5 = vector.load %arg5[%c0_10, %c0_11] : memref<32x96xf32, #tpu.memory_space<vmem>>, vector<32x96xf32>
    %c0_12 = arith.constant 0 : index
    %c0_13 = arith.constant 0 : index
    %6 = vector.load %arg6[%c0_12, %c0_13] : memref<1x16xf32, #tpu.memory_space<vmem>>, vector<1x16xf32>
    %c0_14 = arith.constant 0 : index
    %c0_15 = arith.constant 0 : index
    %7 = vector.load %arg7[%c0_14, %c0_15] : memref<1x16xf32, #tpu.memory_space<vmem>>, vector<1x16xf32>
    %8 = vector.shape_cast %0 : vector<3x8x32xf32> to vector<24x32xf32>
    %cst = arith.constant dense<0.000000e+00> : vector<24x48xf32>
    %9 = tpu.matmul %8, %1, %cst {dimension_numbers = #tpu.dot_dimension_numbers<[1], [0], [0], [1], [0, 0, 1, 1], [], []>} : vector<24x32xf32>, vector<32x48xf32>, vector<24x48xf32> -> vector<24x48xf32>
    %10 = vector.broadcast %2 : vector<1x48xf32> to vector<24x48xf32>
    %11 = arith.addf %9, %10 : vector<24x48xf32>
    %c0_16 = arith.constant 0 : index
    %c0_17 = arith.constant 0 : index
    %12 = vector.load %arg14[%c0_16, %c0_17] : memref<24x48xf32, #tpu.memory_space<vmem>>, vector<24x48xf32>
    tpu.vector_store %arg14[%c0_16, %c0_17], %11 {strides = array<i32>} : memref<24x48xf32, #tpu.memory_space<vmem>>, vector<24x48xf32>,
    %cst_18 = arith.constant dense<0.000000e+00> : vector<24x48xf32>
    %13 = tpu.matmul %8, %3, %cst_18 {dimension_numbers = #tpu.dot_dimension_numbers<[1], [0], [0], [1], [0, 0, 1, 1], [], []>} : vector<24x32xf32>, vector<32x48xf32>, vector<24x48xf32> -> vector<24x48xf32>
    %14 = vector.broadcast %4 : vector<1x48xf32> to vector<24x48xf32>
    %15 = arith.addf %13, %14 : vector<24x48xf32>
    %c0_19 = arith.constant 0 : index
    %c0_20 = arith.constant 0 : index
    %16 = vector.load %arg15[%c0_19, %c0_20] : memref<24x48xf32, #tpu.memory_space<vmem>>, vector<24x48xf32>
    tpu.vector_store %arg15[%c0_19, %c0_20], %15 {strides = array<i32>} : memref<24x48xf32, #tpu.memory_space<vmem>>, vector<24x48xf32>,
    %cst_21 = arith.constant 0.000000e+00 : f32
    %17 = vector.broadcast %cst_21 : f32 to vector<8x32xf32>
    %c0_i32 = arith.constant 0 : i32
    %c2_i32 = arith.constant 2 : i32
    %18 = arith.subi %c2_i32, %c0_i32 : i32
    %cst_22 = arith.constant dense<0.000000e+00> : vector<8x96xf32>
    %19 = tpu.matmul %17, %5, %cst_22 {dimension_numbers = #tpu.dot_dimension_numbers<[1], [0], [0], [1], [0, 0, 1, 1], [], []>} : vector<8x32xf32>, vector<32x96xf32>, vector<8x96xf32> -> vector<8x96xf32>
    %c8_i32 = arith.constant 8 : i32
    %20 = arith.muli %c0_i32, %c8_i32 : i32
    %21 = tpu.assume_multiple %20, 8 : i32
    %22 = arith.index_cast %21 : i32 to index
    %c0_23 = arith.constant 0 : index
    %23 = vector.load %arg14[%22, %c0_23] : memref<24x48xf32, #tpu.memory_space<vmem>>, vector<8x48xf32>
    %c8_i32_24 = arith.constant 8 : i32
    %24 = arith.muli %18, %c8_i32_24 : i32
    %25 = tpu.assume_multiple %24, 8 : i32
    %26 = arith.index_cast %25 : i32 to index
    %c0_25 = arith.constant 0 : index
    %27 = vector.load %arg15[%26, %c0_25] : memref<24x48xf32, #tpu.memory_space<vmem>>, vector<8x48xf32>
    %28 = vector.extract_strided_slice %17 {offsets = [0, 0], sizes = [8, 16], strides = [1, 1]} : vector<8x32xf32> to vector<8x16xf32>
    %29 = vector.extract_strided_slice %17 {offsets = [0, 16], sizes = [8, 16], strides = [1, 1]} : vector<8x32xf32> to vector<8x16xf32>
    %30 = vector.extract_strided_slice %23 {offsets = [0, 0], sizes = [8, 16], strides = [1, 1]} : vector<8x48xf32> to vector<8x16xf32>
    %31 = vector.extract_strided_slice %19 {offsets = [0, 0], sizes = [8, 16], strides = [1, 1]} : vector<8x96xf32> to vector<8x16xf32>
    %32 = arith.addf %30, %31 : vector<8x16xf32>
    %33 = arith.negf %32 : vector<8x16xf32>
    %34 = math.exp %33 : vector<8x16xf32>
    %cst_26 = arith.constant 1.000000e+00 : f32
    %35 = vector.broadcast %cst_26 : f32 to vector<8x16xf32>
    %36 = arith.addf %35, %34 : vector<8x16xf32>
    %37 = arith.divf %35, %36 : vector<8x16xf32>
    %38 = vector.extract_strided_slice %23 {offsets = [0, 16], sizes = [8, 16], strides = [1, 1]} : vector<8x48xf32> to vector<8x16xf32>
    %39 = vector.extract_strided_slice %19 {offsets = [0, 16], sizes = [8, 16], strides = [1, 1]} : vector<8x96xf32> to vector<8x16xf32>
    %40 = arith.addf %38, %39 : vector<8x16xf32>
    %41 = arith.negf %40 : vector<8x16xf32>
    %42 = math.exp %41 : vector<8x16xf32>
    %cst_27 = arith.constant 1.000000e+00 : f32
    %43 = vector.broadcast %cst_27 : f32 to vector<8x16xf32>
    %44 = arith.addf %43, %42 : vector<8x16xf32>
    %45 = arith.divf %43, %44 : vector<8x16xf32>
    %46 = vector.extract_strided_slice %23 {offsets = [0, 32], sizes = [8, 16], strides = [1, 1]} : vector<8x48xf32> to vector<8x16xf32>
    %47 = vector.extract_strided_slice %19 {offsets = [0, 32], sizes = [8, 16], strides = [1, 1]} : vector<8x96xf32> to vector<8x16xf32>
    %48 = vector.broadcast %6 : vector<1x16xf32> to vector<8x16xf32>
    %49 = arith.addf %47, %48 : vector<8x16xf32>
    %50 = arith.mulf %37, %49 : vector<8x16xf32>
    %51 = arith.addf %46, %50 : vector<8x16xf32>
    %52 = math.tanh %51 : vector<8x16xf32>
    %53 = arith.subf %28, %52 : vector<8x16xf32>
    %54 = arith.mulf %45, %53 : vector<8x16xf32>
    %55 = arith.addf %52, %54 : vector<8x16xf32>
    %56 = vector.extract_strided_slice %27 {offsets = [0, 0], sizes = [8, 16], strides = [1, 1]} : vector<8x48xf32> to vector<8x16xf32>
    %57 = vector.extract_strided_slice %19 {offsets = [0, 48], sizes = [8, 16], strides = [1, 1]} : vector<8x96xf32> to vector<8x16xf32>
    %58 = arith.addf %56, %57 : vector<8x16xf32>
    %59 = arith.negf %58 : vector<8x16xf32>
    %60 = math.exp %59 : vector<8x16xf32>
    %cst_28 = arith.constant 1.000000e+00 : f32
    %61 = vector.broadcast %cst_28 : f32 to vector<8x16xf32>
    %62 = arith.addf %61, %60 : vector<8x16xf32>
    %63 = arith.divf %61, %62 : vector<8x16xf32>
    %64 = vector.extract_strided_slice %27 {offsets = [0, 16], sizes = [8, 16], strides = [1, 1]} : vector<8x48xf32> to vector<8x16xf32>
    %65 = vector.extract_strided_slice %19 {offsets = [0, 64], sizes = [8, 16], strides = [1, 1]} : vector<8x96xf32> to vector<8x16xf32>
    %66 = arith.addf %64, %65 : vector<8x16xf32>
    %67 = arith.negf %66 : vector<8x16xf32>
    %68 = math.exp %67 : vector<8x16xf32>
    %cst_29 = arith.constant 1.000000e+00 : f32
    %69 = vector.broadcast %cst_29 : f32 to vector<8x16xf32>
    %70 = arith.addf %69, %68 : vector<8x16xf32>
    %71 = arith.divf %69, %70 : vector<8x16xf32>
    %72 = vector.extract_strided_slice %27 {offsets = [0, 32], sizes = [8, 16], strides = [1, 1]} : vector<8x48xf32> to vector<8x16xf32>
    %73 = vector.extract_strided_slice %19 {offsets = [0, 80], sizes = [8, 16], strides = [1, 1]} : vector<8x96xf32> to vector<8x16xf32>
    %74 = vector.broadcast %7 : vector<1x16xf32> to vector<8x16xf32>
    %75 = arith.addf %73, %74 : vector<8x16xf32>
    %76 = arith.mulf %63, %75 : vector<8x16xf32>
    %77 = arith.addf %72, %76 : vector<8x16xf32>
    %78 = math.tanh %77 : vector<8x16xf32>
    %79 = arith.subf %29, %78 : vector<8x16xf32>
    %80 = arith.mulf %71, %79 : vector<8x16xf32>
    %81 = arith.addf %78, %80 : vector<8x16xf32>
    %82 = arith.index_cast %c0_i32 : i32 to index
    %c0_30 = arith.constant 0 : index
    %c0_31 = arith.constant 0 : index
    %83 = vector.load %arg16[%82, %c0_30, %c0_31] : memref<3x8x32xf32, #tpu.memory_space<vmem>>, vector<1x8x16xf32>
    %84 = vector.shape_cast %83 : vector<1x8x16xf32> to vector<8x16xf32>
    %85 = vector.shape_cast %55 : vector<8x16xf32> to vector<1x8x16xf32>
    tpu.vector_store %arg16[%82, %c0_30, %c0_31], %85 {strides = array<i32>} : memref<3x8x32xf32, #tpu.memory_space<vmem>>, vector<1x8x16xf32>,
    %86 = arith.index_cast %18 : i32 to index
    %c0_32 = arith.constant 0 : index
    %c16 = arith.constant 16 : index
    %87 = vector.load %arg16[%86, %c0_32, %c16] : memref<3x8x32xf32, #tpu.memory_space<vmem>>, vector<1x8x16xf32>
    %88 = vector.shape_cast %87 : vector<1x8x16xf32> to vector<8x16xf32>
    %89 = vector.shape_cast %81 : vector<8x16xf32> to vector<1x8x16xf32>
    tpu.vector_store %arg16[%86, %c0_32, %c16], %89 {strides = array<i32>} : memref<3x8x32xf32, #tpu.memory_space<vmem>>, vector<1x8x16xf32>,
    %90 = tpu.concatenate %55, %81 in 1 : vector<8x16xf32>, vector<8x16xf32> -> vector<8x32xf32>
    %c1_i32 = arith.constant 1 : i32
    %c2_i32_33 = arith.constant 2 : i32
    %91 = arith.subi %c2_i32_33, %c1_i32 : i32
    %cst_34 = arith.constant dense<0.000000e+00> : vector<8x96xf32>
    %92 = tpu.matmul %90, %5, %cst_34 {dimension_numbers = #tpu.dot_dimension_numbers<[1], [0], [0], [1], [0, 0, 1, 1], [], []>} : vector<8x32xf32>, vector<32x96xf32>, vector<8x96xf32> -> vector<8x96xf32>
    %c8_i32_35 = arith.constant 8 : i32
    %93 = arith.muli %c1_i32, %c8_i32_35 : i32
    %94 = tpu.assume_multiple %93, 8 : i32
    %95 = arith.index_cast %94 : i32 to index
    %c0_36 = arith.constant 0 : index
    %96 = vector.load %arg14[%95, %c0_36] : memref<24x48xf32, #tpu.memory_space<vmem>>, vector<8x48xf32>
    %c8_i32_37 = arith.constant 8 : i32
    %97 = arith.muli %91, %c8_i32_37 : i32
    %98 = tpu.assume_multiple %97, 8 : i32
    %99 = arith.index_cast %98 : i32 to index
    %c0_38 = arith.constant 0 : index
    %100 = vector.load %arg15[%99, %c0_38] : memref<24x48xf32, #tpu.memory_space<vmem>>, vector<8x48xf32>
    %101 = vector.extract_strided_slice %90 {offsets = [0, 0], sizes = [8, 16], strides = [1, 1]} : vector<8x32xf32> to vector<8x16xf32>
    %102 = vector.extract_strided_slice %90 {offsets = [0, 16], sizes = [8, 16], strides = [1, 1]} : vector<8x32xf32> to vector<8x16xf32>
    %103 = vector.extract_strided_slice %96 {offsets = [0, 0], sizes = [8, 16], strides = [1, 1]} : vector<8x48xf32> to vector<8x16xf32>
    %104 = vector.extract_strided_slice %92 {offsets = [0, 0], sizes = [8, 16], strides = [1, 1]} : vector<8x96xf32> to vector<8x16xf32>
    %105 = arith.addf %103, %104 : vector<8x16xf32>
    %106 = arith.negf %105 : vector<8x16xf32>
    %107 = math.exp %106 : vector<8x16xf32>
    %cst_39 = arith.constant 1.000000e+00 : f32
    %108 = vector.broadcast %cst_39 : f32 to vector<8x16xf32>
    %109 = arith.addf %108, %107 : vector<8x16xf32>
    %110 = arith.divf %108, %109 : vector<8x16xf32>
    %111 = vector.extract_strided_slice %96 {offsets = [0, 16], sizes = [8, 16], strides = [1, 1]} : vector<8x48xf32> to vector<8x16xf32>
    %112 = vector.extract_strided_slice %92 {offsets = [0, 16], sizes = [8, 16], strides = [1, 1]} : vector<8x96xf32> to vector<8x16xf32>
    %113 = arith.addf %111, %112 : vector<8x16xf32>
    %114 = arith.negf %113 : vector<8x16xf32>
    %115 = math.exp %114 : vector<8x16xf32>
    %cst_40 = arith.constant 1.000000e+00 : f32
    %116 = vector.broadcast %cst_40 : f32 to vector<8x16xf32>
    %117 = arith.addf %116, %115 : vector<8x16xf32>
    %118 = arith.divf %116, %117 : vector<8x16xf32>
    %119 = vector.extract_strided_slice %96 {offsets = [0, 32], sizes = [8, 16], strides = [1, 1]} : vector<8x48xf32> to vector<8x16xf32>
    %120 = vector.extract_strided_slice %92 {offsets = [0, 32], sizes = [8, 16], strides = [1, 1]} : vector<8x96xf32> to vector<8x16xf32>
    %121 = vector.broadcast %6 : vector<1x16xf32> to vector<8x16xf32>
    %122 = arith.addf %120, %121 : vector<8x16xf32>
    %123 = arith.mulf %110, %122 : vector<8x16xf32>
    %124 = arith.addf %119, %123 : vector<8x16xf32>
    %125 = math.tanh %124 : vector<8x16xf32>
    %126 = arith.subf %101, %125 : vector<8x16xf32>
    %127 = arith.mulf %118, %126 : vector<8x16xf32>
    %128 = arith.addf %125, %127 : vector<8x16xf32>
    %129 = vector.extract_strided_slice %100 {offsets = [0, 0], sizes = [8, 16], strides = [1, 1]} : vector<8x48xf32> to vector<8x16xf32>
    %130 = vector.extract_strided_slice %92 {offsets = [0, 48], sizes = [8, 16], strides = [1, 1]} : vector<8x96xf32> to vector<8x16xf32>
    %131 = arith.addf %129, %130 : vector<8x16xf32>
    %132 = arith.negf %131 : vector<8x16xf32>
    %133 = math.exp %132 : vector<8x16xf32>
    %cst_41 = arith.constant 1.000000e+00 : f32
    %134 = vector.broadcast %cst_41 : f32 to vector<8x16xf32>
    %135 = arith.addf %134, %133 : vector<8x16xf32>
    %136 = arith.divf %134, %135 : vector<8x16xf32>
    %137 = vector.extract_strided_slice %100 {offsets = [0, 16], sizes = [8, 16], strides = [1, 1]} : vector<8x48xf32> to vector<8x16xf32>
    %138 = vector.extract_strided_slice %92 {offsets = [0, 64], sizes = [8, 16], strides = [1, 1]} : vector<8x96xf32> to vector<8x16xf32>
    %139 = arith.addf %137, %138 : vector<8x16xf32>
    %140 = arith.negf %139 : vector<8x16xf32>
    %141 = math.exp %140 : vector<8x16xf32>
    %cst_42 = arith.constant 1.000000e+00 : f32
    %142 = vector.broadcast %cst_42 : f32 to vector<8x16xf32>
    %143 = arith.addf %142, %141 : vector<8x16xf32>
    %144 = arith.divf %142, %143 : vector<8x16xf32>
    %145 = vector.extract_strided_slice %100 {offsets = [0, 32], sizes = [8, 16], strides = [1, 1]} : vector<8x48xf32> to vector<8x16xf32>
    %146 = vector.extract_strided_slice %92 {offsets = [0, 80], sizes = [8, 16], strides = [1, 1]} : vector<8x96xf32> to vector<8x16xf32>
    %147 = vector.broadcast %7 : vector<1x16xf32> to vector<8x16xf32>
    %148 = arith.addf %146, %147 : vector<8x16xf32>
    %149 = arith.mulf %136, %148 : vector<8x16xf32>
    %150 = arith.addf %145, %149 : vector<8x16xf32>
    %151 = math.tanh %150 : vector<8x16xf32>
    %152 = arith.subf %102, %151 : vector<8x16xf32>
    %153 = arith.mulf %144, %152 : vector<8x16xf32>
    %154 = arith.addf %151, %153 : vector<8x16xf32>
    %155 = arith.index_cast %c1_i32 : i32 to index
    %c0_43 = arith.constant 0 : index
    %c0_44 = arith.constant 0 : index
    %156 = vector.load %arg16[%155, %c0_43, %c0_44] : memref<3x8x32xf32, #tpu.memory_space<vmem>>, vector<1x8x16xf32>
    %157 = vector.shape_cast %156 : vector<1x8x16xf32> to vector<8x16xf32>
    %158 = vector.shape_cast %128 : vector<8x16xf32> to vector<1x8x16xf32>
    tpu.vector_store %arg16[%155, %c0_43, %c0_44], %158 {strides = array<i32>} : memref<3x8x32xf32, #tpu.memory_space<vmem>>, vector<1x8x16xf32>,
    %159 = arith.index_cast %91 : i32 to index
    %c0_45 = arith.constant 0 : index
    %c16_46 = arith.constant 16 : index
    %160 = vector.load %arg16[%159, %c0_45, %c16_46] : memref<3x8x32xf32, #tpu.memory_space<vmem>>, vector<1x8x16xf32>
    %161 = vector.shape_cast %160 : vector<1x8x16xf32> to vector<8x16xf32>
    %162 = vector.shape_cast %154 : vector<8x16xf32> to vector<1x8x16xf32>
    tpu.vector_store %arg16[%159, %c0_45, %c16_46], %162 {strides = array<i32>} : memref<3x8x32xf32, #tpu.memory_space<vmem>>, vector<1x8x16xf32>,
    %163 = tpu.concatenate %128, %154 in 1 : vector<8x16xf32>, vector<8x16xf32> -> vector<8x32xf32>
    %c2_i32_47 = arith.constant 2 : i32
    %c2_i32_48 = arith.constant 2 : i32
    %164 = arith.subi %c2_i32_48, %c2_i32_47 : i32
    %cst_49 = arith.constant dense<0.000000e+00> : vector<8x96xf32>
    %165 = tpu.matmul %163, %5, %cst_49 {dimension_numbers = #tpu.dot_dimension_numbers<[1], [0], [0], [1], [0, 0, 1, 1], [], []>} : vector<8x32xf32>, vector<32x96xf32>, vector<8x96xf32> -> vector<8x96xf32>
    %c8_i32_50 = arith.constant 8 : i32
    %166 = arith.muli %c2_i32_47, %c8_i32_50 : i32
    %167 = tpu.assume_multiple %166, 8 : i32
    %168 = arith.index_cast %167 : i32 to index
    %c0_51 = arith.constant 0 : index
    %169 = vector.load %arg14[%168, %c0_51] : memref<24x48xf32, #tpu.memory_space<vmem>>, vector<8x48xf32>
    %c8_i32_52 = arith.constant 8 : i32
    %170 = arith.muli %164, %c8_i32_52 : i32
    %171 = tpu.assume_multiple %170, 8 : i32
    %172 = arith.index_cast %171 : i32 to index
    %c0_53 = arith.constant 0 : index
    %173 = vector.load %arg15[%172, %c0_53] : memref<24x48xf32, #tpu.memory_space<vmem>>, vector<8x48xf32>
    %174 = vector.extract_strided_slice %163 {offsets = [0, 0], sizes = [8, 16], strides = [1, 1]} : vector<8x32xf32> to vector<8x16xf32>
    %175 = vector.extract_strided_slice %163 {offsets = [0, 16], sizes = [8, 16], strides = [1, 1]} : vector<8x32xf32> to vector<8x16xf32>
    %176 = vector.extract_strided_slice %169 {offsets = [0, 0], sizes = [8, 16], strides = [1, 1]} : vector<8x48xf32> to vector<8x16xf32>
    %177 = vector.extract_strided_slice %165 {offsets = [0, 0], sizes = [8, 16], strides = [1, 1]} : vector<8x96xf32> to vector<8x16xf32>
    %178 = arith.addf %176, %177 : vector<8x16xf32>
    %179 = arith.negf %178 : vector<8x16xf32>
    %180 = math.exp %179 : vector<8x16xf32>
    %cst_54 = arith.constant 1.000000e+00 : f32
    %181 = vector.broadcast %cst_54 : f32 to vector<8x16xf32>
    %182 = arith.addf %181, %180 : vector<8x16xf32>
    %183 = arith.divf %181, %182 : vector<8x16xf32>
    %184 = vector.extract_strided_slice %169 {offsets = [0, 16], sizes = [8, 16], strides = [1, 1]} : vector<8x48xf32> to vector<8x16xf32>
    %185 = vector.extract_strided_slice %165 {offsets = [0, 16], sizes = [8, 16], strides = [1, 1]} : vector<8x96xf32> to vector<8x16xf32>
    %186 = arith.addf %184, %185 : vector<8x16xf32>
    %187 = arith.negf %186 : vector<8x16xf32>
    %188 = math.exp %187 : vector<8x16xf32>
    %cst_55 = arith.constant 1.000000e+00 : f32
    %189 = vector.broadcast %cst_55 : f32 to vector<8x16xf32>
    %190 = arith.addf %189, %188 : vector<8x16xf32>
    %191 = arith.divf %189, %190 : vector<8x16xf32>
    %192 = vector.extract_strided_slice %169 {offsets = [0, 32], sizes = [8, 16], strides = [1, 1]} : vector<8x48xf32> to vector<8x16xf32>
    %193 = vector.extract_strided_slice %165 {offsets = [0, 32], sizes = [8, 16], strides = [1, 1]} : vector<8x96xf32> to vector<8x16xf32>
    %194 = vector.broadcast %6 : vector<1x16xf32> to vector<8x16xf32>
    %195 = arith.addf %193, %194 : vector<8x16xf32>
    %196 = arith.mulf %183, %195 : vector<8x16xf32>
    %197 = arith.addf %192, %196 : vector<8x16xf32>
    %198 = math.tanh %197 : vector<8x16xf32>
    %199 = arith.subf %174, %198 : vector<8x16xf32>
    %200 = arith.mulf %191, %199 : vector<8x16xf32>
    %201 = arith.addf %198, %200 : vector<8x16xf32>
    %202 = vector.extract_strided_slice %173 {offsets = [0, 0], sizes = [8, 16], strides = [1, 1]} : vector<8x48xf32> to vector<8x16xf32>
    %203 = vector.extract_strided_slice %165 {offsets = [0, 48], sizes = [8, 16], strides = [1, 1]} : vector<8x96xf32> to vector<8x16xf32>
    %204 = arith.addf %202, %203 : vector<8x16xf32>
    %205 = arith.negf %204 : vector<8x16xf32>
    %206 = math.exp %205 : vector<8x16xf32>
    %cst_56 = arith.constant 1.000000e+00 : f32
    %207 = vector.broadcast %cst_56 : f32 to vector<8x16xf32>
    %208 = arith.addf %207, %206 : vector<8x16xf32>
    %209 = arith.divf %207, %208 : vector<8x16xf32>
    %210 = vector.extract_strided_slice %173 {offsets = [0, 16], sizes = [8, 16], strides = [1, 1]} : vector<8x48xf32> to vector<8x16xf32>
    %211 = vector.extract_strided_slice %165 {offsets = [0, 64], sizes = [8, 16], strides = [1, 1]} : vector<8x96xf32> to vector<8x16xf32>
    %212 = arith.addf %210, %211 : vector<8x16xf32>
    %213 = arith.negf %212 : vector<8x16xf32>
    %214 = math.exp %213 : vector<8x16xf32>
    %cst_57 = arith.constant 1.000000e+00 : f32
    %215 = vector.broadcast %cst_57 : f32 to vector<8x16xf32>
    %216 = arith.addf %215, %214 : vector<8x16xf32>
    %217 = arith.divf %215, %216 : vector<8x16xf32>
    %218 = vector.extract_strided_slice %173 {offsets = [0, 32], sizes = [8, 16], strides = [1, 1]} : vector<8x48xf32> to vector<8x16xf32>
    %219 = vector.extract_strided_slice %165 {offsets = [0, 80], sizes = [8, 16], strides = [1, 1]} : vector<8x96xf32> to vector<8x16xf32>
    %220 = vector.broadcast %7 : vector<1x16xf32> to vector<8x16xf32>
    %221 = arith.addf %219, %220 : vector<8x16xf32>
    %222 = arith.mulf %209, %221 : vector<8x16xf32>
    %223 = arith.addf %218, %222 : vector<8x16xf32>
    %224 = math.tanh %223 : vector<8x16xf32>
    %225 = arith.subf %175, %224 : vector<8x16xf32>
    %226 = arith.mulf %217, %225 : vector<8x16xf32>
    %227 = arith.addf %224, %226 : vector<8x16xf32>
    %228 = arith.index_cast %c2_i32_47 : i32 to index
    %c0_58 = arith.constant 0 : index
    %c0_59 = arith.constant 0 : index
    %229 = vector.load %arg16[%228, %c0_58, %c0_59] : memref<3x8x32xf32, #tpu.memory_space<vmem>>, vector<1x8x16xf32>
    %230 = vector.shape_cast %229 : vector<1x8x16xf32> to vector<8x16xf32>
    %231 = vector.shape_cast %201 : vector<8x16xf32> to vector<1x8x16xf32>
    tpu.vector_store %arg16[%228, %c0_58, %c0_59], %231 {strides = array<i32>} : memref<3x8x32xf32, #tpu.memory_space<vmem>>, vector<1x8x16xf32>,
    %232 = arith.index_cast %164 : i32 to index
    %c0_60 = arith.constant 0 : index
    %c16_61 = arith.constant 16 : index
    %233 = vector.load %arg16[%232, %c0_60, %c16_61] : memref<3x8x32xf32, #tpu.memory_space<vmem>>, vector<1x8x16xf32>
    %234 = vector.shape_cast %233 : vector<1x8x16xf32> to vector<8x16xf32>
    %235 = vector.shape_cast %227 : vector<8x16xf32> to vector<1x8x16xf32>
    tpu.vector_store %arg16[%232, %c0_60, %c16_61], %235 {strides = array<i32>} : memref<3x8x32xf32, #tpu.memory_space<vmem>>, vector<1x8x16xf32>,
    %236 = tpu.concatenate %201, %227 in 1 : vector<8x16xf32>, vector<8x16xf32> -> vector<8x32xf32>
    %c3_i32 = arith.constant 3 : i32
    %c0_62 = arith.constant 0 : index
    %c0_63 = arith.constant 0 : index
    %237 = vector.load %arg8[%c0_62, %c0_63] : memref<32x32xf32, #tpu.memory_space<vmem>>, vector<32x32xf32>
    %c0_64 = arith.constant 0 : index
    %c0_65 = arith.constant 0 : index
    %238 = vector.load %arg9[%c0_64, %c0_65] : memref<1x32xf32, #tpu.memory_space<vmem>>, vector<1x32xf32>
    %c0_66 = arith.constant 0 : index
    %c0_67 = arith.constant 0 : index
    %239 = vector.load %arg10[%c0_66, %c0_67] : memref<32x32xf32, #tpu.memory_space<vmem>>, vector<32x32xf32>
    %c0_68 = arith.constant 0 : index
    %c0_69 = arith.constant 0 : index
    %c0_70 = arith.constant 0 : index
    %240 = vector.load %arg16[%c0_68, %c0_69, %c0_70] : memref<3x8x32xf32, #tpu.memory_space<vmem>>, vector<3x8x32xf32>
    %241 = vector.shape_cast %240 : vector<3x8x32xf32> to vector<24x32xf32>
    %cst_71 = arith.constant dense<0.000000e+00> : vector<24x32xf32>
    %242 = tpu.matmul %241, %237, %cst_71 {dimension_numbers = #tpu.dot_dimension_numbers<[1], [0], [0], [1], [0, 0, 1, 1], [], []>} : vector<24x32xf32>, vector<32x32xf32>, vector<24x32xf32> -> vector<24x32xf32>
    %243 = vector.broadcast %238 : vector<1x32xf32> to vector<24x32xf32>
    %244 = arith.addf %242, %243 : vector<24x32xf32>
    %245 = math.tanh %244 : vector<24x32xf32>
    %cst_72 = arith.constant dense<0.000000e+00> : vector<24x32xf32>
    %246 = tpu.matmul %245, %239, %cst_72 {dimension_numbers = #tpu.dot_dimension_numbers<[1], [0], [0], [1], [0, 0, 1, 1], [], []>} : vector<24x32xf32>, vector<32x32xf32>, vector<24x32xf32> -> vector<24x32xf32>
    %247 = vector.shape_cast %246 : vector<24x32xf32> to vector<3x8x32xf32>
    %cst_73 = arith.constant dense<0xFF800000> : vector<8x32xf32>
    %248 = vector.multi_reduction <maximumf>, %247, %cst_73 [0] : vector<3x8x32xf32> to vector<8x32xf32>
    %249 = vector.shape_cast %248 : vector<8x32xf32> to vector<1x8x32xf32>
    %250 = vector.broadcast %249 : vector<1x8x32xf32> to vector<3x8x32xf32>
    %251 = arith.subf %247, %250 : vector<3x8x32xf32>
    %252 = math.exp %251 : vector<3x8x32xf32>
    %cst_74 = arith.constant dense<0.000000e+00> : vector<8x32xf32>
    %253 = vector.multi_reduction <add>, %252, %cst_74 [0] : vector<3x8x32xf32> to vector<8x32xf32>
    %254 = vector.shape_cast %253 : vector<8x32xf32> to vector<1x8x32xf32>
    %255 = vector.broadcast %254 : vector<1x8x32xf32> to vector<3x8x32xf32>
    %256 = arith.divf %252, %255 : vector<3x8x32xf32>
    %257 = arith.mulf %256, %240 : vector<3x8x32xf32>
    %cst_75 = arith.constant dense<0.000000e+00> : vector<8x32xf32>
    %258 = vector.multi_reduction <add>, %257, %cst_75 [0] : vector<3x8x32xf32> to vector<8x32xf32>
    %c0_76 = arith.constant 0 : index
    %c0_77 = arith.constant 0 : index
    %259 = vector.load %arg11[%c0_76, %c0_77] : memref<32x4xf32, #tpu.memory_space<vmem>>, vector<32x4xf32>
    %cst_78 = arith.constant dense<0.000000e+00> : vector<8x4xf32>
    %260 = tpu.matmul %258, %259, %cst_78 {dimension_numbers = #tpu.dot_dimension_numbers<[1], [0], [0], [1], [0, 0, 1, 1], [], []>} : vector<8x32xf32>, vector<32x4xf32>, vector<8x4xf32> -> vector<8x4xf32>
    %c0_79 = arith.constant 0 : index
    %c0_80 = arith.constant 0 : index
    %261 = vector.load %arg12[%c0_79, %c0_80] : memref<1x4xf32, #tpu.memory_space<vmem>>, vector<1x4xf32>
    %262 = vector.broadcast %261 : vector<1x4xf32> to vector<8x4xf32>
    %263 = arith.addf %260, %262 : vector<8x4xf32>
    %cst_81 = arith.constant dense<0xFF800000> : vector<8xf32>
    %264 = vector.multi_reduction <maximumf>, %263, %cst_81 [1] : vector<8x4xf32> to vector<8xf32>
    %265 = vector.shape_cast %264 : vector<8xf32> to vector<8x1xf32>
    %266 = vector.broadcast %265 : vector<8x1xf32> to vector<8x4xf32>
    %267 = arith.subf %263, %266 : vector<8x4xf32>
    %268 = math.exp %267 : vector<8x4xf32>
    %cst_82 = arith.constant dense<0.000000e+00> : vector<8xf32>
    %269 = vector.multi_reduction <add>, %268, %cst_82 [1] : vector<8x4xf32> to vector<8xf32>
    %270 = vector.shape_cast %269 : vector<8xf32> to vector<8x1xf32>
    %271 = vector.broadcast %270 : vector<8x1xf32> to vector<8x4xf32>
    %272 = arith.divf %268, %271 : vector<8x4xf32>
    %c0_83 = arith.constant 0 : index
    %c0_84 = arith.constant 0 : index
    %273 = vector.load %arg13[%c0_83, %c0_84] : memref<8x4xf32, #tpu.memory_space<vmem>>, vector<8x4xf32>
    tpu.vector_store %arg13[%c0_83, %c0_84], %272 {strides = array<i32>} : memref<8x4xf32, #tpu.memory_space<vmem>>, vector<8x4xf32>,
    return
  }
}

</mosaic_0001>

<bundles_post_ra>
// kernel: han_forward.3
= control target key start
LH: loop header
LB: loop body
LE: loop exit
PB: predicated region body
PF: predicated region fallthrough
CT: control target
= control target key end

     0   :  { %v1362_v0 = vmov 0.0|0.0   ;;  %vm1363_vm0 = vmmov 0   ;;  %v1364_v4 = vmov 0.0   ;;  %s1365_s25 = smov 32   ;;  %vm69_vm1 = vcmask 261120   ;;  %s1369_s24 = smov 112   ;;  %s1692_s1 = inlined_call_operand.vmem [shape: f32[32,48], index: 1, kind: input, shape index: {}]   ;;  %s1693_s5 = inlined_call_operand.vmem [shape: f32[32,96], index: 5, kind: input, shape index: {}]   ;;  %s1694_s3 = inlined_call_operand.vmem [shape: f32[32,48], index: 3, kind: input, shape index: {}]   ;;  %s1695_s6 = inlined_call_operand.vmem [shape: f32[1,16], index: 6, kind: input, shape index: {}]   ;;  %s1696_s7 = inlined_call_operand.vmem [shape: f32[1,16], index: 7, kind: input, shape index: {}]   ;;  %s1697_s0 = inlined_call_operand.vmem [shape: f32[3,8,32], index: 0, kind: input, shape index: {}]   ;;  %s1698_s2 = inlined_call_operand.vmem [shape: f32[1,48], index: 2, kind: input, shape index: {}]   ;;  %s1699_s4 = inlined_call_operand.vmem [shape: f32[1,48], index: 4, kind: input, shape index: {}]   ;;  %s1700_s8 = inlined_call_operand.vmem [shape: f32[32,32], index: 8, kind: input, shape index: {}]   ;;  %s1701_s10 = inlined_call_operand.vmem [shape: f32[32,32], index: 10, kind: input, shape index: {}]   ;;  %s1702_s9 = inlined_call_operand.vmem [shape: f32[1,32], index: 9, kind: input, shape index: {}]   ;;  %s1703_s11 = inlined_call_operand.vmem [shape: f32[32,4], index: 11, kind: input, shape index: {}]   ;;  %s1704_s12 = inlined_call_operand.vmem [shape: f32[1,4], index: 12, kind: input, shape index: {}]   ;;  %s1705_s13 = inlined_call_operand.vmem [shape: f32[8,4], index: 13, kind: output, shape index: {}]  }
   0x1   :  { %1251 = vmatprep.subr.bf16.mxu0 %v1362_v0  ;;  %v47_v1 = vld [vmem:[%s1692_s1] sm:$0xff]  ;;  %v48_v2 = vld [vmem:[%s1692_s1 + $0x8] sm:$0xff]  ;;  %v49_v3 = vld [vmem:[%s1692_s1 + $0x10] sm:$0xff]  ;;  %1147 = vmatprep.mubr.msk.f32.mxu0 %vm1363_vm0, %v1364_v4  ;;  %vm159_vm2 = vcmask 392192   ;;  %s1370_s26 = smov 16   ;;  %vm412_vm3 = vcmask 130048  }
   0x2   :  { %v1252_v5 = vpack.c.bf16 %v48_v2, %v47_v1  ;;  %v50_v6 = vld [vmem:[%s1692_s1 + $0x18] sm:$0xff]  ;;  %1257 = vmatprep.subr.bf16.mxu1 %v1362_v0  ;;  %1164 = vmatprep.mubr.msk.f32.mxu1 %vm1363_vm0, %v1364_v4  ;;  %v57_v8 = vld [vmem:[%s1693_s5] sm:$0xff]  ;;  %v58_v10 = vld [vmem:[%s1693_s5 + $0x8] sm:$0xff]  ;;  %vm419_vm4 = vcmask 261248   ;;  %vm1047_vm5 = vcmask 31744  }
   0x3   :  { %v1255_v7 = vpack.c.bf16 %v50_v6, %v49_v3  ;;  %v52_v9 = vld [vmem:[%s1694_s3] sm:$0xff]  ;;  %v53_v11 = vld [vmem:[%s1694_s3 + $0x8] sm:$0xff]  ;;  %v54_v14 = vld [vmem:[%s1694_s3 + $0x10] sm:$0xff]  ;;  %v1264_v18 = vpack.c.bf16 %v58_v10, %v57_v8 }
   0x4   :  { %1253 = vmatpush3.bf16.msra.mxu0 %v1252_v5  ;;  %v1073_v12 = vld [vmem:[%s1695_s6] ss:$0 sm:$0xff]  ;;  %v1258_v13 = vpack.c.bf16 %v53_v11, %v52_v9  ;;  %v55_v15 = vld [vmem:[%s1694_s3 + $0x18] sm:$0xff]  ;;  %v59_v19 = vld [vmem:[%s1693_s5 + $0x10] sm:$0xff] }
   0x5   :  { %1254 = vmatprep.subr.bf16.mxu0 %v1362_v0  ;;  %340 = vrot.lane.b32.xlu0 %v1073_v12, %s1365_s25  ;;  %v1075_v16 = vld [vmem:[%s1696_s7] ss:$0 sm:$0xff]  ;;  %v60_v20 = vld [vmem:[%s1693_s5 + $0x18] sm:$0xff]  ;;  %v1261_v21 = vpack.c.bf16 %v55_v15, %v54_v14  ;;  %s1366_s7 = smov 80   ;;  %v45_v22 = vld [vmem:[%s1697_s0 + $0x8] sm:$0xff] }
   0x6   :  { %v44_v17 = vld [vmem:[%s1697_s0] sm:$0xff]  ;;  %1259 = vmatpush3.bf16.msra.mxu1 %v1258_v13  ;;  %v1267_v23 = vpack.c.bf16 %v60_v20, %v59_v19  ;;  %v46_v24 = vld [vmem:[%s1697_s0 + $0x10] sm:$0xff] }
   0x7   :  { %1260 = vmatprep.subr.bf16.mxu1 %v1362_v0  ;;  %v1064_v25 = vld [vmem:[%s1698_s2] ss:$0 sm:$0xff]  ;;  %s1367_s2 = smov 48  }
   0x8   :  { %1256 = vmatpush3.bf16.msra.mxu0 %v1255_v7  ;;  %v1068_v31 = vld [vmem:[%s1699_s4] ss:$0 sm:$0xff]  ;;  %s1368_s4 = smov 96  }
   0x9   :  { %1263 = vmatprep.subr.bf16.mxu0 %v1362_v0  ;;  %382 = vrot.lane.b32.xlu0 %v1075_v16, %s1366_s7 }
   0xa   :  { %1262 = vmatpush3.bf16.msra.mxu1 %v1261_v21 }
   0xb   :  { %1148 = vmatmul.mubr.msk.f32.vlgmr.msra.gmra.mrb[0].mxu0 %vm69_vm1, %v44_v17  ;;  %1269 = vmatprep.subr.bf16.mxu1 %v1362_v0 }
   0xc   :  { %1265 = vmatpush3.bf16.msra.mxu0 %v1264_v18  ;;  %1150 = vmatprep.mubr.msk.f32.mxu0 %vm1363_vm0, %v1364_v4 }
   0xd   :  { %1266 = vmatprep.subr.bf16.mxu0 %v1362_v0  ;;  %1165 = vmatmul.mubr.msk.f32.vlgmr.msra.gmra.mrb[0].mxu1 %vm69_vm1, %v44_v17 }
   0xe   :  { %1167 = vmatprep.mubr.msk.f32.mxu1 %vm1363_vm0, %v1364_v4  ;;  %1271 = vmatpush3.bf16.msra.mxu1 %v1264_v18 }
   0xf   :  { %1151 = vmatmul.mubr.msk.f32.gmra.mrb[2].mxu0 %vm69_vm1, %v45_v22  ;;  %1272 = vmatprep.subr.bf16.mxu1 %v1362_v0 }
  0x10   :  { %1153 = vmatprep.mubr.msk.f32.mxu0 %vm1363_vm0, %v1364_v4  ;;  %1268 = vmatpush3.bf16.msra.mxu0 %v1267_v23 }
  0x11   :  { %1275 = vmatprep.subr.bf16.mxu0 %v1362_v0  ;;  %1168 = vmatmul.mubr.msk.f32.gmra.mrb[2].mxu1 %vm69_vm1, %v45_v22 }
  0x12   :  { %1170 = vmatprep.mubr.msk.f32.mxu1 %vm1363_vm0, %v1364_v4  ;;  %1274 = vmatpush3.bf16.msra.mxu1 %v1267_v23 }
  0x13   :  { %1154 = vmatmul.mubr.msk.f32.gmra.mrb[4].mxu0 %vm69_vm1, %v46_v24  ;;  %1281 = vmatprep.subr.bf16.mxu1 %v1362_v0 }
  0x14   :  { %1181 = vmatprep.mubr.msk.f32.mxu0 %vm1363_vm0, %v1364_v4 }
  0x15   :  { %1171 = vmatmul.mubr.msk.f32.gmra.mrb[4].mxu1 %vm69_vm1, %v46_v24 }
  0x16   :  { %1192 = vmatprep.mubr.msk.f32.mxu1 %vm1363_vm0, %v1364_v4 }
  0x17   :  { %1182 = vmatmul.mubr.f32.vlgmr.msra.gmra.mrb[6].mxu0 %v1364_v4 }
  0x18   :  { %1277 = vmatpush3.bf16.msra.mxu0 %v1264_v18  ;;  %1203 = vmatprep.mubr.msk.f32.mxu0 %vm1363_vm0, %v1364_v4 }
  0x19   :  { %1278 = vmatprep.subr.bf16.mxu0 %v1362_v0 }
  0x1c   :  { %1280 = vmatpush3.bf16.msra.mxu0 %v1267_v23 }
  0x1d   :  { %1287 = vmatprep.subr.bf16.mxu0 %v1362_v0 }
  0x77   :  { %v1535_v30 = vpop.permute.xlu0 %340 }
  0x7b   :  { %v1542_v40 = vpop.permute.xlu0 %382 }
  0xde   :  { %v145_v26 = vpop.f32.mrb[0].mxu0 }
  0xdf   :  { %v146_v27 = vadd.f32 %v1064_v25, %v145_v26  ;;  %v1149_v28 = vpop.f32.mrb[1].mxu0 }
  0xe0   :  { %v235_v34 = vpop.f32.mrb[0].mxu1 }
  0xe1   :  { %160 = vst.msk [vmem:[#allocation2] sm:$0xff] %vm159_vm2, %v146_v27  ;;  %v236_v35 = vadd.f32 %v1068_v31, %v235_v34  ;;  %v1166_v36 = vpop.f32.mrb[1].mxu1 }
  0xe2   :  { %v150_v29 = vpop.f32.mrb[2].mxu0 }
  0xe3   :  { %v151_v32 = vadd.f32 %v1064_v25, %v150_v29  ;;  %v1152_v33 = vpop.f32.mrb[3].mxu0  ;;  %249 = vst.msk [vmem:[#allocation3] sm:$0xff] %vm159_vm2, %v236_v35 }
  0xe4   :  { %v240_v41 = vpop.f32.mrb[2].mxu1 }
  0xe5   :  { %161 = vst.msk [vmem:[#allocation2 + $0x8] sm:$0xff] %vm159_vm2, %v151_v32  ;;  %v241_v42 = vadd.f32 %v1068_v31, %v240_v41  ;;  %v1169_v43 = vpop.f32.mrb[3].mxu1 }
  0xe6   :  { %v155_v37 = vpop.f32.mrb[4].mxu0 }
  0xe7   :  { %v156_v38 = vadd.f32 %v1064_v25, %v155_v37  ;;  %v1155_v39 = vpop.f32.mrb[5].mxu0  ;;  %250 = vst.msk [vmem:[#allocation3 + $0x8] sm:$0xff] %vm159_vm2, %v241_v42 }
  0xe8   :  { %v245_v47 = vpop.f32.mrb[4].mxu1  ;;  %v325_v51 = vld [vmem:[#allocation2] sm:$0xff] }
  0xe9   :  { %162 = vst.msk [vmem:[#allocation2 + $0x10] sm:$0xff] %vm159_vm2, %v156_v38  ;;  %v246_v49 = vadd.f32 %v1068_v31, %v245_v47  ;;  %v1172_v50 = vpop.f32.mrb[5].mxu1 }
  0xea   :  { %v321_v44 = vpop.f32.mrb[6].mxu0 }
  0xeb   :  { %v385_v45 = vadd.f32 %v1542_v40, %v321_v44  ;;  %367 = vrot.lane.b32.xlu1 %v321_v44, %s1366_s7  ;;  %v1183_v46 = vpop.f32.mrb[7].mxu0  ;;  %v343_v48 = vadd.f32 %v1535_v30, %v321_v44  ;;  %251 = vst.msk [vmem:[#allocation3 + $0x10] sm:$0xff] %vm159_vm2, %v246_v49  ;;  %v328_v52 = vadd.f32 %v325_v51, %v321_v44 }
  0xec   :  { %v496_v29 = vld [vmem:[#allocation2 + $0x8] sm:$0xff] }
  0xed   :  { %387 = vrot.lane.b32.xlu0 %v385_v45, %s1367_s2  ;;  %v1072_v53 = vmul.f32 -1.442695, %v328_v52 }
  0xee   :  { %v498_v35 = vld [vmem:[#allocation3 + $0x8] sm:$0xff] }
  0xef   :  { %345 = vrot.lane.b32.xlu1 %v343_v48, %s1368_s4  ;;  %1308 = vpow2.f32 %v1072_v53 }
  0xf2   :  { %v327_v56 = vld [vmem:[#allocation3 + $0x10] sm:$0xff] }
  0xf9   :  { %v1309_v54 = vpop.eup %1308 }
  0xfa   :  { %v332_v55 = vadd.f32 1.0, %v1309_v54 }
  0xfc   :  { %1310 = vrcp.f32 %v332_v55 }
 0x106   :  { %v1311_v60 = vpop.eup %1310 }
 0x15d   :  { %v368_v57 = vpop.permute.xlu1 %367 }
 0x15e   :  { %v370_v58 = vadd.f32 %v368_v57, %v327_v56 }
 0x15f   :  { %v388_v3 = vpop.permute.xlu0 %387 }
 0x160   :  { %v1074_v59 = vmul.f32 -1.442695, %v370_v58 }
 0x161   :  { %v346_v61 = vpop.permute.xlu1 %345 }
 0x162   :  { %1312 = vpow2.f32 %v1074_v59  ;;  %v348_v62 = vmul.f32 %v1311_v60, %v346_v61 }
 0x164   :  { %350 = vrot.lane.b32.xlu1 %v348_v62, %s1365_s25 }
 0x16c   :  { %v1313_v63 = vpop.eup %1312 }
 0x16d   :  { %v374_v1 = vadd.f32 1.0, %v1313_v63 }
 0x16f   :  { %1314 = vrcp.f32 %v374_v1 }
 0x179   :  { %v1315_v2 = vpop.eup %1314 }
 0x17a   :  { %v390_v5 = vmul.f32 %v1315_v2, %v388_v3 }
 0x17c   :  { %392 = vrot.lane.b32.xlu0 %v390_v5, %s1365_s25 }
 0x1d6   :  { %v351_v6 = vpop.permute.xlu1 %350 }
 0x1d7   :  { %v353_v7 = vadd.f32 %v351_v6, %v325_v51 }
 0x1d9   :  { %1316 = vtanh.f32 %v353_v7 }
 0x1e3   :  { %v1317_v8 = vpop.eup %1316 }
 0x1e4   :  { %v355_v9 = vsub.f32 0.0, %v1317_v8 }
 0x1e6   :  { %357 = vrot.lane.b32.xlu1 %v355_v9, %s1369_s24 }
 0x1ee   :  { %v393_v10 = vpop.permute.xlu0 %392 }
 0x1ef   :  { %v395_v11 = vadd.f32 %v393_v10, %v327_v56  ;;  %v653_v10 = vld [vmem:[#allocation2 + $0x10] sm:$0xff] }
 0x1f1   :  { %1318 = vtanh.f32 %v395_v11 }
 0x1fb   :  { %v1319_v12 = vpop.eup %1318 }
 0x1fc   :  { %v397_v13 = vsub.f32 0.0, %v1319_v12 }
 0x1fe   :  { %399 = vrot.lane.b32.xlu0 %v397_v13, %s1369_s24 }
 0x258   :  { %v358_v14 = vpop.permute.xlu1 %357 }
 0x259   :  { %v360_v15 = vmul.f32 %v1311_v60, %v358_v14 }
 0x25b   :  { %362 = vrot.lane.b32.xlu1 %v360_v15, %s1370_s26  ;;  %v654_v15 = vld [vmem:[#allocation3] sm:$0xff] }
 0x270   :  { %v400_v16 = vpop.permute.xlu0 %399 }
 0x271   :  { %v402_v17 = vmul.f32 %v1315_v2, %v400_v16 }
 0x273   :  { %404 = vrot.lane.b32.xlu0 %v402_v17, %s1370_s26 }
 0x2cd   :  { %v363_v18 = vpop.permute.xlu1 %362 }
 0x2ce   :  { %v365_v19 = vadd.f32 %v1317_v8, %v363_v18 }
 0x2d0   :  { %409 = vrot.lane.b32.xlu1 %v365_v19, %s1368_s4 }
 0x2e5   :  { %v405_v20 = vpop.permute.xlu0 %404 }
 0x2e6   :  { %v407_v21 = vadd.f32 %v1319_v12, %v405_v20 }
 0x2e8   :  { %415 = vrot.lane.b32.xlu0 %v407_v21, %s1369_s24 }
 0x342   :  { %v410_v22 = vpop.permute.xlu1 %409 }
 0x343   :  { %413 = vst.msk [vmem:[#allocation4] sm:$0xff] %vm412_vm3, %v410_v22 }
 0x35a   :  { %v416_v23 = vpop.permute.xlu0 %415 }
 0x35b   :  { %420 = vst.msk [vmem:[#allocation4 + $0x10] sm:$0xff] %vm419_vm4, %v416_v23  ;;  %v421_v24 = vsel %vm412_vm3, %v410_v22, %v416_v23 }
 0x35c   :  { %1193 = vmatmul.mubr.msk.f32.vlgmr.msra.gmra.mrb[6].mxu1 %vm69_vm1, %v421_v24 }
 0x35d   :  { %1214 = vmatprep.mubr.msk.f32.mxu1 %vm1363_vm0, %v1364_v4 }
 0x42f   :  { %v491_v25 = vpop.f32.mrb[6].mxu1 }
 0x430   :  { %534 = vrot.lane.b32.xlu0 %v491_v25, %s1366_s7  ;;  %v1194_v26 = vpop.f32.mrb[7].mxu1  ;;  %v506_v27 = vadd.f32 %v491_v25, %v1535_v30  ;;  %v544_v28 = vadd.f32 %v491_v25, %v1542_v40  ;;  %v499_v31 = vadd.f32 %v496_v29, %v491_v25 }
 0x432   :  { %508 = vrot.lane.b32.xlu1 %v506_v27, %s1368_s4  ;;  %v1077_v32 = vmul.f32 -1.442695, %v499_v31 }
 0x434   :  { %1320 = vpow2.f32 %v1077_v32 }
 0x436   :  { %546 = vrot.lane.b32.xlu1 %v544_v28, %s1367_s2 }
 0x43e   :  { %v1321_v33 = vpop.eup %1320 }
 0x43f   :  { %v503_v34 = vadd.f32 1.0, %v1321_v33 }
 0x441   :  { %1322 = vrcp.f32 %v503_v34 }
 0x44b   :  { %v1323_v38 = vpop.eup %1322 }
 0x4a2   :  { %v535_v36 = vpop.permute.xlu0 %534 }
 0x4a3   :  { %v537_v37 = vadd.f32 %v535_v36, %v498_v35 }
 0x4a4   :  { %v509_v39 = vpop.permute.xlu1 %508 }
 0x4a5   :  { %v1078_v41 = vmul.f32 -1.442695, %v537_v37  ;;  %v511_v42 = vmul.f32 %v1323_v38, %v509_v39  ;;  %v733_v39 = vld [vmem:[%s1700_s8] sm:$0xff] }
 0x4a7   :  { %1324 = vpow2.f32 %v1078_v41  ;;  %513 = vrot.lane.b32.xlu0 %v511_v42, %s1365_s25  ;;  %v734_v41 = vld [vmem:[%s1700_s8 + $0x8] sm:$0xff] }
 0x4a8   :  { %v547_v46 = vpop.permute.xlu1 %546  ;;  %v1282_v42 = vpack.c.bf16 %v734_v41, %v733_v39 }
 0x4aa   :  { %1283 = vmatpush3.bf16.msra.mxu1 %v1282_v42 }
 0x4ab   :  { %1284 = vmatprep.subr.bf16.mxu1 %v1362_v0 }
 0x4b1   :  { %v1325_v43 = vpop.eup %1324 }
 0x4b2   :  { %v541_v44 = vadd.f32 1.0, %v1325_v43  ;;  %v735_v43 = vld [vmem:[%s1700_s8 + $0x10] sm:$0xff] }
 0x4b4   :  { %1326 = vrcp.f32 %v541_v44  ;;  %v736_v44 = vld [vmem:[%s1700_s8 + $0x18] sm:$0xff] }
 0x4be   :  { %v1327_v45 = vpop.eup %1326 }
 0x4bf   :  { %v549_v47 = vmul.f32 %v1327_v45, %v547_v46 }
 0x4c1   :  { %551 = vrot.lane.b32.xlu1 %v549_v47, %s1365_s25 }
 0x519   :  { %v514_v48 = vpop.permute.xlu0 %513 }
 0x51a   :  { %v516_v49 = vadd.f32 %v514_v48, %v496_v29 }
 0x51c   :  { %1328 = vtanh.f32 %v516_v49 }
 0x526   :  { %v1329_v50 = vpop.eup %1328 }
 0x527   :  { %519 = vrot.lane.b32.xlu0 %v1329_v50, %s1368_s4 }
 0x533   :  { %v552_v51 = vpop.permute.xlu1 %551 }
 0x534   :  { %v554_v52 = vadd.f32 %v552_v51, %v498_v35 }
 0x536   :  { %1330 = vtanh.f32 %v554_v52 }
 0x540   :  { %v1331_v53 = vpop.eup %1330 }
 0x541   :  { %557 = vrot.lane.b32.xlu1 %v1331_v53, %s1369_s24 }
 0x599   :  { %v520_v54 = vpop.permute.xlu0 %519 }
 0x59a   :  { %v522_v55 = vsub.f32 %v421_v24, %v520_v54  ;;  %v738_v54 = vld [vmem:[%s1701_s10] sm:$0xff] }
 0x59c   :  { %524 = vrot.lane.b32.xlu0 %v522_v55, %s1370_s26  ;;  %v739_v55 = vld [vmem:[%s1701_s10 + $0x8] sm:$0xff] }
 0x5b3   :  { %v558_v56 = vpop.permute.xlu1 %557 }
 0x5b4   :  { %v560_v57 = vsub.f32 %v421_v24, %v558_v56 }
 0x5b6   :  { %v561_v58 = vmul.f32 %v1327_v45, %v560_v57  ;;  %v1285_v45 = vpack.c.bf16 %v736_v44, %v735_v43  ;;  %v1288_v57 = vpack.c.bf16 %v739_v55, %v738_v54  ;;  %v1089_v55 = vld [vmem:[%s1704_s12] ss:$0 sm:$0xff] }
 0x5b8   :  { %563 = vrot.lane.b32.xlu0 %v561_v58, %s1370_s26  ;;  %1286 = vmatpush3.bf16.msra.mxu1 %v1285_v45  ;;  %v740_v58 = vld [vmem:[%s1701_s10 + $0x10] sm:$0xff] }
 0x5b9   :  { %1293 = vmatprep.subr.bf16.mxu1 %v1362_v0 }
 0x60e   :  { %v525_v59 = vpop.permute.xlu0 %524 }
 0x60f   :  { %v527_v60 = vmul.f32 %v1323_v38, %v525_v59  ;;  %v741_v59 = vld [vmem:[%s1701_s10 + $0x18] sm:$0xff] }
 0x611   :  { %529 = vrot.lane.b32.xlu1 %v527_v60, %s1370_s26  ;;  %v1291_v60 = vpack.c.bf16 %v741_v59, %v740_v58 }
 0x62a   :  { %v564_v61 = vpop.permute.xlu0 %563 }
 0x62b   :  { %v566_v62 = vadd.f32 %v1331_v53, %v564_v61  ;;  %v1082_v61 = vld [vmem:[%s1702_s9] ss:$0 sm:$0xff] }
 0x62d   :  { %574 = vrot.lane.b32.xlu0 %v566_v62, %s1369_s24 }
 0x683   :  { %v530_v63 = vpop.permute.xlu1 %529 }
 0x684   :  { %v532_v1 = vadd.f32 %v1329_v50, %v530_v63 }
 0x686   :  { %568 = vrot.lane.b32.xlu1 %v532_v1, %s1368_s4 }
 0x69f   :  { %v575_v2 = vpop.permute.xlu0 %574 }
 0x6f8   :  { %v569_v3 = vpop.permute.xlu1 %568 }
 0x6f9   :  { %572 = vst.msk [vmem:[#allocation4 + $0x8] sm:$0xff] %vm412_vm3, %v569_v3  ;;  %v578_v5 = vsel %vm412_vm3, %v569_v3, %v575_v2 }
 0x6fa   :  { %577 = vst.msk [vmem:[#allocation4 + $0x8] sm:$0xff] %vm419_vm4, %v575_v2  ;;  %1204 = vmatmul.mubr.msk.f32.vlgmr.msra.gmra.mrb[8].mxu0 %vm69_vm1, %v578_v5 }
 0x6fb   :  { %1231 = vmatprep.mubr.msk.f32.mxu0 %vm1363_vm0, %v1364_v4  ;;  %1289 = vmatpush3.bf16.msra.mxu0 %v1288_v57 }
 0x6fc   :  { %1290 = vmatprep.subr.bf16.mxu0 %v1362_v0 }
 0x6ff   :  { %1292 = vmatpush3.bf16.msra.mxu0 %v1291_v60 }
 0x701   :  { %v1621_v52 = vld [vmem:[#allocation4 + $0x8] sm:$0xff] }
 0x7cd   :  { %v648_v6 = vpop.f32.mrb[8].mxu0 }
 0x7ce   :  { %690 = vrot.lane.b32.xlu0 %v648_v6, %s1366_s7  ;;  %v1205_v7 = vpop.f32.mrb[9].mxu0  ;;  %v662_v8 = vadd.f32 %v648_v6, %v1535_v30  ;;  %v700_v9 = vadd.f32 %v648_v6, %v1542_v40  ;;  %v655_v11 = vadd.f32 %v653_v10, %v648_v6 }
 0x7d0   :  { %664 = vrot.lane.b32.xlu1 %v662_v8, %s1368_s4  ;;  %v1080_v12 = vmul.f32 -1.442695, %v655_v11 }
 0x7d2   :  { %1332 = vpow2.f32 %v1080_v12  ;;  %v963_v12 = vld [vmem:[%s1703_s11] sm:$0xff] }
 0x7d4   :  { %702 = vrot.lane.b32.xlu1 %v700_v9, %s1367_s2 }
 0x7dc   :  { %v1333_v13 = vpop.eup %1332 }
 0x7dd   :  { %v659_v14 = vadd.f32 1.0, %v1333_v13  ;;  %v964_v13 = vld [vmem:[%s1703_s11 + $0x8] sm:$0xff] }
 0x7df   :  { %1334 = vrcp.f32 %v659_v14  ;;  %v1294_v14 = vpack.c.bf16 %v964_v13, %v963_v12 }
 0x7e9   :  { %v1335_v18 = vpop.eup %1334 }
 0x840   :  { %v691_v16 = vpop.permute.xlu0 %690 }
 0x841   :  { %v693_v17 = vadd.f32 %v691_v16, %v654_v15 }
 0x842   :  { %v665_v19 = vpop.permute.xlu1 %664 }
 0x843   :  { %v1081_v20 = vmul.f32 -1.442695, %v693_v17  ;;  %v667_v30 = vmul.f32 %v1335_v18, %v665_v19  ;;  %v966_v17 = vld [vmem:[%s1703_s11 + $0x18] sm:$0xff] }
 0x845   :  { %1336 = vpow2.f32 %v1081_v20  ;;  %669 = vrot.lane.b32.xlu0 %v667_v30, %s1365_s25 }
 0x846   :  { %v703_v23 = vpop.permute.xlu1 %702 }
 0x84f   :  { %v1337_v40 = vpop.eup %1336 }
 0x850   :  { %v697_v21 = vadd.f32 1.0, %v1337_v40 }
 0x852   :  { %1338 = vrcp.f32 %v697_v21 }
 0x85c   :  { %v1339_v22 = vpop.eup %1338 }
 0x85d   :  { %v705_v24 = vmul.f32 %v1339_v22, %v703_v23 }
 0x85f   :  { %707 = vrot.lane.b32.xlu1 %v705_v24, %s1365_s25 }
 0x8b7   :  { %v670_v25 = vpop.permute.xlu0 %669 }
 0x8b8   :  { %v672_v26 = vadd.f32 %v670_v25, %v653_v10 }
 0x8ba   :  { %1340 = vtanh.f32 %v672_v26 }
 0x8c4   :  { %v1341_v27 = vpop.eup %1340 }
 0x8c5   :  { %675 = vrot.lane.b32.xlu0 %v1341_v27, %s1368_s4 }
 0x8d1   :  { %v708_v28 = vpop.permute.xlu1 %707 }
 0x8d2   :  { %v710_v29 = vadd.f32 %v708_v28, %v654_v15 }
 0x8d4   :  { %1342 = vtanh.f32 %v710_v29 }
 0x8de   :  { %v1343_v31 = vpop.eup %1342 }
 0x8df   :  { %713 = vrot.lane.b32.xlu1 %v1343_v31, %s1369_s24 }
 0x937   :  { %v676_v32 = vpop.permute.xlu0 %675 }
 0x938   :  { %v678_v33 = vsub.f32 %v578_v5, %v676_v32 }
 0x93a   :  { %680 = vrot.lane.b32.xlu0 %v678_v33, %s1370_s26 }
 0x951   :  { %v714_v34 = vpop.permute.xlu1 %713 }
 0x952   :  { %v716_v35 = vsub.f32 %v578_v5, %v714_v34 }
 0x954   :  { %v717_v36 = vmul.f32 %v1339_v22, %v716_v35 }
 0x956   :  { %719 = vrot.lane.b32.xlu1 %v717_v36, %s1370_s26 }
 0x9ac   :  { %v681_v37 = vpop.permute.xlu0 %680 }
 0x9ad   :  { %v683_v38 = vmul.f32 %v1335_v18, %v681_v37 }
 0x9af   :  { %685 = vrot.lane.b32.xlu0 %v683_v38, %s1370_s26 }
 0x9c8   :  { %v720_v46 = vpop.permute.xlu1 %719 }
 0x9c9   :  { %v722_v47 = vadd.f32 %v1343_v31, %v720_v46 }
 0x9cb   :  { %729 = vrot.lane.b32.xlu1 %v722_v47, %s1369_s24 }
 0xa21   :  { %v686_v48 = vpop.permute.xlu0 %685 }
 0xa22   :  { %v688_v49 = vadd.f32 %v1341_v27, %v686_v48 }
 0xa24   :  { %724 = vrot.lane.b32.xlu0 %v688_v49, %s1368_s4 }
 0xa3d   :  { %v730_v50 = vpop.permute.xlu1 %729 }
 0xa3e   :  { %732 = vst.msk [vmem:[#allocation4] sm:$0xff] %vm419_vm4, %v730_v50 }
 0xa45   :  { %v1615_v51 = vld [vmem:[#allocation4] sm:$0xff] }
 0xa46   :  { %1215 = vmatmul.mubr.msk.f32.vlgmr.msra.gmra.mrb[8].mxu1 %vm69_vm1, %v1615_v51 }
 0xa47   :  { %1217 = vmatprep.mubr.msk.f32.mxu1 %vm1363_vm0, %v1364_v4  ;;  %1295 = vmatpush3.bf16.msra.mxu1 %v1294_v14 }
 0xa48   :  { %1296 = vmatprep.subr.bf16.mxu1 %v1362_v0 }
 0xa4a   :  { %1218 = vmatmul.mubr.msk.f32.gmra.mrb[10].mxu1 %vm69_vm1, %v1621_v52 }
 0xa4b   :  { %1220 = vmatprep.mubr.msk.f32.mxu1 %vm1363_vm0, %v1364_v4 }
 0xa96   :  { %v725_v53 = vpop.permute.xlu0 %724 }
 0xa97   :  { %727 = vst.msk [vmem:[#allocation4 + $0x10] sm:$0xff] %vm412_vm3, %v725_v53 }
 0xa9e   :  { %v1634_v56 = vld [vmem:[#allocation4 + $0x10] sm:$0xff] }
 0xa9f   :  { %1221 = vmatmul.mubr.msk.f32.gmra.mrb[12].mxu1 %vm69_vm1, %v1634_v56 }
 0xaa0   :  { %1248 = vmatprep.mubr.msk.f32.mxu1 %vm1363_vm0, %v1364_v4 }
 0xb19   :  { %v826_v62 = vpop.f32.mrb[8].mxu1 }
 0xb1a   :  { %v827_v63 = vadd.f32 %v1082_v61, %v826_v62  ;;  %v1216_v1 = vpop.f32.mrb[9].mxu1 }
 0xb1c   :  { %1344 = vtanh.f32 %v827_v63 }
 0xb1d   :  { %v831_v2 = vpop.f32.mrb[10].mxu1 }
 0xb1e   :  { %v832_v3 = vadd.f32 %v1082_v61, %v831_v2  ;;  %v1219_v5 = vpop.f32.mrb[11].mxu1 }
 0xb20   :  { %1346 = vtanh.f32 %v832_v3 }
 0xb26   :  { %v1345_v6 = vpop.eup %1344 }
 0xb27   :  { %1232 = vmatmul.mubr.msk.f32.vlgmr.msra.gmra.mrb[10].mxu0 %vm69_vm1, %v1345_v6 }
 0xb28   :  { %1234 = vmatprep.mubr.msk.f32.mxu0 %vm1363_vm0, %v1364_v4 }
 0xb2a   :  { %v1347_v7 = vpop.eup %1346 }
 0xb2b   :  { %1235 = vmatmul.mubr.msk.f32.gmra.mrb[12].mxu0 %vm69_vm1, %v1347_v7 }
 0xb2c   :  { %1237 = vmatprep.mubr.msk.f32.mxu0 %vm1363_vm0, %v1364_v4  ;;  %v965_v4 = vld [vmem:[%s1703_s11 + $0x10] sm:$0xff] }
 0xb2d   :  { %v1297_v18 = vpack.c.bf16 %v966_v17, %v965_v4 }
 0xb2f   :  { %1298 = vmatpush3.bf16.msra.mxu1 %v1297_v18 }
 0xb72   :  { %v836_v8 = vpop.f32.mrb[12].mxu1 }
 0xb73   :  { %v837_v9 = vadd.f32 %v1082_v61, %v836_v8  ;;  %v1222_v10 = vpop.f32.mrb[13].mxu1 }
 0xb75   :  { %1348 = vtanh.f32 %v837_v9 }
 0xb7f   :  { %v1349_v11 = vpop.eup %1348 }
 0xb80   :  { %1238 = vmatmul.mubr.msk.f32.gmra.mrb[14].mxu0 %vm69_vm1, %v1349_v11 }
 0xbfa   :  { %v918_v15 = vpop.f32.mrb[10].mxu0 }
 0xbfb   :  { %v1233_v16 = vpop.f32.mrb[11].mxu0  ;;  %v932_v20 = vsel %vm69_vm1, %v918_v15, -inf }
 0xbfe   :  { %v923_v19 = vpop.f32.mrb[12].mxu0 }
 0xbff   :  { %v933_v30 = vsel %vm69_vm1, %v923_v19, -inf  ;;  %v1236_v40 = vpop.f32.mrb[13].mxu0 }
 0xc00   :  { %v935_v21 = vmax.f32 %v932_v20, %v933_v30 }
 0xc53   :  { %v928_v22 = vpop.f32.mrb[14].mxu0 }
 0xc54   :  { %v934_v0 = vsel %vm69_vm1, %v928_v22, -inf  ;;  %v1239_v23 = vpop.f32.mrb[15].mxu0 }
 0xc55   :  { %v936_v24 = vmax.f32 %v935_v21, %v934_v0 }
 0xc57   :  { %v937_v25 = vsub.f32 %v918_v15, %v936_v24  ;;  %v938_v26 = vsub.f32 %v923_v19, %v936_v24  ;;  %v939_v27 = vsub.f32 %v928_v22, %v936_v24 }
 0xc59   :  { %v940_v28 = vmul.f32 1.442695, %v937_v25  ;;  %v942_v29 = vmul.f32 1.442695, %v938_v26  ;;  %v944_v31 = vmul.f32 1.442695, %v939_v27 }
 0xc5b   :  { %1350 = vpow2.f32 %v940_v28 }
 0xc5c   :  { %1352 = vpow2.f32 %v942_v29 }
 0xc5d   :  { %1354 = vpow2.f32 %v944_v31 }
 0xc65   :  { %v1351_v32 = vpop.eup %1350 }
 0xc66   :  { %v1353_v33 = vpop.eup %1352  ;;  %v946_v34 = vsel %vm69_vm1, %v1351_v32, 0.0 }
 0xc67   :  { %v1355_v35 = vpop.eup %1354  ;;  %v947_v36 = vsel %vm69_vm1, %v1353_v33, 0.0 }
 0xc68   :  { %v948_v37 = vadd.f32 %v947_v36, %v946_v34  ;;  %v949_v38 = vsel %vm69_vm1, %v1355_v35, 0.0 }
 0xc6a   :  { %v950_v39 = vadd.f32 %v949_v38, %v948_v37 }
 0xc6c   :  { %1356 = vrcp.f32 %v950_v39 }
 0xc76   :  { %v1357_v41 = vpop.eup %1356 }
 0xc77   :  { %v952_v42 = vmul.f32 %v1357_v41, %v1351_v32  ;;  %v953_v43 = vmul.f32 %v1357_v41, %v1353_v33  ;;  %v954_v44 = vmul.f32 %v1357_v41, %v1355_v35 }
 0xc79   :  { %v955_v45 = vmul.f32 %v952_v42, %v1615_v51  ;;  %v956_v46 = vmul.f32 %v953_v43, %v1621_v52  ;;  %v957_v47 = vmul.f32 %v954_v44, %v1634_v56 }
 0xc7b   :  { %v958_v48 = vsel %vm69_vm1, %v955_v45, 0.0  ;;  %v959_v49 = vsel %vm69_vm1, %v956_v46, 0.0  ;;  %v961_v53 = vsel %vm69_vm1, %v957_v47, 0.0 }
 0xc7c   :  { %v960_v50 = vadd.f32 %v959_v49, %v958_v48 }
 0xc7e   :  { %v962_v54 = vadd.f32 %v961_v53, %v960_v50 }
 0xc80   :  { %1249 = vmatmul.mubr.msk.f32.vlgmr.msra.gmra.mrb[14].mxu1 %vm69_vm1, %v962_v54 }
 0xd53   :  { %v1043_v57 = vpop.f32.mrb[14].mxu1 }
 0xd54   :  { %v1044_v51 = vadd.f32 %v1089_v55, %v1043_v57  ;;  %v1250_v52 = vpop.f32.mrb[15].mxu1 }
 0xd56   :  { %v1048_v56 = vsel %vm1047_vm5, %v1044_v51, -inf }
 0xd57   :  { %1049 = vmax.xlane.f32.xlu1 %v1048_v56 }
 0xde4   :  { %v1050_v58 = vpop.xlane.xlu1 %1049 }
 0xde5   :  { %v1051_v59 = vsub.f32 %v1044_v51, %v1050_v58 }
 0xde7   :  { %v1052_v60 = vmul.f32 1.442695, %v1051_v59 }
 0xde9   :  { %1358 = vpow2.f32 %v1052_v60 }
 0xdf3   :  { %v1359_v61 = vpop.eup %1358 }
 0xdf4   :  { %v1054_v62 = vsel %vm1047_vm5, %v1359_v61, 0.0 }
 0xdf5   :  { %1055 = vadd.xlane.f32.xlu0 %v1054_v62 }
 0xe82   :  { %v1056_v63 = vpop.xlane.xlu0 %1055 }
 0xe83   :  { %1360 = vrcp.f32 %v1056_v63 }
 0xe8d   :  { %v1361_v1 = vpop.eup %1360 }
 0xe8e   :  { %v1058_v2 = vmul.f32 %v1361_v1, %v1359_v61 }
 0xe90   :  { %1059 = vst.msk [vmem:[%s1705_s13] sm:$0xff] %vm1047_vm5, %v1058_v2 }

// kernel: han_forward.2
= control target key start
LH: loop header
LB: loop body
LE: loop exit
PB: predicated region body
PF: predicated region fallthrough
CT: control target
= control target key end

     0   :  { %vm71_vm0 = vcmask 130048   ;;  %v2710_v11 = vmov 0.0|0.0   ;;  %s2711_s14 = smov 32   ;;  %s2712_s18 = smov 80   ;;  %vm2713_vm1 = vmmov 0   ;;  %v2714_v23 = vmov 0.0   ;;  %s3402_s3 = inlined_call_operand.vmem [shape: f32[16,48], index: 3, kind: input, shape index: {}]   ;;  %s3403_s0 = inlined_call_operand.vmem [shape: f32[8,8,16], index: 0, kind: input, shape index: {}]   ;;  %s3404_s7 = inlined_call_operand.vmem [shape: f32[32,96], index: 7, kind: input, shape index: {}]   ;;  %s3405_s5 = inlined_call_operand.vmem [shape: f32[16,48], index: 5, kind: input, shape index: {}]   ;;  %s3406_s8 = inlined_call_operand.vmem [shape: f32[1,16], index: 8, kind: input, shape index: {}]   ;;  %s3407_s9 = inlined_call_operand.vmem [shape: f32[1,16], index: 9, kind: input, shape index: {}]   ;;  %s3408_s4 = inlined_call_operand.vmem [shape: f32[1,48], index: 4, kind: input, shape index: {}]   ;;  %s3409_s6 = inlined_call_operand.vmem [shape: f32[1,48], index: 6, kind: input, shape index: {}]   ;;  %s3410_s1 = inlined_call_operand.vmem [shape: s32[8,1], index: 1, kind: input, shape index: {}]   ;;  %s3411_s2 = inlined_call_operand.vmem [shape: s32[8,1], index: 2, kind: input, shape index: {}]   ;;  %s3412_s10 = inlined_call_operand.vmem [shape: f32[32,32], index: 10, kind: input, shape index: {}]   ;;  %s3413_s12 = inlined_call_operand.vmem [shape: f32[32,32], index: 12, kind: input, shape index: {}]   ;;  %s3414_s11 = inlined_call_operand.vmem [shape: f32[1,32], index: 11, kind: input, shape index: {}]   ;;  %s3415_s13 = inlined_call_operand.vmem [shape: f32[8,32], index: 13, kind: output, shape index: {}]  }
   0x1   :  { %v53_v0 = vld [vmem:[%s3402_s3] sm:$0xff]  ;;  %v54_v1 = vld [vmem:[%s3402_s3 + $0x8] sm:$0xff]  ;;  %v46_v8 = vld [vmem:[%s3403_s0 + $0x10] sm:$0xff]  ;;  %vm201_vm2 = vcmask 392192   ;;  %s2718_s28 = smov 112   ;;  %vm510_vm7 = vcmask 261248  }
   0x2   :  { %v44_v2 = vld [vmem:[%s3403_s0] sm:$0xff]  ;;  %v2496_v3 = vpack.c.bf16 %v54_v1, %v53_v0  ;;  %v60_v5 = vld [vmem:[%s3404_s7 + $0x8] sm:$0xff]  ;;  %v61_v9 = vld [vmem:[%s3404_s7 + $0x10] sm:$0xff]  ;;  %vm329_vm8 = vcmask 261120  }
   0x3   :  { %2340 = vmatprep.mubr.msk.f32.mxu0 %vm71_vm0, %v44_v2  ;;  %v59_v4 = vld [vmem:[%s3404_s7] sm:$0xff]  ;;  %2356 = vmatprep.mubr.msk.f32.mxu1 %vm71_vm0, %v44_v2  ;;  %v45_v6 = vld [vmem:[%s3403_s0 + $0x8] sm:$0xff]  ;;  %v62_v12 = vld [vmem:[%s3404_s7 + $0x18] sm:$0xff] }
   0x4   :  { %2497 = vmatprep.subr.bf16.mxu0 %v2496_v3  ;;  %v2810_v7 = vpack.c.bf16 %v60_v5, %v59_v4  ;;  %v56_v10 = vld [vmem:[%s3405_s5] sm:$0xff]  ;;  %v57_v13 = vld [vmem:[%s3405_s5 + $0x8] sm:$0xff]  ;;  %v47_v17 = vld [vmem:[%s3403_s0 + $0x18] sm:$0xff]  ;;  %v2841_v18 = vpack.c.bf16 %v62_v12, %v61_v9 }
   0x5   :  { %2499 = vmatpush3.bf16.msra.mxu0 %v2496_v3  ;;  %v2211_v14 = vld [vmem:[%s3406_s8] ss:$0 sm:$0xff]  ;;  %v2500_v15 = vpack.c.bf16 %v57_v13, %v56_v10  ;;  %v49_v20 = vld [vmem:[%s3403_s0 + $0x28] sm:$0xff]  ;;  %v50_v21 = vld [vmem:[%s3403_s0 + $0x30] sm:$0xff] }
   0x6   :  { %2504 = vmatprep.subr.bf16.mxu0 %v2710_v11  ;;  %418 = vrot.lane.b32.xlu0 %v2211_v14, %s2711_s14  ;;  %v2213_v16 = vld [vmem:[%s3407_s9] ss:$0 sm:$0xff]  ;;  %v51_v22 = vld [vmem:[%s3403_s0 + $0x38] sm:$0xff] }
   0x7   :  { %v48_v19 = vld [vmem:[%s3403_s0 + $0x20] sm:$0xff]  ;;  %2501 = vmatprep.subr.bf16.mxu1 %v2500_v15 }
   0x8   :  { %2341 = vmatmul.mubr.msk.f32.vlgmr.msra.gmra.mrb[0].mxu0 %vm71_vm0, %v45_v6  ;;  %2503 = vmatpush3.bf16.msra.mxu1 %v2500_v15  ;;  %v2192_v24 = vld [vmem:[%s3408_s4] ss:$0 sm:$0xff]  ;;  %s2715_s4 = smov 48  }
   0x9   :  { %2506 = vmatpush3.bf16.msra.mxu0 %v2810_v7  ;;  %2343 = vmatprep.mubr.msk.f32.mxu0 %vm71_vm0, %v46_v8  ;;  %v2201_v30 = vld [vmem:[%s3409_s6] ss:$0 sm:$0xff]  ;;  %s2716_s6 = smov 96  }
   0xa   :  { %2507 = vmatprep.subr.bf16.mxu0 %v2710_v11  ;;  %460 = vrot.lane.b32.xlu0 %v2213_v16, %s2712_s18 }
   0xb   :  { %2510 = vmatprep.subr.bf16.mxu1 %v2710_v11  ;;  %2357 = vmatmul.mubr.msk.f32.vlgmr.msra.gmra.mrb[0].mxu1 %vm71_vm0, %v45_v6 }
   0xc   :  { %2344 = vmatmul.mubr.msk.f32.gmra.mrb[2].mxu0 %vm71_vm0, %v47_v17  ;;  %2359 = vmatprep.mubr.msk.f32.mxu1 %vm71_vm0, %v46_v8 }
   0xd   :  { %2346 = vmatprep.mubr.msk.f32.mxu0 %vm71_vm0, %v48_v19  ;;  %2509 = vmatpush3.bf16.msra.mxu0 %v2841_v18 }
   0xe   :  { %2516 = vmatprep.subr.bf16.mxu0 %v2710_v11  ;;  %2512 = vmatpush3.bf16.msra.mxu1 %v2810_v7 }
   0xf   :  { %2513 = vmatprep.subr.bf16.mxu1 %v2710_v11  ;;  %2360 = vmatmul.mubr.msk.f32.gmra.mrb[2].mxu1 %vm71_vm0, %v47_v17 }
  0x10   :  { %2347 = vmatmul.mubr.msk.f32.gmra.mrb[4].mxu0 %vm71_vm0, %v49_v20  ;;  %2362 = vmatprep.mubr.msk.f32.mxu1 %vm71_vm0, %v48_v19 }
  0x11   :  { %2349 = vmatprep.mubr.msk.f32.mxu0 %vm71_vm0, %v50_v21 }
  0x12   :  { %2515 = vmatpush3.bf16.msra.mxu1 %v2841_v18 }
  0x13   :  { %2522 = vmatprep.subr.bf16.mxu1 %v2710_v11  ;;  %2363 = vmatmul.mubr.msk.f32.gmra.mrb[4].mxu1 %vm71_vm0, %v49_v20  ;;  %v2717_v20 = vmov 0  }
  0x14   :  { %2350 = vmatmul.mubr.msk.f32.gmra.mrb[6].mxu0 %vm71_vm0, %v51_v22  ;;  %2365 = vmatprep.mubr.msk.f32.mxu1 %vm71_vm0, %v50_v21 }
  0x15   :  { %2376 = vmatprep.mubr.msk.f32.mxu0 %vm2713_vm1, %v2714_v23  ;;  %2578 = vset.pattern.permute.xlu1 %v2717_v20 }
  0x16   :  { %2579 = vset.pattern.permute.xlu0 %v2717_v20 }
  0x17   :  { %2366 = vmatmul.mubr.msk.f32.gmra.mrb[6].mxu1 %vm71_vm0, %v51_v22 }
  0x18   :  { %2377 = vmatmul.mubr.f32.vlgmr.msra.gmra.mrb[8].mxu0 %v2714_v23  ;;  %2387 = vmatprep.mubr.msk.f32.mxu1 %vm2713_vm1, %v2714_v23 }
  0x19   :  { %2518 = vmatpush3.bf16.msra.mxu0 %v2810_v7  ;;  %2398 = vmatprep.mubr.msk.f32.mxu0 %vm2713_vm1, %v2714_v23 }
  0x1a   :  { %2519 = vmatprep.subr.bf16.mxu0 %v2710_v11 }
  0x1d   :  { %2521 = vmatpush3.bf16.msra.mxu0 %v2841_v18 }
  0x1e   :  { %2528 = vmatprep.subr.bf16.mxu0 %v2710_v11 }
  0x78   :  { %v2897_v38 = vpop.permute.xlu0 %418 }
  0x7c   :  { %v2904_v51 = vpop.permute.xlu0 %460 }
  0xdb   :  { %v2342_v25 = vpop.f32.mrb[0].mxu0 }
  0xdc   :  { %v168_v26 = vadd.f32 %v2342_v25, %v2192_v24  ;;  %v162_v27 = vpop.f32.mrb[1].mxu0 }
  0xdd   :  { %v163_v28 = vadd.f32 %v2192_v24, %v162_v27 }
  0xde   :  { %203 = vst.msk [vmem:[#allocation2 + $0x8] sm:$0xff] %vm201_vm2, %v168_v26  ;;  %v2358_v34 = vpop.f32.mrb[0].mxu1 }
  0xdf   :  { %202 = vst.msk [vmem:[#allocation2] sm:$0xff] %vm201_vm2, %v163_v28  ;;  %v2345_v29 = vpop.f32.mrb[2].mxu0  ;;  %v288_v35 = vadd.f32 %v2358_v34, %v2201_v30  ;;  %v282_v36 = vpop.f32.mrb[1].mxu1 }
  0xe0   :  { %v178_v31 = vadd.f32 %v2345_v29, %v2192_v24  ;;  %v172_v32 = vpop.f32.mrb[3].mxu0  ;;  %v283_v39 = vadd.f32 %v2201_v30, %v282_v36 }
  0xe1   :  { %v173_v33 = vadd.f32 %v2192_v24, %v172_v32  ;;  %322 = vst.msk [vmem:[#allocation3 + $0x8] sm:$0xff] %vm201_vm2, %v288_v35 }
  0xe2   :  { %205 = vst.msk [vmem:[#allocation2 + $0x18] sm:$0xff] %vm201_vm2, %v178_v31  ;;  %321 = vst.msk [vmem:[#allocation3] sm:$0xff] %vm201_vm2, %v283_v39  ;;  %v2361_v43 = vpop.f32.mrb[2].mxu1 }
  0xe3   :  { %204 = vst.msk [vmem:[#allocation2 + $0x10] sm:$0xff] %vm201_vm2, %v173_v33  ;;  %v2348_v37 = vpop.f32.mrb[4].mxu0  ;;  %v298_v44 = vadd.f32 %v2361_v43, %v2201_v30  ;;  %v292_v45 = vpop.f32.mrb[3].mxu1 }
  0xe4   :  { %v188_v40 = vadd.f32 %v2348_v37, %v2192_v24  ;;  %v182_v41 = vpop.f32.mrb[5].mxu0  ;;  %v293_v47 = vadd.f32 %v2201_v30, %v292_v45 }
  0xe5   :  { %v183_v42 = vadd.f32 %v2192_v24, %v182_v41  ;;  %324 = vst.msk [vmem:[#allocation3 + $0x18] sm:$0xff] %vm201_vm2, %v298_v44 }
  0xe6   :  { %207 = vst.msk [vmem:[#allocation2 + $0x28] sm:$0xff] %vm201_vm2, %v188_v40  ;;  %323 = vst.msk [vmem:[#allocation3 + $0x10] sm:$0xff] %vm201_vm2, %v293_v47  ;;  %v2364_v52 = vpop.f32.mrb[4].mxu1  ;;  %v403_v0 = vld [vmem:[#allocation2] sm:$0xff] }
  0xe7   :  { %206 = vst.msk [vmem:[#allocation2 + $0x20] sm:$0xff] %vm201_vm2, %v183_v42  ;;  %v2351_v46 = vpop.f32.mrb[6].mxu0  ;;  %v308_v53 = vadd.f32 %v2364_v52, %v2201_v30  ;;  %v302_v54 = vpop.f32.mrb[5].mxu1 }
  0xe8   :  { %v198_v48 = vadd.f32 %v2351_v46, %v2192_v24  ;;  %v192_v49 = vpop.f32.mrb[7].mxu0  ;;  %v303_v56 = vadd.f32 %v2201_v30, %v302_v54  ;;  %v587_v54 = vld [vmem:[#allocation2 + $0x8] sm:$0xff] }
  0xe9   :  { %v193_v50 = vadd.f32 %v2192_v24, %v192_v49  ;;  %326 = vst.msk [vmem:[#allocation3 + $0x28] sm:$0xff] %vm201_vm2, %v308_v53  ;;  %v2925_v24 = vld [vmem:[%s3410_s1] sm:$0xff]  ;;  %s2719_s1 = smov 16  }
  0xea   :  { %209 = vst.msk [vmem:[#allocation2 + $0x38] sm:$0xff] %vm201_vm2, %v198_v48  ;;  %325 = vst.msk [vmem:[#allocation3 + $0x20] sm:$0xff] %vm201_vm2, %v303_v56  ;;  %v2367_v59 = vpop.f32.mrb[6].mxu1  ;;  %vm486_vm3 = vcmp.gt.s32.totalorder %v2925_v24, 0  ;;  %vm487_vm4 = vcmp.gt.s32.totalorder %v2925_v24, 7  ;;  %vm658_vm9 = vcmp.gt.s32.totalorder %v2925_v24, 1 }
  0xeb   :  { %208 = vst.msk [vmem:[#allocation2 + $0x30] sm:$0xff] %vm201_vm2, %v193_v50  ;;  %v399_v55 = vpop.f32.mrb[8].mxu0  ;;  %v318_v61 = vadd.f32 %v2367_v59, %v2201_v30  ;;  %v312_v62 = vpop.f32.mrb[7].mxu1  ;;  %v488_v27 = vsel %vm486_vm3, 1, %v2717_v20  ;;  %v499_v32 = vsel %vm487_vm4, 1, %v2717_v20  ;;  %vm659_vm10 = vcmp.gt.s32.totalorder %v2925_v24, 6 }
  0xec   :  { %445 = vrot.lane.b32.xlu1 %v399_v55, %s2712_s18  ;;  %v2378_v57 = vpop.f32.mrb[9].mxu0  ;;  %v463_v58 = vadd.f32 %v2904_v51, %v399_v55  ;;  %v421_v60 = vadd.f32 %v2897_v38, %v399_v55  ;;  %v313_v63 = vadd.f32 %v2201_v30, %v312_v62  ;;  %v406_v1 = vadd.f32 %v403_v0, %v399_v55 }
  0xed   :  { %328 = vst.msk [vmem:[#allocation3 + $0x38] sm:$0xff] %vm201_vm2, %v318_v61  ;;  %vm846_vm13 = vcmp.gt.s32.totalorder %v2925_v24, 2  ;;  %vm847_vm14 = vcmp.gt.s32.totalorder %v2925_v24, 5  ;;  %vm1034_vm3 = vcmp.gt.s32.totalorder %v2925_v24, 3  ;;  %vm1035_vm4 = vcmp.gt.s32.totalorder %v2925_v24, 4 }
  0xee   :  { %465 = vrot.lane.b32.xlu0 %v463_v58, %s2715_s4  ;;  %327 = vst.msk [vmem:[#allocation3 + $0x30] sm:$0xff] %vm201_vm2, %v313_v63  ;;  %v2210_v2 = vmul.f32 -1.442695, %v406_v1 }
  0xf0   :  { %423 = vrot.lane.b32.xlu1 %v421_v60, %s2716_s6  ;;  %2580 = vpow2.f32 %v2210_v2 }
  0xf4   :  { %v405_v5 = vld [vmem:[#allocation3 + $0x38] sm:$0xff] }
  0xf5   :  { %v589_v59 = vld [vmem:[#allocation3 + $0x30] sm:$0xff] }
  0xfa   :  { %v2581_v3 = vpop.eup %2580 }
  0xfb   :  { %v410_v4 = vadd.f32 1.0, %v2581_v3 }
  0xfd   :  { %2582 = vrcp.f32 %v410_v4 }
 0x107   :  { %v2583_v10 = vpop.eup %2582 }
 0x15e   :  { %v446_v6 = vpop.permute.xlu1 %445 }
 0x15f   :  { %v448_v8 = vadd.f32 %v446_v6, %v405_v5 }
 0x160   :  { %v466_v17 = vpop.permute.xlu0 %465 }
 0x161   :  { %v2212_v9 = vmul.f32 -1.442695, %v448_v8 }
 0x162   :  { %v424_v12 = vpop.permute.xlu1 %423 }
 0x163   :  { %2584 = vpow2.f32 %v2212_v9  ;;  %v426_v13 = vmul.f32 %v2583_v10, %v424_v12 }
 0x165   :  { %428 = vrot.lane.b32.xlu1 %v426_v13, %s2711_s14 }
 0x16d   :  { %v2585_v14 = vpop.eup %2584 }
 0x16e   :  { %v452_v15 = vadd.f32 1.0, %v2585_v14 }
 0x170   :  { %2586 = vrcp.f32 %v452_v15  ;;  %v660_v15 = vsel %vm658_vm9, 1, %v2717_v20 }
 0x17a   :  { %v2587_v16 = vpop.eup %2586 }
 0x17b   :  { %v468_v19 = vmul.f32 %v2587_v16, %v466_v17 }
 0x17d   :  { %470 = vrot.lane.b32.xlu0 %v468_v19, %s2711_s14  ;;  %v672_v19 = vsel %vm659_vm10, 1, %v2717_v20 }
 0x1d7   :  { %v429_v21 = vpop.permute.xlu1 %428 }
 0x1d8   :  { %v431_v22 = vadd.f32 %v429_v21, %v403_v0 }
 0x1da   :  { %2588 = vtanh.f32 %v431_v22 }
 0x1e4   :  { %v2589_v25 = vpop.eup %2588 }
 0x1e5   :  { %v433_v26 = vsub.f32 0.0, %v2589_v25 }
 0x1e7   :  { %435 = vrot.lane.b32.xlu1 %v433_v26, %s2718_s28 }
 0x1eb   :  { %490 = vperm.xlu1 %2578, %v488_v27  }
 0x1ef   :  { %v471_v28 = vpop.permute.xlu0 %470 }
 0x1f0   :  { %v473_v29 = vadd.f32 %v471_v28, %v405_v5 }
 0x1f2   :  { %2590 = vtanh.f32 %v473_v29 }
 0x1fc   :  { %v2591_v30 = vpop.eup %2590 }
 0x1fd   :  { %v475_v31 = vsub.f32 0.0, %v2591_v30 }
 0x1ff   :  { %477 = vrot.lane.b32.xlu0 %v475_v31, %s2718_s28 }
 0x203   :  { %501 = vperm.xlu0 %2579, %v499_v32  }
 0x259   :  { %v436_v33 = vpop.permute.xlu1 %435 }
 0x25a   :  { %v438_v34 = vmul.f32 %v2583_v10, %v436_v33 }
 0x25c   :  { %440 = vrot.lane.b32.xlu1 %v438_v34, %s2719_s1 }
 0x26a   :  { %v2935_v37 = vpop.permute.xlu1 %490 }
 0x26b   :  { %vm492_vm5 = vcmp.eq.s32.totalorder %v2935_v37, 1 }
 0x271   :  { %v478_v35 = vpop.permute.xlu0 %477 }
 0x272   :  { %v480_v36 = vmul.f32 %v2587_v16, %v478_v35 }
 0x274   :  { %482 = vrot.lane.b32.xlu1 %v480_v36, %s2719_s1 }
 0x282   :  { %v2941_v42 = vpop.permute.xlu0 %501 }
 0x283   :  { %vm503_vm6 = vcmp.eq.s32.totalorder %v2941_v42, 1 }
 0x2ce   :  { %v441_v39 = vpop.permute.xlu1 %440 }
 0x2cf   :  { %v443_v40 = vadd.f32 %v2589_v25, %v441_v39 }
 0x2d1   :  { %v493_v41 = vsel %vm492_vm5, %v443_v40, 0.0 }
 0x2d2   :  { %495 = vrot.lane.b32.xlu0 %v493_v41, %s2716_s6 }
 0x2e6   :  { %v483_v43 = vpop.permute.xlu1 %482 }
 0x2e7   :  { %v485_v44 = vadd.f32 %v2591_v30, %v483_v43 }
 0x2e9   :  { %v504_v45 = vsel %vm503_vm6, %v485_v44, 0.0 }
 0x2ea   :  { %506 = vrot.lane.b32.xlu1 %v504_v45, %s2718_s28 }
 0x344   :  { %v496_v46 = vpop.permute.xlu0 %495 }
 0x345   :  { %498 = vst.msk [vmem:[#allocation4] sm:$0xff] %vm71_vm0, %v496_v46 }
 0x35c   :  { %v507_v47 = vpop.permute.xlu1 %506 }
 0x35d   :  { %511 = vst.msk [vmem:[#allocation4 + $0x38] sm:$0xff] %vm510_vm7, %v507_v47  ;;  %v2950_v48 = vsel %vm71_vm0, %v496_v46, %v507_v47 }
 0x35e   :  { %2388 = vmatmul.mubr.msk.f32.vlgmr.msra.gmra.mrb[8].mxu1 %vm329_vm8, %v2950_v48 }
 0x35f   :  { %2524 = vmatpush3.bf16.msra.mxu1 %v2810_v7  ;;  %2409 = vmatprep.mubr.msk.f32.mxu1 %vm2713_vm1, %v2714_v23 }
 0x360   :  { %2525 = vmatprep.subr.bf16.mxu1 %v2710_v11 }
 0x363   :  { %2527 = vmatpush3.bf16.msra.mxu1 %v2841_v18 }
 0x364   :  { %2534 = vmatprep.subr.bf16.mxu1 %v2710_v11 }
 0x431   :  { %v582_v49 = vpop.f32.mrb[8].mxu1 }
 0x432   :  { %625 = vrot.lane.b32.xlu1 %v582_v49, %s2712_s18  ;;  %v2389_v50 = vpop.f32.mrb[9].mxu1  ;;  %v597_v52 = vadd.f32 %v582_v49, %v2897_v38  ;;  %v635_v53 = vadd.f32 %v582_v49, %v2904_v51  ;;  %v590_v55 = vadd.f32 %v587_v54, %v582_v49 }
 0x434   :  { %599 = vrot.lane.b32.xlu0 %v597_v52, %s2716_s6  ;;  %v2215_v56 = vmul.f32 -1.442695, %v590_v55 }
 0x436   :  { %2592 = vpow2.f32 %v2215_v56 }
 0x438   :  { %637 = vrot.lane.b32.xlu0 %v635_v53, %s2715_s4 }
 0x440   :  { %v2593_v57 = vpop.eup %2592 }
 0x441   :  { %v594_v58 = vadd.f32 1.0, %v2593_v57 }
 0x443   :  { %2594 = vrcp.f32 %v594_v58 }
 0x44d   :  { %v2595_v62 = vpop.eup %2594 }
 0x4a4   :  { %v626_v60 = vpop.permute.xlu1 %625 }
 0x4a5   :  { %v628_v61 = vadd.f32 %v626_v60, %v589_v59 }
 0x4a6   :  { %v600_v63 = vpop.permute.xlu0 %599 }
 0x4a7   :  { %v2216_v0 = vmul.f32 -1.442695, %v628_v61  ;;  %v602_v1 = vmul.f32 %v2595_v62, %v600_v63 }
 0x4a9   :  { %2596 = vpow2.f32 %v2216_v0  ;;  %604 = vrot.lane.b32.xlu1 %v602_v1, %s2711_s14 }
 0x4aa   :  { %v638_v5 = vpop.permute.xlu0 %637 }
 0x4b3   :  { %v2597_v2 = vpop.eup %2596 }
 0x4b4   :  { %v632_v3 = vadd.f32 1.0, %v2597_v2 }
 0x4b6   :  { %2598 = vrcp.f32 %v632_v3 }
 0x4c0   :  { %v2599_v4 = vpop.eup %2598 }
 0x4c1   :  { %v640_v6 = vmul.f32 %v2599_v4, %v638_v5 }
 0x4c3   :  { %642 = vrot.lane.b32.xlu0 %v640_v6, %s2711_s14 }
 0x51b   :  { %v605_v8 = vpop.permute.xlu1 %604 }
 0x51c   :  { %v607_v9 = vadd.f32 %v605_v8, %v587_v54  ;;  %v777_v54 = vld [vmem:[#allocation3 + $0x28] sm:$0xff] }
 0x51e   :  { %2600 = vtanh.f32 %v607_v9  ;;  %v848_v9 = vsel %vm846_vm13, 1, %v2717_v20 }
 0x528   :  { %v2601_v10 = vpop.eup %2600 }
 0x529   :  { %610 = vrot.lane.b32.xlu1 %v2601_v10, %s2716_s6 }
 0x535   :  { %v643_v12 = vpop.permute.xlu0 %642 }
 0x536   :  { %v645_v13 = vadd.f32 %v643_v12, %v589_v59 }
 0x538   :  { %2602 = vtanh.f32 %v645_v13  ;;  %v860_v13 = vsel %vm847_vm14, 1, %v2717_v20 }
 0x542   :  { %v2603_v14 = vpop.eup %2602 }
 0x543   :  { %648 = vrot.lane.b32.xlu0 %v2603_v14, %s2718_s28 }
 0x547   :  { %662 = vperm.xlu0 %2579, %v660_v15  }
 0x59b   :  { %v611_v16 = vpop.permute.xlu1 %610 }
 0x59c   :  { %v613_v17 = vsub.f32 %v2950_v48, %v611_v16 }
 0x59e   :  { %615 = vrot.lane.b32.xlu1 %v613_v17, %s2719_s1 }
 0x5a2   :  { %674 = vperm.xlu1 %2578, %v672_v19  }
 0x5b5   :  { %v649_v21 = vpop.permute.xlu0 %648 }
 0x5b6   :  { %v651_v22 = vsub.f32 %v2950_v48, %v649_v21 }
 0x5b8   :  { %v652_v25 = vmul.f32 %v2599_v4, %v651_v22 }
 0x5ba   :  { %654 = vrot.lane.b32.xlu1 %v652_v25, %s2719_s1 }
 0x5be   :  { %688 = vrot.lane.b32.xlu1 %v2950_v48, %s2719_s1 }
 0x5c6   :  { %v2991_v33 = vpop.permute.xlu0 %662 }
 0x5c7   :  { %vm664_vm12 = vcmp.eq.s32.totalorder %v2991_v33, 1 }
 0x610   :  { %v616_v26 = vpop.permute.xlu1 %615 }
 0x611   :  { %v618_v27 = vmul.f32 %v2595_v62, %v616_v26 }
 0x613   :  { %620 = vrot.lane.b32.xlu0 %v618_v27, %s2719_s1 }
 0x617   :  { %684 = vrot.lane.b32.xlu0 %v2950_v48, %s2711_s14  ;;  %v775_v48 = vld [vmem:[#allocation2 + $0x10] sm:$0xff] }
 0x621   :  { %v2982_v28 = vpop.permute.xlu1 %674 }
 0x622   :  { %vm676_vm11 = vcmp.eq.s32.totalorder %v2982_v28, 1 }
 0x62c   :  { %v655_v29 = vpop.permute.xlu1 %654 }
 0x62d   :  { %v2984_v30 = vadd.f32 %v2603_v14, %v655_v29 }
 0x630   :  { %v689_v31 = vpop.permute.xlu1 %688 }
 0x631   :  { %v691_v32 = vsel %vm676_vm11, %v2984_v30, %v689_v31 }
 0x632   :  { %697 = vrot.lane.b32.xlu1 %v691_v32, %s2718_s28 }
 0x685   :  { %v621_v34 = vpop.permute.xlu0 %620 }
 0x686   :  { %v2993_v35 = vadd.f32 %v2601_v10, %v621_v34 }
 0x689   :  { %v685_v36 = vpop.permute.xlu0 %684 }
 0x68a   :  { %v687_v39 = vsel %vm664_vm12, %v2993_v35, %v685_v36 }
 0x68b   :  { %693 = vrot.lane.b32.xlu0 %v687_v39, %s2716_s6 }
 0x6a4   :  { %v698_v40 = vpop.permute.xlu1 %697 }
 0x6fd   :  { %v694_v41 = vpop.permute.xlu0 %693 }
 0x6fe   :  { %v3001_v43 = vsel %vm71_vm0, %v694_v41, %v698_v40 }
 0x6ff   :  { %2399 = vmatmul.mubr.msk.f32.vlgmr.msra.gmra.mrb[10].mxu0 %vm329_vm8, %v3001_v43 }
 0x700   :  { %2530 = vmatpush3.bf16.msra.mxu0 %v2810_v7  ;;  %2420 = vmatprep.mubr.msk.f32.mxu0 %vm2713_vm1, %v2714_v23 }
 0x701   :  { %2531 = vmatprep.subr.bf16.mxu0 %v2710_v11 }
 0x704   :  { %2533 = vmatpush3.bf16.msra.mxu0 %v2841_v18 }
 0x705   :  { %2540 = vmatprep.subr.bf16.mxu0 %v2710_v11 }
 0x7d2   :  { %v770_v44 = vpop.f32.mrb[10].mxu0 }
 0x7d3   :  { %813 = vrot.lane.b32.xlu1 %v770_v44, %s2712_s18  ;;  %v2400_v45 = vpop.f32.mrb[11].mxu0  ;;  %v785_v46 = vadd.f32 %v770_v44, %v2897_v38  ;;  %v823_v47 = vadd.f32 %v770_v44, %v2904_v51  ;;  %v778_v49 = vadd.f32 %v775_v48, %v770_v44 }
 0x7d5   :  { %787 = vrot.lane.b32.xlu0 %v785_v46, %s2716_s6  ;;  %v2218_v50 = vmul.f32 -1.442695, %v778_v49 }
 0x7d7   :  { %2604 = vpow2.f32 %v2218_v50 }
 0x7d9   :  { %825 = vrot.lane.b32.xlu0 %v823_v47, %s2715_s4  ;;  %v963_v47 = vld [vmem:[#allocation2 + $0x18] sm:$0xff] }
 0x7e1   :  { %v2605_v52 = vpop.eup %2604 }
 0x7e2   :  { %v782_v53 = vadd.f32 1.0, %v2605_v52 }
 0x7e4   :  { %2606 = vrcp.f32 %v782_v53  ;;  %v965_v53 = vld [vmem:[#allocation3 + $0x20] sm:$0xff] }
 0x7ee   :  { %v2607_v57 = vpop.eup %2606 }
 0x845   :  { %v814_v55 = vpop.permute.xlu1 %813 }
 0x846   :  { %v816_v56 = vadd.f32 %v814_v55, %v777_v54 }
 0x847   :  { %v788_v58 = vpop.permute.xlu0 %787 }
 0x848   :  { %v2219_v59 = vmul.f32 -1.442695, %v816_v56  ;;  %v790_v60 = vmul.f32 %v2607_v57, %v788_v58 }
 0x84a   :  { %2608 = vpow2.f32 %v2219_v59  ;;  %792 = vrot.lane.b32.xlu1 %v790_v60, %s2711_s14 }
 0x84b   :  { %v826_v0 = vpop.permute.xlu0 %825 }
 0x854   :  { %v2609_v61 = vpop.eup %2608 }
 0x855   :  { %v820_v62 = vadd.f32 1.0, %v2609_v61 }
 0x857   :  { %2610 = vrcp.f32 %v820_v62 }
 0x861   :  { %v2611_v63 = vpop.eup %2610 }
 0x862   :  { %v828_v1 = vmul.f32 %v2611_v63, %v826_v0 }
 0x864   :  { %830 = vrot.lane.b32.xlu0 %v828_v1, %s2711_s14 }
 0x8bc   :  { %v793_v2 = vpop.permute.xlu1 %792 }
 0x8bd   :  { %v795_v3 = vadd.f32 %v793_v2, %v775_v48 }
 0x8bf   :  { %2612 = vtanh.f32 %v795_v3 }
 0x8c9   :  { %v2613_v4 = vpop.eup %2612 }
 0x8ca   :  { %798 = vrot.lane.b32.xlu1 %v2613_v4, %s2716_s6 }
 0x8d6   :  { %v831_v5 = vpop.permute.xlu0 %830 }
 0x8d7   :  { %v833_v6 = vadd.f32 %v831_v5, %v777_v54 }
 0x8d9   :  { %2614 = vtanh.f32 %v833_v6 }
 0x8e3   :  { %v2615_v8 = vpop.eup %2614 }
 0x8e4   :  { %836 = vrot.lane.b32.xlu0 %v2615_v8, %s2718_s28 }
 0x8e8   :  { %850 = vperm.xlu0 %2579, %v848_v9  }
 0x93c   :  { %v799_v10 = vpop.permute.xlu1 %798 }
 0x93d   :  { %v801_v12 = vsub.f32 %v3001_v43, %v799_v10 }
 0x93f   :  { %803 = vrot.lane.b32.xlu1 %v801_v12, %s2719_s1  ;;  %v1048_v12 = vsel %vm1035_vm4, 1, %v2717_v20 }
 0x943   :  { %862 = vperm.xlu1 %2578, %v860_v13  }
 0x956   :  { %v837_v14 = vpop.permute.xlu0 %836 }
 0x957   :  { %v839_v15 = vsub.f32 %v3001_v43, %v837_v14 }
 0x959   :  { %v840_v16 = vmul.f32 %v2611_v63, %v839_v15 }
 0x95b   :  { %842 = vrot.lane.b32.xlu1 %v840_v16, %s2719_s1 }
 0x95f   :  { %876 = vrot.lane.b32.xlu1 %v3001_v43, %s2719_s1 }
 0x967   :  { %v3042_v29 = vpop.permute.xlu0 %850 }
 0x968   :  { %vm852_vm2 = vcmp.eq.s32.totalorder %v3042_v29, 1  ;;  %v1767_v29 = vld [vmem:[%s3412_s10 + $0x18] sm:$0xff] }
 0x9b1   :  { %v804_v17 = vpop.permute.xlu1 %803 }
 0x9b2   :  { %v806_v19 = vmul.f32 %v2607_v57, %v804_v17 }
 0x9b4   :  { %808 = vrot.lane.b32.xlu0 %v806_v19, %s2719_s1 }
 0x9b8   :  { %872 = vrot.lane.b32.xlu0 %v3001_v43, %s2711_s14 }
 0x9c2   :  { %v3033_v21 = vpop.permute.xlu1 %862 }
 0x9c3   :  { %vm864_vm15 = vcmp.eq.s32.totalorder %v3033_v21, 1 }
 0x9cd   :  { %v843_v22 = vpop.permute.xlu1 %842 }
 0x9ce   :  { %v3035_v25 = vadd.f32 %v2615_v8, %v843_v22  ;;  %v1036_v8 = vsel %vm1034_vm3, 1, %v2717_v20 }
 0x9d1   :  { %v877_v26 = vpop.permute.xlu1 %876 }
 0x9d2   :  { %v879_v27 = vsel %vm864_vm15, %v3035_v25, %v877_v26 }
 0x9d3   :  { %885 = vrot.lane.b32.xlu1 %v879_v27, %s2718_s28 }
 0xa26   :  { %v809_v31 = vpop.permute.xlu0 %808 }
 0xa27   :  { %v3044_v32 = vadd.f32 %v2613_v4, %v809_v31 }
 0xa2a   :  { %v873_v34 = vpop.permute.xlu0 %872 }
 0xa2b   :  { %v875_v36 = vsel %vm852_vm2, %v3044_v32, %v873_v34 }
 0xa2c   :  { %881 = vrot.lane.b32.xlu0 %v875_v36, %s2716_s6 }
 0xa45   :  { %v886_v39 = vpop.permute.xlu1 %885 }
 0xa9e   :  { %v882_v40 = vpop.permute.xlu0 %881 }
 0xa9f   :  { %v3052_v41 = vsel %vm71_vm0, %v882_v40, %v886_v39 }
 0xaa0   :  { %2410 = vmatmul.mubr.msk.f32.vlgmr.msra.gmra.mrb[10].mxu1 %vm329_vm8, %v3052_v41 }
 0xaa1   :  { %2536 = vmatpush3.bf16.msra.mxu1 %v2810_v7  ;;  %2431 = vmatprep.mubr.msk.f32.mxu1 %vm2713_vm1, %v2714_v23 }
 0xaa2   :  { %2537 = vmatprep.subr.bf16.mxu1 %v2710_v11 }
 0xaa5   :  { %2539 = vmatpush3.bf16.msra.mxu1 %v2841_v18 }
 0xaa6   :  { %2546 = vmatprep.subr.bf16.mxu1 %v2710_v11 }
 0xb73   :  { %v958_v43 = vpop.f32.mrb[10].mxu1 }
 0xb74   :  { %1001 = vrot.lane.b32.xlu1 %v958_v43, %s2712_s18  ;;  %v2411_v44 = vpop.f32.mrb[11].mxu1  ;;  %v973_v45 = vadd.f32 %v958_v43, %v2897_v38  ;;  %v1011_v46 = vadd.f32 %v958_v43, %v2904_v51  ;;  %v966_v48 = vadd.f32 %v963_v47, %v958_v43 }
 0xb76   :  { %975 = vrot.lane.b32.xlu0 %v973_v45, %s2716_s6  ;;  %v2221_v49 = vmul.f32 -1.442695, %v966_v48 }
 0xb78   :  { %2616 = vpow2.f32 %v2221_v49  ;;  %v1151_v49 = vld [vmem:[#allocation2 + $0x20] sm:$0xff] }
 0xb7a   :  { %1013 = vrot.lane.b32.xlu0 %v1011_v46, %s2715_s4 }
 0xb82   :  { %v2617_v50 = vpop.eup %2616 }
 0xb83   :  { %v970_v52 = vadd.f32 1.0, %v2617_v50 }
 0xb85   :  { %2618 = vrcp.f32 %v970_v52 }
 0xb8f   :  { %v2619_v56 = vpop.eup %2618 }
 0xbe6   :  { %v1002_v54 = vpop.permute.xlu1 %1001 }
 0xbe7   :  { %v1004_v55 = vadd.f32 %v1002_v54, %v965_v53 }
 0xbe8   :  { %v976_v57 = vpop.permute.xlu0 %975 }
 0xbe9   :  { %v2222_v58 = vmul.f32 -1.442695, %v1004_v55  ;;  %v978_v59 = vmul.f32 %v2619_v56, %v976_v57  ;;  %v1153_v55 = vld [vmem:[#allocation3 + $0x18] sm:$0xff] }
 0xbeb   :  { %2620 = vpow2.f32 %v2222_v58  ;;  %980 = vrot.lane.b32.xlu1 %v978_v59, %s2711_s14 }
 0xbec   :  { %v1014_v63 = vpop.permute.xlu0 %1013 }
 0xbf5   :  { %v2621_v60 = vpop.eup %2620 }
 0xbf6   :  { %v1008_v61 = vadd.f32 1.0, %v2621_v60 }
 0xbf8   :  { %2622 = vrcp.f32 %v1008_v61 }
 0xc02   :  { %v2623_v62 = vpop.eup %2622 }
 0xc03   :  { %v1016_v0 = vmul.f32 %v2623_v62, %v1014_v63 }
 0xc05   :  { %1018 = vrot.lane.b32.xlu0 %v1016_v0, %s2711_s14 }
 0xc5d   :  { %v981_v1 = vpop.permute.xlu1 %980 }
 0xc5e   :  { %v983_v2 = vadd.f32 %v981_v1, %v963_v47 }
 0xc60   :  { %2624 = vtanh.f32 %v983_v2 }
 0xc6a   :  { %v2625_v3 = vpop.eup %2624 }
 0xc6b   :  { %986 = vrot.lane.b32.xlu1 %v2625_v3, %s2716_s6 }
 0xc77   :  { %v1019_v4 = vpop.permute.xlu0 %1018 }
 0xc78   :  { %v1021_v5 = vadd.f32 %v1019_v4, %v965_v53 }
 0xc7a   :  { %2626 = vtanh.f32 %v1021_v5 }
 0xc84   :  { %v2627_v6 = vpop.eup %2626 }
 0xc85   :  { %1024 = vrot.lane.b32.xlu0 %v2627_v6, %s2718_s28 }
 0xc89   :  { %1038 = vperm.xlu0 %2579, %v1036_v8  }
 0xcdd   :  { %v987_v9 = vpop.permute.xlu1 %986 }
 0xcde   :  { %v989_v10 = vsub.f32 %v3052_v41, %v987_v9 }
 0xce0   :  { %991 = vrot.lane.b32.xlu1 %v989_v10, %s2719_s1 }
 0xce4   :  { %1050 = vperm.xlu1 %2578, %v1048_v12  }
 0xcf7   :  { %v1025_v13 = vpop.permute.xlu0 %1024 }
 0xcf8   :  { %v1027_v14 = vsub.f32 %v3052_v41, %v1025_v13 }
 0xcfa   :  { %v1028_v15 = vmul.f32 %v2623_v62, %v1027_v14 }
 0xcfc   :  { %1030 = vrot.lane.b32.xlu1 %v1028_v15, %s2719_s1 }
 0xd00   :  { %1064 = vrot.lane.b32.xlu1 %v3052_v41, %s2719_s1 }
 0xd08   :  { %v3093_v31 = vpop.permute.xlu0 %1038 }
 0xd09   :  { %vm1040_vm10 = vcmp.eq.s32.totalorder %v3093_v31, 1 }
 0xd52   :  { %v992_v16 = vpop.permute.xlu1 %991 }
 0xd53   :  { %v994_v17 = vmul.f32 %v2619_v56, %v992_v16 }
 0xd55   :  { %996 = vrot.lane.b32.xlu0 %v994_v17, %s2719_s1 }
 0xd59   :  { %1060 = vrot.lane.b32.xlu0 %v3052_v41, %s2711_s14 }
 0xd63   :  { %v3084_v24 = vpop.permute.xlu1 %1050 }
 0xd64   :  { %vm1052_vm9 = vcmp.eq.s32.totalorder %v3084_v24, 1 }
 0xd6e   :  { %v1031_v19 = vpop.permute.xlu1 %1030 }
 0xd6f   :  { %v3086_v22 = vadd.f32 %v2627_v6, %v1031_v19 }
 0xd72   :  { %v1065_v26 = vpop.permute.xlu1 %1064 }
 0xd73   :  { %v1067_v27 = vsel %vm1052_vm9, %v3086_v22, %v1065_v26 }
 0xd74   :  { %1073 = vrot.lane.b32.xlu1 %v1067_v27, %s2718_s28 }
 0xdc7   :  { %v997_v34 = vpop.permute.xlu0 %996 }
 0xdc8   :  { %v3095_v36 = vadd.f32 %v2625_v3, %v997_v34 }
 0xdcb   :  { %v1061_v39 = vpop.permute.xlu0 %1060 }
 0xdcc   :  { %v1063_v40 = vsel %vm1040_vm10, %v3095_v36, %v1061_v39 }
 0xdcd   :  { %1069 = vrot.lane.b32.xlu0 %v1063_v40, %s2716_s6 }
 0xde6   :  { %v1074_v41 = vpop.permute.xlu1 %1073 }
 0xe3f   :  { %v1070_v43 = vpop.permute.xlu0 %1069 }
 0xe40   :  { %v1076_v44 = vsel %vm71_vm0, %v1070_v43, %v1074_v41 }
 0xe41   :  { %2421 = vmatmul.mubr.msk.f32.vlgmr.msra.gmra.mrb[12].mxu0 %vm329_vm8, %v1076_v44 }
 0xe42   :  { %2542 = vmatpush3.bf16.msra.mxu0 %v2810_v7  ;;  %2442 = vmatprep.mubr.msk.f32.mxu0 %vm2713_vm1, %v2714_v23 }
 0xe43   :  { %2543 = vmatprep.subr.bf16.mxu0 %v2710_v11 }
 0xe46   :  { %2545 = vmatpush3.bf16.msra.mxu0 %v2841_v18 }
 0xf14   :  { %v1146_v45 = vpop.f32.mrb[12].mxu0 }
 0xf15   :  { %1189 = vrot.lane.b32.xlu1 %v1146_v45, %s2712_s18  ;;  %v2422_v46 = vpop.f32.mrb[13].mxu0  ;;  %v1161_v47 = vadd.f32 %v1146_v45, %v2897_v38  ;;  %v1199_v48 = vadd.f32 %v1146_v45, %v2904_v51  ;;  %v1154_v50 = vadd.f32 %v1151_v49, %v1146_v45 }
 0xf17   :  { %1163 = vrot.lane.b32.xlu0 %v1161_v47, %s2716_s6  ;;  %v2224_v52 = vmul.f32 -1.442695, %v1154_v50 }
 0xf19   :  { %2628 = vpow2.f32 %v2224_v52 }
 0xf1b   :  { %1201 = vrot.lane.b32.xlu0 %v1199_v48, %s2715_s4 }
 0xf23   :  { %v2629_v53 = vpop.eup %2628 }
 0xf24   :  { %v1158_v54 = vadd.f32 1.0, %v2629_v53 }
 0xf26   :  { %2630 = vrcp.f32 %v1158_v54 }
 0xf30   :  { %v2631_v58 = vpop.eup %2630 }
 0xf87   :  { %v1190_v56 = vpop.permute.xlu1 %1189 }
 0xf88   :  { %v1192_v57 = vadd.f32 %v1190_v56, %v1153_v55 }
 0xf89   :  { %v1164_v59 = vpop.permute.xlu0 %1163 }
 0xf8a   :  { %v2225_v60 = vmul.f32 -1.442695, %v1192_v57  ;;  %v1166_v61 = vmul.f32 %v2631_v58, %v1164_v59 }
 0xf8c   :  { %2632 = vpow2.f32 %v2225_v60  ;;  %1168 = vrot.lane.b32.xlu1 %v1166_v61, %s2711_s14 }
 0xf8d   :  { %v1202_v1 = vpop.permute.xlu0 %1201 }
 0xf96   :  { %v2633_v62 = vpop.eup %2632 }
 0xf97   :  { %v1196_v63 = vadd.f32 1.0, %v2633_v62 }
 0xf99   :  { %2634 = vrcp.f32 %v1196_v63 }
 0xfa3   :  { %v2635_v0 = vpop.eup %2634 }
 0xfa4   :  { %v1204_v2 = vmul.f32 %v2635_v0, %v1202_v1 }
 0xfa6   :  { %1206 = vrot.lane.b32.xlu0 %v1204_v2, %s2711_s14 }
 0xffe   :  { %v1169_v3 = vpop.permute.xlu1 %1168 }
 0xfff   :  { %v1171_v4 = vadd.f32 %v1169_v3, %v1151_v49 }
0x1001   :  { %2636 = vtanh.f32 %v1171_v4 }
0x100b   :  { %v2637_v5 = vpop.eup %2636 }
0x100c   :  { %1174 = vrot.lane.b32.xlu1 %v2637_v5, %s2716_s6 }
0x1018   :  { %v1207_v6 = vpop.permute.xlu0 %1206 }
0x1019   :  { %v1209_v8 = vadd.f32 %v1207_v6, %v1153_v55 }
0x101b   :  { %2638 = vtanh.f32 %v1209_v8 }
0x1025   :  { %v2639_v9 = vpop.eup %2638 }
0x1026   :  { %1212 = vrot.lane.b32.xlu0 %v2639_v9, %s2718_s28 }
0x107e   :  { %v1175_v10 = vpop.permute.xlu1 %1174 }
0x107f   :  { %v1177_v12 = vsub.f32 %v1076_v44, %v1175_v10 }
0x1081   :  { %1179 = vrot.lane.b32.xlu1 %v1177_v12, %s2719_s1 }
0x1098   :  { %v1213_v13 = vpop.permute.xlu0 %1212 }
0x1099   :  { %v1215_v14 = vsub.f32 %v1076_v44, %v1213_v13 }
0x109b   :  { %v1216_v15 = vmul.f32 %v2635_v0, %v1215_v14 }
0x109d   :  { %1218 = vrot.lane.b32.xlu1 %v1216_v15, %s2719_s1 }
0x10a1   :  { %1238 = vrot.lane.b32.xlu1 %v1076_v44, %s2719_s1 }
0x10f3   :  { %v1180_v16 = vpop.permute.xlu1 %1179 }
0x10f4   :  { %v1182_v17 = vmul.f32 %v2631_v58, %v1180_v16 }
0x10f6   :  { %1184 = vrot.lane.b32.xlu0 %v1182_v17, %s2719_s1 }
0x10fa   :  { %1234 = vrot.lane.b32.xlu0 %v1076_v44, %s2711_s14 }
0x110f   :  { %v1219_v19 = vpop.permute.xlu1 %1218 }
0x1110   :  { %v3123_v26 = vadd.f32 %v2639_v9, %v1219_v19 }
0x1113   :  { %v1239_v27 = vpop.permute.xlu1 %1238 }
0x1114   :  { %v1241_v34 = vsel %vm1040_vm10, %v3123_v26, %v1239_v27 }
0x1115   :  { %1247 = vrot.lane.b32.xlu1 %v1241_v34, %s2718_s28 }
0x1168   :  { %v1185_v39 = vpop.permute.xlu0 %1184 }
0x1169   :  { %v3129_v40 = vadd.f32 %v2637_v5, %v1185_v39 }
0x116c   :  { %v1235_v41 = vpop.permute.xlu0 %1234 }
0x116d   :  { %v1237_v43 = vsel %vm1052_vm9, %v3129_v40, %v1235_v41 }
0x116e   :  { %1243 = vrot.lane.b32.xlu0 %v1237_v43, %s2716_s6 }
0x1187   :  { %v1248_v44 = vpop.permute.xlu1 %1247 }
0x11e0   :  { %v1244_v45 = vpop.permute.xlu0 %1243 }
0x11e1   :  { %v1250_v46 = vsel %vm71_vm0, %v1244_v45, %v1248_v44 }
0x11e2   :  { %2432 = vmatmul.mubr.msk.f32.vlgmr.msra.gmra.mrb[12].mxu1 %vm329_vm8, %v1250_v46 }
0x11e3   :  { %2548 = vmatpush3.bf16.msra.mxu1 %v2810_v7  ;;  %2453 = vmatprep.mubr.msk.f32.mxu1 %vm2713_vm1, %v2714_v23  ;;  %v1325_v7 = vld [vmem:[#allocation2 + $0x28] sm:$0xff] }
0x11e4   :  { %2549 = vmatprep.subr.bf16.mxu1 %v2710_v11 }
0x11e7   :  { %2551 = vmatpush3.bf16.msra.mxu1 %v2841_v18  ;;  %v1327_v18 = vld [vmem:[#allocation3 + $0x10] sm:$0xff] }
0x12b5   :  { %v1320_v47 = vpop.f32.mrb[12].mxu1 }
0x12b6   :  { %1363 = vrot.lane.b32.xlu1 %v1320_v47, %s2712_s18  ;;  %v2433_v48 = vpop.f32.mrb[13].mxu1  ;;  %v1335_v49 = vadd.f32 %v1320_v47, %v2897_v38  ;;  %v1373_v50 = vadd.f32 %v1320_v47, %v2904_v51  ;;  %v1328_v52 = vadd.f32 %v1325_v7, %v1320_v47 }
0x12b8   :  { %1337 = vrot.lane.b32.xlu0 %v1335_v49, %s2716_s6  ;;  %v2227_v53 = vmul.f32 -1.442695, %v1328_v52 }
0x12ba   :  { %2640 = vpow2.f32 %v2227_v53 }
0x12bc   :  { %1375 = vrot.lane.b32.xlu0 %v1373_v50, %s2715_s4 }
0x12c4   :  { %v2641_v23 = vpop.eup %2640 }
0x12c5   :  { %v1332_v11 = vadd.f32 1.0, %v2641_v23 }
0x12c7   :  { %2642 = vrcp.f32 %v1332_v11 }
0x12d1   :  { %v2643_v56 = vpop.eup %2642 }
0x1328   :  { %v1364_v54 = vpop.permute.xlu1 %1363 }
0x1329   :  { %v1366_v55 = vadd.f32 %v1364_v54, %v1327_v18 }
0x132a   :  { %v1338_v57 = vpop.permute.xlu0 %1337 }
0x132b   :  { %v2228_v58 = vmul.f32 -1.442695, %v1366_v55  ;;  %v1340_v59 = vmul.f32 %v2643_v56, %v1338_v57 }
0x132d   :  { %2644 = vpow2.f32 %v2228_v58  ;;  %1342 = vrot.lane.b32.xlu1 %v1340_v59, %s2711_s14 }
0x132e   :  { %v1376_v63 = vpop.permute.xlu0 %1375 }
0x1337   :  { %v2645_v60 = vpop.eup %2644 }
0x1338   :  { %v1370_v61 = vadd.f32 1.0, %v2645_v60 }
0x133a   :  { %2646 = vrcp.f32 %v1370_v61 }
0x1344   :  { %v2647_v62 = vpop.eup %2646 }
0x1345   :  { %v1378_v0 = vmul.f32 %v2647_v62, %v1376_v63 }
0x1347   :  { %1380 = vrot.lane.b32.xlu0 %v1378_v0, %s2711_s14 }
0x139f   :  { %v1343_v1 = vpop.permute.xlu1 %1342 }
0x13a0   :  { %v1345_v2 = vadd.f32 %v1343_v1, %v1325_v7  ;;  %v1499_v7 = vld [vmem:[#allocation2 + $0x30] sm:$0xff] }
0x13a2   :  { %2648 = vtanh.f32 %v1345_v2 }
0x13ac   :  { %v2649_v3 = vpop.eup %2648 }
0x13ad   :  { %1348 = vrot.lane.b32.xlu1 %v2649_v3, %s2716_s6 }
0x13b9   :  { %v1381_v4 = vpop.permute.xlu0 %1380 }
0x13ba   :  { %v1383_v5 = vadd.f32 %v1381_v4, %v1327_v18  ;;  %v1501_v18 = vld [vmem:[#allocation3 + $0x8] sm:$0xff] }
0x13bc   :  { %2650 = vtanh.f32 %v1383_v5 }
0x13c6   :  { %v2651_v6 = vpop.eup %2650 }
0x13c7   :  { %1386 = vrot.lane.b32.xlu0 %v2651_v6, %s2718_s28 }
0x141f   :  { %v1349_v8 = vpop.permute.xlu1 %1348 }
0x1420   :  { %v1351_v9 = vsub.f32 %v1250_v46, %v1349_v8 }
0x1422   :  { %1353 = vrot.lane.b32.xlu1 %v1351_v9, %s2719_s1 }
0x1439   :  { %v1387_v10 = vpop.permute.xlu0 %1386 }
0x143a   :  { %v1389_v12 = vsub.f32 %v1250_v46, %v1387_v10 }
0x143c   :  { %v1390_v13 = vmul.f32 %v2647_v62, %v1389_v12 }
0x143e   :  { %1392 = vrot.lane.b32.xlu1 %v1390_v13, %s2719_s1 }
0x1442   :  { %1412 = vrot.lane.b32.xlu1 %v1250_v46, %s2719_s1 }
0x1494   :  { %v1354_v14 = vpop.permute.xlu1 %1353 }
0x1495   :  { %v1356_v15 = vmul.f32 %v2643_v56, %v1354_v14 }
0x1497   :  { %1358 = vrot.lane.b32.xlu0 %v1356_v15, %s2719_s1 }
0x149b   :  { %1408 = vrot.lane.b32.xlu0 %v1250_v46, %s2711_s14 }
0x14b0   :  { %v1393_v16 = vpop.permute.xlu1 %1392 }
0x14b1   :  { %v3156_v17 = vadd.f32 %v2651_v6, %v1393_v16 }
0x14b4   :  { %v1413_v19 = vpop.permute.xlu1 %1412 }
0x14b5   :  { %v1415_v27 = vsel %vm852_vm2, %v3156_v17, %v1413_v19 }
0x14b6   :  { %1421 = vrot.lane.b32.xlu1 %v1415_v27, %s2718_s28 }
0x1509   :  { %v1359_v34 = vpop.permute.xlu0 %1358 }
0x150a   :  { %v3162_v39 = vadd.f32 %v2649_v3, %v1359_v34 }
0x150c   :  { %v1396_v33 = vsel %vm864_vm15, %v3162_v39, 0.0 }
0x150d   :  { %v1409_v41 = vpop.permute.xlu0 %1408 }
0x150e   :  { %v1411_v43 = vsel %vm864_vm15, %v3162_v39, %v1409_v41 }
0x150f   :  { %1417 = vrot.lane.b32.xlu0 %v1411_v43, %s2716_s6 }
0x1528   :  { %v1422_v44 = vpop.permute.xlu1 %1421 }
0x1581   :  { %v1418_v45 = vpop.permute.xlu0 %1417 }
0x1582   :  { %v1424_v46 = vsel %vm71_vm0, %v1418_v45, %v1422_v44 }
0x1583   :  { %2443 = vmatmul.mubr.msk.f32.vlgmr.msra.gmra.mrb[14].mxu0 %vm329_vm8, %v1424_v46 }
0x1656   :  { %v1494_v47 = vpop.f32.mrb[14].mxu0 }
0x1657   :  { %1537 = vrot.lane.b32.xlu1 %v1494_v47, %s2712_s18  ;;  %v2444_v48 = vpop.f32.mrb[15].mxu0  ;;  %v1509_v49 = vadd.f32 %v1494_v47, %v2897_v38  ;;  %v1547_v50 = vadd.f32 %v1494_v47, %v2904_v51  ;;  %v1502_v52 = vadd.f32 %v1499_v7, %v1494_v47 }
0x1659   :  { %1511 = vrot.lane.b32.xlu0 %v1509_v49, %s2716_s6  ;;  %v2230_v53 = vmul.f32 -1.442695, %v1502_v52 }
0x165b   :  { %2652 = vpow2.f32 %v2230_v53  ;;  %v1673_v53 = vld [vmem:[#allocation2 + $0x38] sm:$0xff] }
0x165d   :  { %1549 = vrot.lane.b32.xlu0 %v1547_v50, %s2715_s4 }
0x1665   :  { %v2653_v23 = vpop.eup %2652 }
0x1666   :  { %v1506_v11 = vadd.f32 1.0, %v2653_v23 }
0x1668   :  { %2654 = vrcp.f32 %v1506_v11 }
0x1672   :  { %v2655_v56 = vpop.eup %2654 }
0x16c9   :  { %v1538_v54 = vpop.permute.xlu1 %1537 }
0x16ca   :  { %v1540_v55 = vadd.f32 %v1538_v54, %v1501_v18 }
0x16cb   :  { %v1512_v57 = vpop.permute.xlu0 %1511 }
0x16cc   :  { %v2231_v58 = vmul.f32 -1.442695, %v1540_v55  ;;  %v1514_v59 = vmul.f32 %v2655_v56, %v1512_v57  ;;  %v1674_v55 = vld [vmem:[#allocation3] sm:$0xff] }
0x16ce   :  { %2656 = vpow2.f32 %v2231_v58  ;;  %1516 = vrot.lane.b32.xlu1 %v1514_v59, %s2711_s14 }
0x16cf   :  { %v1550_v63 = vpop.permute.xlu0 %1549 }
0x16d8   :  { %v2657_v60 = vpop.eup %2656 }
0x16d9   :  { %v1544_v61 = vadd.f32 1.0, %v2657_v60 }
0x16db   :  { %2658 = vrcp.f32 %v1544_v61 }
0x16e5   :  { %v2659_v62 = vpop.eup %2658 }
0x16e6   :  { %v1552_v0 = vmul.f32 %v2659_v62, %v1550_v63 }
0x16e8   :  { %1554 = vrot.lane.b32.xlu0 %v1552_v0, %s2711_s14 }
0x1740   :  { %v1517_v1 = vpop.permute.xlu1 %1516 }
0x1741   :  { %v1519_v2 = vadd.f32 %v1517_v1, %v1499_v7 }
0x1743   :  { %2660 = vtanh.f32 %v1519_v2 }
0x174d   :  { %v2661_v3 = vpop.eup %2660 }
0x174e   :  { %1522 = vrot.lane.b32.xlu1 %v2661_v3, %s2716_s6 }
0x175a   :  { %v1555_v4 = vpop.permute.xlu0 %1554 }
0x175b   :  { %v1557_v5 = vadd.f32 %v1555_v4, %v1501_v18 }
0x175d   :  { %2662 = vtanh.f32 %v1557_v5 }
0x1767   :  { %v2663_v6 = vpop.eup %2662 }
0x1768   :  { %1560 = vrot.lane.b32.xlu0 %v2663_v6, %s2718_s28 }
0x17c0   :  { %v1523_v8 = vpop.permute.xlu1 %1522 }
0x17c1   :  { %v1525_v9 = vsub.f32 %v1424_v46, %v1523_v8 }
0x17c3   :  { %1527 = vrot.lane.b32.xlu1 %v1525_v9, %s2719_s1 }
0x17da   :  { %v1561_v10 = vpop.permute.xlu0 %1560 }
0x17db   :  { %v1563_v12 = vsub.f32 %v1424_v46, %v1561_v10 }
0x17dd   :  { %v1564_v13 = vmul.f32 %v2659_v62, %v1563_v12 }
0x17df   :  { %1566 = vrot.lane.b32.xlu1 %v1564_v13, %s2719_s1 }
0x17e3   :  { %1586 = vrot.lane.b32.xlu1 %v1424_v46, %s2719_s1 }
0x1835   :  { %v1528_v14 = vpop.permute.xlu1 %1527 }
0x1836   :  { %v1530_v15 = vmul.f32 %v2655_v56, %v1528_v14  ;;  %v665_v14 = vsel %vm664_vm12, %v2993_v35, 0.0  ;;  %v865_v35 = vsel %vm864_vm15, %v3035_v25, 0.0 }
0x1838   :  { %1532 = vrot.lane.b32.xlu0 %v1530_v15, %s2719_s1 }
0x183c   :  { %1582 = vrot.lane.b32.xlu0 %v1424_v46, %s2711_s14 }
0x1851   :  { %v1567_v16 = vpop.permute.xlu1 %1566 }
0x1852   :  { %v1569_v19 = vadd.f32 %v2663_v6, %v1567_v16  ;;  %v1041_v16 = vsel %vm1040_vm10, %v3095_v36, 0.0  ;;  %v3234_v36 = vld [vmem:[%s3411_s2] sm:$0xff] }
0x1853   :  { %vm1756_vm1 = vcmp.gt.s32.totalorder %v3234_v36, 0  ;;  %vm1760_vm13 = vcmp.gt.s32.totalorder %v3234_v36, 4  ;;  %vm1762_vm14 = vcmp.gt.s32.totalorder %v3234_v36, 6  ;;  %vm1761_vm15 = vcmp.gt.s32.totalorder %v3234_v36, 5 }
0x1854   :  { %v1576_v15 = vsel %vm664_vm12, %v1569_v19, 0.0  ;;  %v2053_v25 = vsel %vm1756_vm1, 1, %v2717_v20  ;;  %v2059_v39 = vsel %vm1762_vm14, 1, %v2717_v20  ;;  %v2058_v42 = vsel %vm1761_vm15, 1, %v2717_v20 }
0x1855   :  { %v1587_v27 = vpop.permute.xlu1 %1586 }
0x1856   :  { %v1589_v34 = vsel %vm664_vm12, %v1569_v19, %v1587_v27  ;;  %v1228_v27 = vsel %vm1040_vm10, %v3123_v26, 0.0  ;;  %vm1758_vm12 = vcmp.gt.s32.totalorder %v3234_v36, 2  ;;  %v2057_v26 = vsel %vm1760_vm13, 1, %v2717_v20 }
0x1857   :  { %1595 = vrot.lane.b32.xlu1 %v1589_v34, %s2718_s28  ;;  %v2055_v21 = vsel %vm1758_vm12, 1, %v2717_v20 }
0x18aa   :  { %v1533_v41 = vpop.permute.xlu0 %1532 }
0x18ab   :  { %v3187_v43 = vadd.f32 %v2661_v3, %v1533_v41  ;;  %v853_v41 = vsel %vm852_vm2, %v3044_v32, 0.0  ;;  %v1766_v32 = vld [vmem:[%s3412_s10 + $0x10] sm:$0xff] }
0x18ad   :  { %v1570_v31 = vsel %vm676_vm11, %v3187_v43, 0.0 }
0x18ae   :  { %v1583_v44 = vpop.permute.xlu0 %1582 }
0x18af   :  { %v1585_v45 = vsel %vm676_vm11, %v3187_v43, %v1583_v44  ;;  %v1402_v43 = vsel %vm852_vm2, %v3156_v17, 0.0  ;;  %v1764_v44 = vld [vmem:[%s3412_s10] sm:$0xff]  ;;  %v2556_v17 = vpack.c.bf16 %v1767_v29, %v1766_v32 }
0x18b0   :  { %1591 = vrot.lane.b32.xlu0 %v1585_v45, %s2716_s6  ;;  %v1765_v45 = vld [vmem:[%s3412_s10 + $0x8] sm:$0xff] }
0x18c9   :  { %v1596_v47 = vpop.permute.xlu1 %1595 }
0x1922   :  { %v1592_v46 = vpop.permute.xlu0 %1591 }
0x1923   :  { %v1598_v48 = vsel %vm71_vm0, %v1592_v46, %v1596_v47  ;;  %v2552_v47 = vpack.c.bf16 %v1765_v45, %v1764_v44 }
0x1924   :  { %2454 = vmatmul.mubr.msk.f32.vlgmr.msra.gmra.mrb[14].mxu1 %vm329_vm8, %v1598_v48 }
0x1925   :  { %2553 = vmatprep.subr.bf16.mxu0 %v2552_v47 }
0x1926   :  { %2555 = vmatpush3.bf16.msra.mxu0 %v2552_v47 }
0x1927   :  { %2557 = vmatprep.subr.bf16.mxu0 %v2556_v17 }
0x192a   :  { %2559 = vmatpush3.bf16.msra.mxu0 %v2556_v17 }
0x19f7   :  { %v1668_v49 = vpop.f32.mrb[14].mxu1 }
0x19f8   :  { %v1682_v50 = vadd.f32 %v1668_v49, %v2897_v38  ;;  %1710 = vrot.lane.b32.xlu1 %v1668_v49, %s2712_s18  ;;  %v2455_v7 = vpop.f32.mrb[15].mxu1  ;;  %v1720_v52 = vadd.f32 %v1668_v49, %v2904_v51  ;;  %v1675_v23 = vadd.f32 %v1673_v53, %v1668_v49 }
0x19f9   :  { %v1053_v7 = vsel %vm1052_vm9, %v3086_v22, 0.0 }
0x19fa   :  { %1684 = vrot.lane.b32.xlu0 %v1682_v50, %s2716_s6  ;;  %v2233_v11 = vmul.f32 -1.442695, %v1675_v23  ;;  %v677_v23 = vsel %vm676_vm11, %v2984_v30, 0.0  ;;  %vm1759_vm11 = vcmp.gt.s32.totalorder %v3234_v36, 3 }
0x19fc   :  { %2664 = vpow2.f32 %v2233_v11 }
0x19fe   :  { %1722 = vrot.lane.b32.xlu0 %v1720_v52, %s2715_s4 }
0x1a06   :  { %v2665_v18 = vpop.eup %2664 }
0x1a07   :  { %v1679_v54 = vadd.f32 1.0, %v2665_v18 }
0x1a09   :  { %2666 = vrcp.f32 %v1679_v54 }
0x1a13   :  { %v2667_v38 = vpop.eup %2666 }
0x1a6a   :  { %v1711_v56 = vpop.permute.xlu1 %1710 }
0x1a6b   :  { %v1713_v57 = vadd.f32 %v1711_v56, %v1674_v55  ;;  %v2056_v56 = vsel %vm1759_vm11, 1, %v2717_v20 }
0x1a6c   :  { %v1685_v58 = vpop.permute.xlu0 %1684 }
0x1a6d   :  { %v2234_v59 = vmul.f32 -1.442695, %v1713_v57  ;;  %v1687_v60 = vmul.f32 %v2667_v38, %v1685_v58 }
0x1a6f   :  { %2668 = vpow2.f32 %v2234_v59  ;;  %1689 = vrot.lane.b32.xlu1 %v1687_v60, %s2711_s14 }
0x1a70   :  { %v1723_v63 = vpop.permute.xlu0 %1722 }
0x1a79   :  { %v2669_v51 = vpop.eup %2668 }
0x1a7a   :  { %v1717_v61 = vadd.f32 1.0, %v2669_v51 }
0x1a7c   :  { %2670 = vrcp.f32 %v1717_v61 }
0x1a86   :  { %v2671_v62 = vpop.eup %2670 }
0x1a87   :  { %v1725_v0 = vmul.f32 %v2671_v62, %v1723_v63 }
0x1a89   :  { %1727 = vrot.lane.b32.xlu0 %v1725_v0, %s2711_s14 }
0x1ae1   :  { %v1690_v1 = vpop.permute.xlu1 %1689 }
0x1ae2   :  { %v1692_v2 = vadd.f32 %v1690_v1, %v1673_v53  ;;  %v1222_v53 = vsel %vm1052_vm9, %v3129_v40, 0.0 }
0x1ae4   :  { %2672 = vtanh.f32 %v1692_v2 }
0x1aee   :  { %v3202_v3 = vpop.eup %2672 }
0x1aef   :  { %1695 = vrot.lane.b32.xlu1 %v3202_v3, %s2716_s6 }
0x1afb   :  { %v1728_v4 = vpop.permute.xlu0 %1727 }
0x1afc   :  { %v1730_v5 = vadd.f32 %v1728_v4, %v1674_v55 }
0x1afe   :  { %2674 = vtanh.f32 %v1730_v5  ;;  %v1769_v5 = vld [vmem:[%s3413_s12] sm:$0xff] }
0x1b08   :  { %v2675_v6 = vpop.eup %2674 }
0x1b09   :  { %1733 = vrot.lane.b32.xlu0 %v2675_v6, %s2718_s28 }
0x1b61   :  { %v1696_v8 = vpop.permute.xlu1 %1695 }
0x1b62   :  { %v1698_v9 = vsub.f32 %v1598_v48, %v1696_v8 }
0x1b64   :  { %1700 = vrot.lane.b32.xlu1 %v1698_v9, %s2719_s1  ;;  %v1771_v9 = vld [vmem:[%s3413_s12 + $0x10] sm:$0xff] }
0x1b7b   :  { %v1734_v10 = vpop.permute.xlu0 %1733 }
0x1b7c   :  { %v1736_v12 = vsub.f32 %v1598_v48, %v1734_v10  ;;  %v1772_v10 = vld [vmem:[%s3413_s12 + $0x18] sm:$0xff] }
0x1b7e   :  { %v1737_v13 = vmul.f32 %v2671_v62, %v1736_v12  ;;  %v2564_v12 = vpack.c.bf16 %v1772_v10, %v1771_v9 }
0x1b80   :  { %1739 = vrot.lane.b32.xlu0 %v1737_v13, %s2719_s1  ;;  %v2235_v13 = vld [vmem:[%s3414_s11] ss:$0 sm:$0xff] }
0x1b84   :  { %667 = vrot.lane.b32.xlu0 %v665_v14, %s2716_s6 }
0x1b88   :  { %1578 = vrot.lane.b32.xlu0 %v1576_v15, %s2718_s28 }
0x1b8c   :  { %1043 = vrot.lane.b32.xlu0 %v1041_v16, %s2716_s6 }
0x1b90   :  { %1230 = vrot.lane.b32.xlu0 %v1228_v27, %s2718_s28 }
0x1b94   :  { %867 = vrot.lane.b32.xlu0 %v865_v35, %s2718_s28 }
0x1b98   :  { %1398 = vrot.lane.b32.xlu0 %v1396_v33, %s2716_s6 }
0x1b9c   :  { %1572 = vrot.lane.b32.xlu0 %v1570_v31, %s2716_s6 }
0x1ba0   :  { %2062 = vperm.xlu0 %2579, %v2053_v25  }
0x1ba4   :  { %2068 = vperm.xlu0 %2579, %v2055_v21  }
0x1ba8   :  { %2074 = vperm.xlu0 %2579, %v2057_v26  }
0x1bac   :  { %2080 = vperm.xlu0 %2579, %v2059_v39  }
0x1bd6   :  { %v1701_v19 = vpop.permute.xlu1 %1700 }
0x1bd7   :  { %v1703_v34 = vmul.f32 %v2667_v38, %v1701_v19 }
0x1bd9   :  { %1705 = vrot.lane.b32.xlu1 %v1703_v34, %s2719_s1 }
0x1bdd   :  { %855 = vrot.lane.b32.xlu1 %v853_v41, %s2716_s6 }
0x1be1   :  { %1404 = vrot.lane.b32.xlu1 %v1402_v43, %s2718_s28 }
0x1bf2   :  { %v1740_v46 = vpop.permute.xlu0 %1739 }
0x1bf3   :  { %v1742_v48 = vadd.f32 %v2675_v6, %v1740_v46  ;;  %v1770_v6 = vld [vmem:[%s3413_s12 + $0x8] sm:$0xff] }
0x1bf4   :  { %v2560_v8 = vpack.c.bf16 %v1770_v6, %v1769_v5 }
0x1bf5   :  { %v1749_v49 = vsel %vm492_vm5, %v1742_v48, 0.0  ;;  %vm1757_vm5 = vcmp.gt.s32.totalorder %v3234_v36, 1 }
0x1bf6   :  { %v668_v50 = vpop.permute.xlu0 %667  ;;  %1751 = vrot.lane.b32.xlu1 %v1749_v49, %s2718_s28  ;;  %v2054_v54 = vsel %vm1757_vm5, 1, %v2717_v20  ;;  %2561 = vmatprep.subr.bf16.mxu1 %v2560_v8 }
0x1bf7   :  { %671 = vst.msk [vmem:[#allocation4 + $0x8] sm:$0xff] %vm71_vm0, %v668_v50  ;;  %2563 = vmatpush3.bf16.msra.mxu1 %v2560_v8 }
0x1bf8   :  { %2565 = vmatprep.subr.bf16.mxu1 %v2564_v12 }
0x1bfa   :  { %v1579_v52 = vpop.permute.xlu0 %1578  ;;  %1055 = vrot.lane.b32.xlu1 %v1053_v7, %s2718_s28 }
0x1bfb   :  { %1581 = vst.msk [vmem:[#allocation4 + $0x8] sm:$0xff] %vm510_vm7, %v1579_v52  ;;  %2567 = vmatpush3.bf16.msra.mxu1 %v2564_v12 }
0x1bfe   :  { %v1044_v37 = vpop.permute.xlu0 %1043  ;;  %1224 = vrot.lane.b32.xlu1 %v1222_v53, %s2716_s6 }
0x1bff   :  { %1047 = vst.msk [vmem:[#allocation4 + $0x18] sm:$0xff] %vm71_vm0, %v1044_v37 }
0x1c02   :  { %v1231_v11 = vpop.permute.xlu0 %1230  ;;  %679 = vrot.lane.b32.xlu1 %v677_v23, %s2718_s28  ;;  %v3312_v51 = vld [vmem:[#allocation4 + $0x8] sm:$0xff] }
0x1c03   :  { %1233 = vst.msk [vmem:[#allocation4 + $0x18] sm:$0xff] %vm510_vm7, %v1231_v11 }
0x1c06   :  { %v868_v22 = vpop.permute.xlu0 %867 }
0x1c07   :  { %871 = vst.msk [vmem:[#allocation4 + $0x28] sm:$0xff] %vm510_vm7, %v868_v22 }
0x1c0a   :  { %v1399_v18 = vpop.permute.xlu0 %1398  ;;  %v3321_v63 = vld [vmem:[#allocation4 + $0x18] sm:$0xff] }
0x1c0b   :  { %1401 = vst.msk [vmem:[#allocation4 + $0x28] sm:$0xff] %vm71_vm0, %v1399_v18 }
0x1c0e   :  { %v1573_v62 = vpop.permute.xlu0 %1572 }
0x1c12   :  { %v3330_v1 = vld [vmem:[#allocation4 + $0x28] sm:$0xff] }
0x1c1f   :  { %v2063_v50 = vpop.permute.xlu0 %2062 }
0x1c23   :  { %v2069_v52 = vpop.permute.xlu0 %2068 }
0x1c24   :  { %vm2087_vm9 = vcmp.eq.s32.totalorder %v2069_v52, 1 }
0x1c27   :  { %v2075_v18 = vpop.permute.xlu0 %2074 }
0x1c28   :  { %vm2089_vm3 = vcmp.eq.s32.totalorder %v2075_v18, 1 }
0x1c4b   :  { %v1706_v24 = vpop.permute.xlu1 %1705 }
0x1c4c   :  { %v1708_v40 = vadd.f32 %v3202_v3, %v1706_v24 }
0x1c4e   :  { %v1743_v28 = vsel %vm503_vm6, %v1708_v40, 0.0  ;;  %vm1763_vm6 = vcmp.gt.s32.totalorder %v3234_v36, 7 }
0x1c4f   :  { %1745 = vrot.lane.b32.xlu1 %v1743_v28, %s2716_s6  ;;  %v856_v30 = vpop.permute.xlu1 %855  ;;  %v2060_v57 = vsel %vm1763_vm6, 1, %v2717_v20 }
0x1c50   :  { %859 = vst.msk [vmem:[#allocation4 + $0x10] sm:$0xff] %vm71_vm0, %v856_v30 }
0x1c53   :  { %2065 = vperm.xlu1 %2578, %v2054_v54   ;;  %v1405_v55 = vpop.permute.xlu1 %1404 }
0x1c54   :  { %1407 = vst.msk [vmem:[#allocation4 + $0x10] sm:$0xff] %vm510_vm7, %v1405_v55 }
0x1c57   :  { %2071 = vperm.xlu1 %2578, %v2056_v56  }
0x1c5b   :  { %2077 = vperm.xlu1 %2578, %v2058_v42   ;;  %v3316_v20 = vld [vmem:[#allocation4 + $0x10] sm:$0xff] }
0x1c5f   :  { %2083 = vperm.xlu1 %2578, %v2060_v57  }
0x1c68   :  { %v1752_v38 = vpop.permute.xlu1 %1751 }
0x1c69   :  { %1754 = vst.msk [vmem:[#allocation4] sm:$0xff] %vm510_vm7, %v1752_v38 }
0x1c6c   :  { %v1056_v58 = vpop.permute.xlu1 %1055 }
0x1c6d   :  { %1059 = vst.msk [vmem:[#allocation4 + $0x20] sm:$0xff] %vm510_vm7, %v1056_v58 }
0x1c70   :  { %v1225_v59 = vpop.permute.xlu1 %1224  ;;  %v3307_v60 = vld [vmem:[#allocation4] sm:$0xff] }
0x1c71   :  { %1227 = vst.msk [vmem:[#allocation4 + $0x20] sm:$0xff] %vm71_vm0, %v1225_v59  ;;  %2464 = vmatprep.mubr.msk.f32.mxu0 %vm329_vm8, %v3307_v60 }
0x1c72   :  { %2465 = vmatmul.mubr.msk.f32.vlgmr.msra.gmra.mrb[16].mxu0 %vm329_vm8, %v3312_v51 }
0x1c73   :  { %2467 = vmatprep.mubr.msk.f32.mxu0 %vm329_vm8, %v3316_v20 }
0x1c74   :  { %v680_v61 = vpop.permute.xlu1 %679 }
0x1c75   :  { %683 = vst.msk [vmem:[#allocation4 + $0x30] sm:$0xff] %vm510_vm7, %v680_v61  ;;  %vm2085_vm7 = vcmp.eq.s32.totalorder %v2063_v50, 1 }
0x1c76   :  { %1575 = vst.msk [vmem:[#allocation4 + $0x30] sm:$0xff] %vm71_vm0, %v1573_v62  ;;  %2468 = vmatmul.mubr.msk.f32.gmra.mrb[18].mxu0 %vm329_vm8, %v3321_v63 }
0x1c78   :  { %v3326_v0 = vld [vmem:[#allocation4 + $0x20] sm:$0xff] }
0x1c79   :  { %2470 = vmatprep.mubr.msk.f32.mxu0 %vm329_vm8, %v3326_v0 }
0x1c7a   :  { %2471 = vmatmul.mubr.msk.f32.gmra.mrb[20].mxu0 %vm329_vm8, %v3330_v1 }
0x1c7d   :  { %v3334_v2 = vld [vmem:[#allocation4 + $0x30] sm:$0xff] }
0x1c7e   :  { %2473 = vmatprep.mubr.msk.f32.mxu0 %vm329_vm8, %v3334_v2 }
0x1cc1   :  { %v1746_v3 = vpop.permute.xlu1 %1745 }
0x1cc2   :  { %1748 = vst.msk [vmem:[#allocation4 + $0x38] sm:$0xff] %vm71_vm0, %v1746_v3  ;;  %v2081_v3 = vpop.permute.xlu0 %2080 }
0x1cc3   :  { %vm2091_vm1 = vcmp.eq.s32.totalorder %v2081_v3, 1 }
0x1cc9   :  { %v3339_v4 = vld [vmem:[#allocation4 + $0x38] sm:$0xff] }
0x1cca   :  { %2474 = vmatmul.mubr.msk.f32.gmra.mrb[22].mxu0 %vm329_vm8, %v3339_v4 }
0x1cd2   :  { %v2066_v49 = vpop.permute.xlu1 %2065 }
0x1cd3   :  { %vm2086_vm0 = vcmp.eq.s32.totalorder %v2066_v49, 1 }
0x1cd6   :  { %v2072_v7 = vpop.permute.xlu1 %2071 }
0x1cd7   :  { %vm2088_vm4 = vcmp.eq.s32.totalorder %v2072_v7, 1 }
0x1cda   :  { %v2078_v11 = vpop.permute.xlu1 %2077 }
0x1cdb   :  { %vm2090_vm2 = vcmp.eq.s32.totalorder %v2078_v11, 1 }
0x1cde   :  { %v2084_v62 = vpop.permute.xlu1 %2083 }
0x1cdf   :  { %vm2092_vm10 = vcmp.eq.s32.totalorder %v2084_v62, 1 }
0x1d45   :  { %v2466_v14 = vpop.f32.mrb[16].mxu0 }
0x1d46   :  { %v1883_v15 = vadd.f32 %v2466_v14, %v2235_v13  ;;  %v1877_v16 = vpop.f32.mrb[17].mxu0 }
0x1d47   :  { %v1878_v27 = vadd.f32 %v2235_v13, %v1877_v16 }
0x1d49   :  { %2676 = vtanh.f32 %v1878_v27  ;;  %v2469_v35 = vpop.f32.mrb[18].mxu0 }
0x1d4a   :  { %2678 = vtanh.f32 %v1883_v15  ;;  %v1893_v33 = vadd.f32 %v2469_v35, %v2235_v13  ;;  %v1887_v36 = vpop.f32.mrb[19].mxu0 }
0x1d4b   :  { %v1888_v31 = vadd.f32 %v2235_v13, %v1887_v36 }
0x1d4d   :  { %2680 = vtanh.f32 %v1888_v31  ;;  %v2472_v25 = vpop.f32.mrb[20].mxu0 }
0x1d4e   :  { %2682 = vtanh.f32 %v1893_v33  ;;  %v1903_v21 = vadd.f32 %v2472_v25, %v2235_v13  ;;  %v1897_v26 = vpop.f32.mrb[21].mxu0 }
0x1d4f   :  { %v1898_v39 = vadd.f32 %v2235_v13, %v1897_v26 }
0x1d51   :  { %2684 = vtanh.f32 %v1898_v39 }
0x1d52   :  { %2686 = vtanh.f32 %v1903_v21 }
0x1d53   :  { %v2677_v19 = vpop.eup %2676 }
0x1d54   :  { %v2679_v34 = vpop.eup %2678  ;;  %2484 = vmatprep.mubr.msk.f32.mxu1 %vm329_vm8, %v2677_v19 }
0x1d55   :  { %2485 = vmatmul.mubr.msk.f32.vlgmr.msra.gmra.mrb[16].mxu1 %vm329_vm8, %v2679_v34 }
0x1d57   :  { %v2681_v41 = vpop.eup %2680 }
0x1d58   :  { %v2683_v43 = vpop.eup %2682  ;;  %2487 = vmatprep.mubr.msk.f32.mxu1 %vm329_vm8, %v2681_v41 }
0x1d59   :  { %2488 = vmatmul.mubr.msk.f32.gmra.mrb[18].mxu1 %vm329_vm8, %v2683_v43 }
0x1d5b   :  { %v2685_v44 = vpop.eup %2684 }
0x1d5c   :  { %v2687_v45 = vpop.eup %2686  ;;  %2490 = vmatprep.mubr.msk.f32.mxu1 %vm329_vm8, %v2685_v44 }
0x1d5d   :  { %2491 = vmatmul.mubr.msk.f32.gmra.mrb[20].mxu1 %vm329_vm8, %v2687_v45 }
0x1d9d   :  { %v2475_v47 = vpop.f32.mrb[22].mxu0 }
0x1d9e   :  { %v1913_v32 = vadd.f32 %v2475_v47, %v2235_v13  ;;  %v1907_v29 = vpop.f32.mrb[23].mxu0 }
0x1d9f   :  { %v1908_v17 = vadd.f32 %v2235_v13, %v1907_v29 }
0x1da1   :  { %2688 = vtanh.f32 %v1908_v17 }
0x1da2   :  { %2690 = vtanh.f32 %v1913_v32 }
0x1dab   :  { %v2689_v46 = vpop.eup %2688 }
0x1dac   :  { %v2691_v48 = vpop.eup %2690  ;;  %2493 = vmatprep.mubr.msk.f32.mxu1 %vm329_vm8, %v2689_v46 }
0x1dad   :  { %2494 = vmatmul.mubr.msk.f32.gmra.mrb[22].mxu1 %vm329_vm8, %v2691_v48 }
0x1e28   :  { %v2486_v53 = vpop.f32.mrb[16].mxu1 }
0x1e29   :  { %v2014_v37 = vpop.f32.mrb[17].mxu1  ;;  %v2094_v24 = vsel %vm2086_vm0, %v2486_v53, -1e+30 }
0x1e2a   :  { %v2093_v40 = vsel %vm2085_vm7, %v2014_v37, -1e+30  ;;  %v2102_v55 = vsel %vm329_vm8, %v2094_v24, -inf }
0x1e2b   :  { %v2101_v57 = vsel %vm329_vm8, %v2093_v40, -inf }
0x1e2c   :  { %v2489_v23 = vpop.f32.mrb[18].mxu1 }
0x1e2d   :  { %v2024_v22 = vpop.f32.mrb[19].mxu1  ;;  %v2096_v5 = vsel %vm2088_vm4, %v2489_v23, -1e+30 }
0x1e2e   :  { %v2095_v6 = vsel %vm2087_vm9, %v2024_v22, -1e+30  ;;  %v2104_v12 = vsel %vm329_vm8, %v2096_v5, -inf }
0x1e2f   :  { %v2103_v15 = vsel %vm329_vm8, %v2095_v6, -inf }
0x1e30   :  { %v2492_v28 = vpop.f32.mrb[20].mxu1 }
0x1e31   :  { %v2098_v30 = vsel %vm2090_vm2, %v2492_v28, -1e+30  ;;  %v2034_v54 = vpop.f32.mrb[21].mxu1 }
0x1e32   :  { %v2107_v56 = vsel %vm329_vm8, %v2098_v30, -inf  ;;  %v2097_v42 = vsel %vm2089_vm3, %v2034_v54, -1e+30 }
0x1e33   :  { %v2108_v38 = vmax.f32 %v2102_v55, %v2107_v56  ;;  %v2105_v58 = vsel %vm329_vm8, %v2097_v42, -inf }
0x1e34   :  { %v2106_v59 = vmax.f32 %v2101_v57, %v2105_v58 }
0x1e36   :  { %v2113_v61 = vmax.f32 %v2106_v59, %v2108_v38 }
0x1e80   :  { %v2495_v8 = vpop.f32.mrb[22].mxu1 }
0x1e81   :  { %v2100_v9 = vsel %vm2092_vm10, %v2495_v8, -1e+30  ;;  %v2044_v10 = vpop.f32.mrb[23].mxu1 }
0x1e82   :  { %v2111_v13 = vsel %vm329_vm8, %v2100_v9, -inf  ;;  %v2099_v14 = vsel %vm2091_vm1, %v2044_v10, -1e+30 }
0x1e83   :  { %v2112_v16 = vmax.f32 %v2104_v12, %v2111_v13  ;;  %v2109_v27 = vsel %vm329_vm8, %v2099_v14, -inf }
0x1e84   :  { %v2110_v35 = vmax.f32 %v2103_v15, %v2109_v27 }
0x1e86   :  { %v2114_v33 = vmax.f32 %v2110_v35, %v2112_v16 }
0x1e88   :  { %v2115_v36 = vmax.f32 %v2113_v61, %v2114_v33 }
0x1e8a   :  { %v2116_v31 = vsub.f32 %v2093_v40, %v2115_v36  ;;  %v2117_v25 = vsub.f32 %v2094_v24, %v2115_v36  ;;  %v2118_v21 = vsub.f32 %v2095_v6, %v2115_v36  ;;  %v2119_v26 = vsub.f32 %v2096_v5, %v2115_v36 }
0x1e8b   :  { %v2120_v39 = vsub.f32 %v2097_v42, %v2115_v36  ;;  %v2121_v19 = vsub.f32 %v2098_v30, %v2115_v36  ;;  %v2122_v34 = vsub.f32 %v2099_v14, %v2115_v36  ;;  %v2123_v41 = vsub.f32 %v2100_v9, %v2115_v36 }
0x1e8c   :  { %v2124_v43 = vmul.f32 1.442695, %v2116_v31  ;;  %v2126_v44 = vmul.f32 1.442695, %v2117_v25  ;;  %v2128_v45 = vmul.f32 1.442695, %v2118_v21 }
0x1e8d   :  { %v2130_v47 = vmul.f32 1.442695, %v2119_v26  ;;  %v2132_v32 = vmul.f32 1.442695, %v2120_v39  ;;  %v2134_v29 = vmul.f32 1.442695, %v2121_v19 }
0x1e8e   :  { %2692 = vpow2.f32 %v2124_v43  ;;  %v2136_v17 = vmul.f32 1.442695, %v2122_v34  ;;  %v2138_v46 = vmul.f32 1.442695, %v2123_v41 }
0x1e8f   :  { %2694 = vpow2.f32 %v2126_v44 }
0x1e90   :  { %2696 = vpow2.f32 %v2128_v45 }
0x1e91   :  { %2698 = vpow2.f32 %v2130_v47 }
0x1e92   :  { %2700 = vpow2.f32 %v2132_v32 }
0x1e93   :  { %2702 = vpow2.f32 %v2134_v29 }
0x1e94   :  { %2704 = vpow2.f32 %v2136_v17 }
0x1e95   :  { %2706 = vpow2.f32 %v2138_v46 }
0x1e98   :  { %v2693_v48 = vpop.eup %2692 }
0x1e99   :  { %v2695_v49 = vpop.eup %2694  ;;  %v2140_v50 = vsel %vm329_vm8, %v2693_v48, 0.0 }
0x1e9a   :  { %v2697_v7 = vpop.eup %2696  ;;  %v2141_v52 = vsel %vm329_vm8, %v2695_v49, 0.0 }
0x1e9b   :  { %v2699_v53 = vpop.eup %2698  ;;  %v2142_v37 = vadd.f32 %v2141_v52, %v2140_v50  ;;  %v2143_v23 = vsel %vm329_vm8, %v2697_v7, 0.0 }
0x1e9c   :  { %v2701_v11 = vpop.eup %2700  ;;  %v2145_v18 = vsel %vm329_vm8, %v2699_v53, 0.0 }
0x1e9d   :  { %v2144_v22 = vadd.f32 %v2143_v23, %v2142_v37  ;;  %v2703_v24 = vpop.eup %2702  ;;  %v2147_v28 = vsel %vm329_vm8, %v2701_v11, 0.0 }
0x1e9e   :  { %v2705_v30 = vpop.eup %2704  ;;  %v2149_v55 = vsel %vm329_vm8, %v2703_v24, 0.0 }
0x1e9f   :  { %v2146_v40 = vadd.f32 %v2145_v18, %v2144_v22  ;;  %v2707_v56 = vpop.eup %2706  ;;  %v2151_v57 = vsel %vm329_vm8, %v2705_v30, 0.0 }
0x1ea0   :  { %v2153_v58 = vsel %vm329_vm8, %v2707_v56, 0.0 }
0x1ea1   :  { %v2148_v54 = vadd.f32 %v2147_v28, %v2146_v40 }
0x1ea3   :  { %v2150_v42 = vadd.f32 %v2149_v55, %v2148_v54 }
0x1ea5   :  { %v2152_v38 = vadd.f32 %v2151_v57, %v2150_v42 }
0x1ea7   :  { %v2154_v59 = vadd.f32 %v2153_v58, %v2152_v38 }
0x1ea9   :  { %2708 = vrcp.f32 %v2154_v59 }
0x1eb3   :  { %v2709_v61 = vpop.eup %2708 }
0x1eb4   :  { %v2156_v62 = vmul.f32 %v2709_v61, %v2693_v48  ;;  %v2157_v3 = vmul.f32 %v2709_v61, %v2695_v49  ;;  %v2158_v5 = vmul.f32 %v2709_v61, %v2697_v7  ;;  %v2159_v6 = vmul.f32 %v2709_v61, %v2699_v53 }
0x1eb5   :  { %v2160_v8 = vmul.f32 %v2709_v61, %v2701_v11  ;;  %v2161_v9 = vmul.f32 %v2709_v61, %v2703_v24  ;;  %v2162_v10 = vmul.f32 %v2709_v61, %v2705_v30  ;;  %v2163_v12 = vmul.f32 %v2709_v61, %v2707_v56 }
0x1eb6   :  { %v2164_v13 = vmul.f32 %v2156_v62, %v3307_v60  ;;  %v2165_v14 = vmul.f32 %v2157_v3, %v3312_v51  ;;  %v2166_v15 = vmul.f32 %v2158_v5, %v3316_v20  ;;  %v2167_v16 = vmul.f32 %v2159_v6, %v3321_v63 }
0x1eb7   :  { %v2168_v36 = vmul.f32 %v2160_v8, %v3326_v0  ;;  %v2169_v21 = vmul.f32 %v2161_v9, %v3330_v1  ;;  %v2170_v51 = vmul.f32 %v2162_v10, %v3334_v2  ;;  %v2171_v39 = vmul.f32 %v2163_v12, %v3339_v4 }
0x1eb8   :  { %v2172_v27 = vsel %vm329_vm8, %v2164_v13, 0.0  ;;  %v2173_v35 = vsel %vm329_vm8, %v2165_v14, 0.0  ;;  %v2175_v31 = vsel %vm329_vm8, %v2166_v15, 0.0  ;;  %v2177_v60 = vsel %vm329_vm8, %v2167_v16, 0.0 }
0x1eb9   :  { %v2174_v33 = vadd.f32 %v2173_v35, %v2172_v27  ;;  %v2179_v20 = vsel %vm329_vm8, %v2168_v36, 0.0  ;;  %v2181_v19 = vsel %vm329_vm8, %v2169_v21, 0.0  ;;  %v2183_v0 = vsel %vm329_vm8, %v2170_v51, 0.0 }
0x1eba   :  { %v2185_v43 = vsel %vm329_vm8, %v2171_v39, 0.0 }
0x1ebb   :  { %v2176_v25 = vadd.f32 %v2175_v31, %v2174_v33 }
0x1ebd   :  { %v2178_v26 = vadd.f32 %v2177_v60, %v2176_v25 }
0x1ebf   :  { %v2180_v63 = vadd.f32 %v2179_v20, %v2178_v26 }
0x1ec1   :  { %v2182_v34 = vadd.f32 %v2181_v19, %v2180_v63 }
0x1ec3   :  { %v2184_v41 = vadd.f32 %v2183_v0, %v2182_v34 }
0x1ec5   :  { %v2186_v44 = vadd.f32 %v2185_v43, %v2184_v41 }
0x1ec7   :  { %2187 = vst.msk [vmem:[%s3415_s13] sm:$0xff] %vm329_vm8, %v2186_v44 }

</bundles_post_ra>
